<compile_context>
chip_gen: v6e
topology: v6e:2x2x1
jax: 0.10.0
libtpu: 0.0.40
codegen_flags: <defaults>
</compile_context>

<pallas_src>
import functools

import jax
import jax.numpy as jnp
from jax.experimental import pallas as pl
from jax.experimental.pallas import tpu as pltpu

IMG_SIZE = 32        # small stand-in for config['img_size'] = 160 (divisible by 2**4)
CHANNELS = 1         # config['channels']
LEAKY_SLOPE = 0.2
BN_EPS = 0.8         # nn.BatchNorm2d(out_filters, 0.8): 2nd positional arg is eps
_VMEM_LIMIT = 32 * 1024 * 1024   # explicit, safe default on v5e / v6e / v7x


# ----------------------------- Pallas kernels ------------------------------

def _conv_block_kernel(s_ref, w_ref, b_ref, scale_ref, shift_ref, o_ref, *, row_stride):
    """Fused conv block (one image of the batch).

    The 3x3/stride-2/pad-1 conv is a 2x2/stride-1 conv over the 2x2
    space-to-depth of the padded input, flattened over space.  Each tap is a
    contiguous row window of the flattened input -> one MXU matmul per tap.

    s_ref:  (1, (Ho+1)*(Wo+1) + 1, 4*Cin)  bf16   flattened space-to-depth (+1 guard row)
    w_ref:  (4, 4*Cin, Cout)               bf16   folded 2x2-tap weights (VMEM-resident)
    b_ref / scale_ref / shift_ref: (1, Cout) f32
    o_ref:  (1, Ho*(Wo+1), Cout)           bf16   (column Wo of each row is junk,
                                                   sliced off by the wrapper)
    """
    m = o_ref.shape[1]
    acc = None
    for t, off in enumerate((0, 1, row_stride, row_stride + 1)):   # (dh, dw) taps
        tap = s_ref[0, off:off + m, :]                              # (M, 4*Cin) bf16
        part = jnp.dot(tap, w_ref[t], preferred_element_type=jnp.float32)  # f32 acc
        acc = part if acc is None else acc + part
    y = acc + b_ref[...]                                            # conv bias (f32)
    y = jnp.where(y > 0, y, LEAKY_SLOPE * y)                        # LeakyReLU(0.2)
    # Dropout2d(0.25): identity in eval mode.
    y = y * scale_ref[...] + shift_ref[...]                         # eval-mode BN (eps=0.8)
    o_ref[0] = y.astype(o_ref.dtype)


def _linear_sigmoid_kernel(x_ref, w_ref, b_ref, o_ref):
    y = jnp.dot(x_ref[...], w_ref[...], preferred_element_type=jnp.float32)
    y = y + b_ref[...]
    o_ref[...] = pl.reciprocal(1.0 + jnp.exp(-y), approx=True)      # Sigmoid (EUP recip)


# ------------------------------ wrappers -----------------------------------

def _conv_block(x_nhwc, blk):
    """One discriminator block: (N, H, W, Cin) bf16 -> (N, H//2, W//2, Cout) bf16."""
    n, h, w, cin = x_nhwc.shape
    ho, wo = h // 2, w // 2
    w4 = blk["w4"]                              # (4, 4*cin, cout) bf16
    cout = w4.shape[-1]
    k = w4.shape[1]                             # 4*cin
    rs = wo + 1                                 # row stride of flattened s2d input
    m = ho * rs                                 # output rows incl. one junk col per row

    # pad-by-1 + 2x2 space-to-depth + flatten space (+1 guard row for the last tap)
    xp = jnp.pad(x_nhwc, ((0, 0), (1, 1), (1, 1), (0, 0)))
    s = xp.reshape(n, ho + 1, 2, rs, 2, cin)
    s = jnp.transpose(s, (0, 1, 3, 2, 4, 5)).reshape(n, (ho + 1) * rs, 4 * cin)
    s = jnp.pad(s, ((0, 0), (0, 1), (0, 0)))

    flops = 2 * n * m * k * cout * 4
    bytes_accessed = s.size * 2 + w4.size * 2 + 3 * cout * 4 + n * m * cout * 2

    out = pl.pallas_call(
        functools.partial(_conv_block_kernel, row_stride=rs),
        out_shape=jax.ShapeDtypeStruct((n, m, cout), jnp.bfloat16),
        grid=(n,),
        in_specs=[
            pl.BlockSpec((1, (ho + 1) * rs + 1, 4 * cin), lambda i: (i, 0, 0)),
            pl.BlockSpec((4, k, cout), lambda i: (0, 0, 0)),    # weights stay resident
            pl.BlockSpec((1, cout), lambda i: (0, 0)),
            pl.BlockSpec((1, cout), lambda i: (0, 0)),
            pl.BlockSpec((1, cout), lambda i: (0, 0)),
        ],
        out_specs=pl.BlockSpec((1, m, cout), lambda i: (i, 0, 0)),
        compiler_params=pltpu.CompilerParams(
            dimension_semantics=("parallel",),                  # megacore over the batch
            vmem_limit_bytes=_VMEM_LIMIT,
        ),
        cost_estimate=pl.CostEstimate(flops=int(flops), transcendentals=0,
                                      bytes_accessed=int(bytes_accessed)),
    )(s, w4, blk["b"], blk["scale"], blk["shift"])

    # drop the junk column (c == wo) produced by the flattened-tap trick
    return out.reshape(n, ho, rs, cout)[:, :, :wo, :]


def _adv_head(feat, w, b):
    n, f = feat.shape
    return pl.pallas_call(
        _linear_sigmoid_kernel,
        out_shape=jax.ShapeDtypeStruct((n, 1), jnp.float32),
        in_specs=[pl.BlockSpec((n, f), lambda: (0, 0)),
                  pl.BlockSpec((f, 1), lambda: (0, 0)),
                  pl.BlockSpec((1, 1), lambda: (0, 0))],
        out_specs=pl.BlockSpec((n, 1), lambda: (0, 0)),
        compiler_params=pltpu.CompilerParams(vmem_limit_bytes=_VMEM_LIMIT),
        cost_estimate=pl.CostEstimate(flops=int(2 * n * f), transcendentals=int(n),
                                      bytes_accessed=int(feat.size * 2 + f * 2 + n * 4)),
    )(feat, w, b)


# ------------------------------ parameters ---------------------------------

def _fold_conv_weights(w_hwio):
    """(3,3,Cin,Cout) -> (4, 4*Cin, Cout): taps of the equivalent 2x2/stride-1
    conv over the 2x2 space-to-depth input (channel order = (ph, pw, cin))."""
    _, _, cin, cout = w_hwio.shape
    w4 = jnp.zeros((2, 2, 2, 2, cin, cout), w_hwio.dtype)   # (dh, dw, ph, pw, cin, cout)
    for kh in range(3):
        for kw in range(3):
            dh, ph = divmod(kh, 2)
            dw, pw = divmod(kw, 2)
            w4 = w4.at[dh, dw, ph, pw].set(w_hwio[kh, kw])
    return w4.reshape(4, 4 * cin, cout)


def init_params(key):
    """Deterministic synthetic parameters (shapes follow the PyTorch module)."""
    block_dims = [(CHANNELS, 16, False), (16, 32, True), (32, 64, True), (64, 128, True)]
    keys = iter(jax.random.split(key, 32))
    blocks = []
    for cin, cout, bn in block_dims:
        w = 0.05 * jax.random.normal(next(keys), (3, 3, cin, cout), jnp.float32)  # HWIO
        b = 0.05 * jax.random.normal(next(keys), (1, cout), jnp.float32)
        if bn:
            gamma = 1.0 + 0.1 * jax.random.normal(next(keys), (cout,), jnp.float32)
            beta = 0.1 * jax.random.normal(next(keys), (cout,), jnp.float32)
            r_mean = 0.1 * jax.random.normal(next(keys), (cout,), jnp.float32)
            r_var = 1.0 + 0.1 * jnp.abs(jax.random.normal(next(keys), (cout,), jnp.float32))
            scale = gamma / jnp.sqrt(r_var + BN_EPS)   # eps=0.8, as in the module
            shift = beta - r_mean * scale
        else:
            scale = jnp.ones((cout,), jnp.float32)
            shift = jnp.zeros((cout,), jnp.float32)
        blocks.append({
            "w4": _fold_conv_weights(w).astype(jnp.bfloat16),   # kernel path (bf16 MXU)
            "w_hwio": w,                                        # f32, reference path only
            "b": b,
            "scale": scale.reshape(1, cout),
            "shift": shift.reshape(1, cout),
        })
    ds = IMG_SIZE // 2 ** 4
    f = 128 * ds * ds
    # PyTorch flattens NCHW: rows of w_lin are (c, h, w)-ordered.  Permute once
    # to NHWC order so the kernel path needs no activation transpose.
    w_lin = 0.05 * jax.random.normal(next(keys), (f, 1), jnp.float32)
    w_lin_hwc = jnp.transpose(w_lin.reshape(128, ds, ds, 1), (1, 2, 0, 3)).reshape(f, 1)
    b_lin = 0.05 * jax.random.normal(next(keys), (1, 1), jnp.float32)
    return {"blocks": blocks,
            "w_lin_hwc": w_lin_hwc.astype(jnp.bfloat16),
            "w_lin": w_lin,                                     # f32, reference path only
            "b_lin": b_lin}


# ------------------------------ forward ------------------------------------

def discriminator_forward(params, img):
    """Pallas forward pass.  img: (N, C, H, W) (or anything reshapeable)."""
    n = img.shape[0]
    x = img.reshape(n, CHANNELS, IMG_SIZE, IMG_SIZE).astype(jnp.float32)
    x = jnp.transpose(x, (0, 2, 3, 1)).astype(jnp.bfloat16)     # NCHW -> NHWC, bf16 acts
    for blk in params["blocks"]:
        x = _conv_block(x, blk)
    feat = x.reshape(n, -1)                  # NHWC flatten (w_lin was pre-permuted)
    return _adv_head(feat, params["w_lin_hwc"], params["b_lin"])   # (N, 1) f32


def discriminator_reference(params, img):
    """Pure-JAX f32 reference with the PyTorch module's exact (eval-mode) semantics."""
    n = img.shape[0]
    x = img.reshape(n, CHANNELS, IMG_SIZE, IMG_SIZE).astype(jnp.float32)
    x = jnp.transpose(x, (0, 2, 3, 1))
    for blk in params["blocks"]:
        x = jax.lax.conv_general_dilated(
            x, blk["w_hwio"], window_strides=(2, 2), padding=((1, 1), (1, 1)),
            dimension_numbers=("NHWC", "HWIO", "NHWC"),
            precision=jax.lax.Precision.HIGHEST)
        x = x + blk["b"].reshape(1, 1, 1, -1)
        x = jnp.where(x > 0, x, LEAKY_SLOPE * x)
        x = x * blk["scale"].reshape(1, 1, 1, -1) + blk["shift"].reshape(1, 1, 1, -1)
    feat = jnp.transpose(x, (0, 3, 1, 2)).reshape(n, -1)        # NCHW flatten (.view(N, -1))
    logit = jnp.dot(feat, params["w_lin"], precision=jax.lax.Precision.HIGHEST)
    return jax.nn.sigmoid(logit + params["b_lin"])


if __name__ == "__main__":
    key = jax.random.PRNGKey(0)
    pkey, xkey = jax.random.split(key)
    params = init_params(pkey)
    img = jax.random.normal(xkey, (2, CHANNELS, IMG_SIZE, IMG_SIZE), jnp.float32)

    fwd = jax.jit(discriminator_forward)
    out = fwd(params, img)
    jax.block_until_ready(out)

    assert out.shape == (2, 1)
    ref = discriminator_reference(params, img)
    max_err = float(jnp.max(jnp.abs(out - ref.astype(jnp.float32))))
    assert max_err < 5e-3, f"mismatch vs f32 reference: {max_err}"
    assert bool(jnp.all((out > -1e-3) & (out < 1.0 + 1e-3)))
    print("KERNEL_OK")
</pallas_src>

<mosaic_0001>
module attributes {stable_mosaic.version = 11 : i64} {
  func.func @_conv_block_kernel(%arg0: i32, %arg1: memref<1x290x4xbf16, #tpu.memory_space<vmem>>, %arg2: memref<4x4x16xbf16, #tpu.memory_space<vmem>>, %arg3: memref<1x16xf32, #tpu.memory_space<vmem>>, %arg4: memref<1x16xf32, #tpu.memory_space<vmem>>, %arg5: memref<1x16xf32, #tpu.memory_space<vmem>>, %arg6: memref<1x272x16xbf16, #tpu.memory_space<vmem>>) attributes {dimension_semantics = [#tpu.dimension_semantics<parallel>], iteration_bounds = array<i64: 2>, scalar_prefetch = 0 : i64, scratch_operands = 0 : i64, tpu.core_type = #tpu.core_type<tc>, window_params = [{transform_indices = @transform_0, window_bounds = array<i64: 1, 290, 4>}, {pipeline_mode = #tpu.pipeline_mode<synchronous>, transform_indices = @transform_1, window_bounds = array<i64: 4, 4, 16>}, {pipeline_mode = #tpu.pipeline_mode<synchronous>, transform_indices = @transform_2, window_bounds = array<i64: 1, 16>}, {pipeline_mode = #tpu.pipeline_mode<synchronous>, transform_indices = @transform_3, window_bounds = array<i64: 1, 16>}, {pipeline_mode = #tpu.pipeline_mode<synchronous>, transform_indices = @transform_4, window_bounds = array<i64: 1, 16>}, {transform_indices = @transform_5, window_bounds = array<i64: 1, 272, 16>}]} {
    %c0 = arith.constant 0 : index
    %c0_0 = arith.constant 0 : index
    %c0_1 = arith.constant 0 : index
    %0 = vector.load %arg1[%c0, %c0_0, %c0_1] : memref<1x290x4xbf16, #tpu.memory_space<vmem>>, vector<1x272x4xbf16>
    %1 = vector.shape_cast %0 : vector<1x272x4xbf16> to vector<272x4xbf16>
    %c0_2 = arith.constant 0 : index
    %c0_3 = arith.constant 0 : index
    %c0_4 = arith.constant 0 : index
    %2 = vector.load %arg2[%c0_2, %c0_3, %c0_4] : memref<4x4x16xbf16, #tpu.memory_space<vmem>>, vector<1x4x16xbf16>
    %3 = vector.shape_cast %2 : vector<1x4x16xbf16> to vector<4x16xbf16>
    %cst = arith.constant dense<0.000000e+00> : vector<272x16xf32>
    %4 = tpu.matmul %1, %3, %cst {dimension_numbers = #tpu.dot_dimension_numbers<[1], [0], [0], [1], [0, 0, 1, 1], [], []>} : vector<272x4xbf16>, vector<4x16xbf16>, vector<272x16xf32> -> vector<272x16xf32>
    %c0_5 = arith.constant 0 : index
    %c1 = arith.constant 1 : index
    %c0_6 = arith.constant 0 : index
    %5 = vector.load %arg1[%c0_5, %c1, %c0_6] : memref<1x290x4xbf16, #tpu.memory_space<vmem>>, vector<1x272x4xbf16>
    %6 = vector.shape_cast %5 : vector<1x272x4xbf16> to vector<272x4xbf16>
    %c1_7 = arith.constant 1 : index
    %c0_8 = arith.constant 0 : index
    %c0_9 = arith.constant 0 : index
    %7 = vector.load %arg2[%c1_7, %c0_8, %c0_9] : memref<4x4x16xbf16, #tpu.memory_space<vmem>>, vector<1x4x16xbf16>
    %8 = vector.shape_cast %7 : vector<1x4x16xbf16> to vector<4x16xbf16>
    %cst_10 = arith.constant dense<0.000000e+00> : vector<272x16xf32>
    %9 = tpu.matmul %6, %8, %cst_10 {dimension_numbers = #tpu.dot_dimension_numbers<[1], [0], [0], [1], [0, 0, 1, 1], [], []>} : vector<272x4xbf16>, vector<4x16xbf16>, vector<272x16xf32> -> vector<272x16xf32>
    %10 = arith.addf %4, %9 : vector<272x16xf32>
    %c0_11 = arith.constant 0 : index
    %c17 = arith.constant 17 : index
    %c0_12 = arith.constant 0 : index
    %11 = vector.load %arg1[%c0_11, %c17, %c0_12] : memref<1x290x4xbf16, #tpu.memory_space<vmem>>, vector<1x272x4xbf16>
    %12 = vector.shape_cast %11 : vector<1x272x4xbf16> to vector<272x4xbf16>
    %c2 = arith.constant 2 : index
    %c0_13 = arith.constant 0 : index
    %c0_14 = arith.constant 0 : index
    %13 = vector.load %arg2[%c2, %c0_13, %c0_14] : memref<4x4x16xbf16, #tpu.memory_space<vmem>>, vector<1x4x16xbf16>
    %14 = vector.shape_cast %13 : vector<1x4x16xbf16> to vector<4x16xbf16>
    %cst_15 = arith.constant dense<0.000000e+00> : vector<272x16xf32>
    %15 = tpu.matmul %12, %14, %cst_15 {dimension_numbers = #tpu.dot_dimension_numbers<[1], [0], [0], [1], [0, 0, 1, 1], [], []>} : vector<272x4xbf16>, vector<4x16xbf16>, vector<272x16xf32> -> vector<272x16xf32>
    %16 = arith.addf %10, %15 : vector<272x16xf32>
    %c0_16 = arith.constant 0 : index
    %c18 = arith.constant 18 : index
    %c0_17 = arith.constant 0 : index
    %17 = vector.load %arg1[%c0_16, %c18, %c0_17] : memref<1x290x4xbf16, #tpu.memory_space<vmem>>, vector<1x272x4xbf16>
    %18 = vector.shape_cast %17 : vector<1x272x4xbf16> to vector<272x4xbf16>
    %c3 = arith.constant 3 : index
    %c0_18 = arith.constant 0 : index
    %c0_19 = arith.constant 0 : index
    %19 = vector.load %arg2[%c3, %c0_18, %c0_19] : memref<4x4x16xbf16, #tpu.memory_space<vmem>>, vector<1x4x16xbf16>
    %20 = vector.shape_cast %19 : vector<1x4x16xbf16> to vector<4x16xbf16>
    %cst_20 = arith.constant dense<0.000000e+00> : vector<272x16xf32>
    %21 = tpu.matmul %18, %20, %cst_20 {dimension_numbers = #tpu.dot_dimension_numbers<[1], [0], [0], [1], [0, 0, 1, 1], [], []>} : vector<272x4xbf16>, vector<4x16xbf16>, vector<272x16xf32> -> vector<272x16xf32>
    %22 = arith.addf %16, %21 : vector<272x16xf32>
    %c0_21 = arith.constant 0 : index
    %c0_22 = arith.constant 0 : index
    %23 = vector.load %arg3[%c0_21, %c0_22] : memref<1x16xf32, #tpu.memory_space<vmem>>, vector<1x16xf32>
    %24 = vector.broadcast %23 : vector<1x16xf32> to vector<272x16xf32>
    %25 = arith.addf %22, %24 : vector<272x16xf32>
    %cst_23 = arith.constant 0.000000e+00 : f32
    %26 = vector.broadcast %cst_23 : f32 to vector<272x16xf32>
    %27 = arith.cmpf ogt, %25, %26 : vector<272x16xf32>
    %cst_24 = arith.constant 2.000000e-01 : f32
    %28 = vector.broadcast %cst_24 : f32 to vector<272x16xf32>
    %29 = arith.mulf %28, %25 : vector<272x16xf32>
    %30 = arith.select %27, %25, %29 : vector<272x16xi1>, vector<272x16xf32>
    %c0_25 = arith.constant 0 : index
    %c0_26 = arith.constant 0 : index
    %31 = vector.load %arg4[%c0_25, %c0_26] : memref<1x16xf32, #tpu.memory_space<vmem>>, vector<1x16xf32>
    %32 = vector.broadcast %31 : vector<1x16xf32> to vector<272x16xf32>
    %33 = arith.mulf %30, %32 : vector<272x16xf32>
    %c0_27 = arith.constant 0 : index
    %c0_28 = arith.constant 0 : index
    %34 = vector.load %arg5[%c0_27, %c0_28] : memref<1x16xf32, #tpu.memory_space<vmem>>, vector<1x16xf32>
    %35 = vector.broadcast %34 : vector<1x16xf32> to vector<272x16xf32>
    %36 = arith.addf %33, %35 : vector<272x16xf32>
    %37 = arith.truncf %36 : vector<272x16xf32> to vector<272x16xbf16>
    %c0_29 = arith.constant 0 : index
    %c0_30 = arith.constant 0 : index
    %c0_31 = arith.constant 0 : index
    %38 = vector.load %arg6[%c0_29, %c0_30, %c0_31] : memref<1x272x16xbf16, #tpu.memory_space<vmem>>, vector<1x272x16xbf16>
    %39 = vector.shape_cast %38 : vector<1x272x16xbf16> to vector<272x16xbf16>
    %40 = vector.shape_cast %37 : vector<272x16xbf16> to vector<1x272x16xbf16>
    tpu.vector_store %arg6[%c0_29, %c0_30, %c0_31], %40 {strides = array<i32>} : memref<1x272x16xbf16, #tpu.memory_space<vmem>>, vector<1x272x16xbf16>,
    return
  }
  func.func @transform_0(%arg0: i32) -> (i32, i32, i32) {
    %c0_i32 = arith.constant 0 : i32
    %c0_i32_0 = arith.constant 0 : i32
    %c0_i32_1 = arith.constant 0 : i32
    return %arg0, %c0_i32, %c0_i32_0 : i32, i32, i32
  }
  func.func @transform_1(%arg0: i32) -> (i32, i32, i32) {
    %c0_i32 = arith.constant 0 : i32
    %c0_i32_0 = arith.constant 0 : i32
    %c0_i32_1 = arith.constant 0 : i32
    %c0_i32_2 = arith.constant 0 : i32
    return %c0_i32, %c0_i32_0, %c0_i32_1 : i32, i32, i32
  }
  func.func @transform_2(%arg0: i32) -> (i32, i32) {
    %c0_i32 = arith.constant 0 : i32
    %c0_i32_0 = arith.constant 0 : i32
    %c0_i32_1 = arith.constant 0 : i32
    return %c0_i32, %c0_i32_0 : i32, i32
  }
  func.func @transform_3(%arg0: i32) -> (i32, i32) {
    %c0_i32 = arith.constant 0 : i32
    %c0_i32_0 = arith.constant 0 : i32
    %c0_i32_1 = arith.constant 0 : i32
    return %c0_i32, %c0_i32_0 : i32, i32
  }
  func.func @transform_4(%arg0: i32) -> (i32, i32) {
    %c0_i32 = arith.constant 0 : i32
    %c0_i32_0 = arith.constant 0 : i32
    %c0_i32_1 = arith.constant 0 : i32
    return %c0_i32, %c0_i32_0 : i32, i32
  }
  func.func @transform_5(%arg0: i32) -> (i32, i32, i32) {
    %c0_i32 = arith.constant 0 : i32
    %c0_i32_0 = arith.constant 0 : i32
    %c0_i32_1 = arith.constant 0 : i32
    return %arg0, %c0_i32, %c0_i32_0 : i32, i32, i32
  }
}

module attributes {stable_mosaic.version = 11 : i64} {
  func.func @_conv_block_kernel(%arg0: i32, %arg1: memref<1x82x64xbf16, #tpu.memory_space<vmem>>, %arg2: memref<4x64x32xbf16, #tpu.memory_space<vmem>>, %arg3: memref<1x32xf32, #tpu.memory_space<vmem>>, %arg4: memref<1x32xf32, #tpu.memory_space<vmem>>, %arg5: memref<1x32xf32, #tpu.memory_space<vmem>>, %arg6: memref<1x72x32xbf16, #tpu.memory_space<vmem>>) attributes {dimension_semantics = [#tpu.dimension_semantics<parallel>], iteration_bounds = array<i64: 2>, scalar_prefetch = 0 : i64, scratch_operands = 0 : i64, tpu.core_type = #tpu.core_type<tc>, window_params = [{transform_indices = @transform_0, window_bounds = array<i64: 1, 82, 64>}, {pipeline_mode = #tpu.pipeline_mode<synchronous>, transform_indices = @transform_1, window_bounds = array<i64: 4, 64, 32>}, {pipeline_mode = #tpu.pipeline_mode<synchronous>, transform_indices = @transform_2, window_bounds = array<i64: 1, 32>}, {pipeline_mode = #tpu.pipeline_mode<synchronous>, transform_indices = @transform_3, window_bounds = array<i64: 1, 32>}, {pipeline_mode = #tpu.pipeline_mode<synchronous>, transform_indices = @transform_4, window_bounds = array<i64: 1, 32>}, {transform_indices = @transform_5, window_bounds = array<i64: 1, 72, 32>}]} {
    %c0 = arith.constant 0 : index
    %c0_0 = arith.constant 0 : index
    %c0_1 = arith.constant 0 : index
    %0 = vector.load %arg1[%c0, %c0_0, %c0_1] : memref<1x82x64xbf16, #tpu.memory_space<vmem>>, vector<1x72x64xbf16>
    %1 = vector.shape_cast %0 : vector<1x72x64xbf16> to vector<72x64xbf16>
    %c0_2 = arith.constant 0 : index
    %c0_3 = arith.constant 0 : index
    %c0_4 = arith.constant 0 : index
    %2 = vector.load %arg2[%c0_2, %c0_3, %c0_4] : memref<4x64x32xbf16, #tpu.memory_space<vmem>>, vector<1x64x32xbf16>
    %3 = vector.shape_cast %2 : vector<1x64x32xbf16> to vector<64x32xbf16>
    %cst = arith.constant dense<0.000000e+00> : vector<72x32xf32>
    %4 = tpu.matmul %1, %3, %cst {dimension_numbers = #tpu.dot_dimension_numbers<[1], [0], [0], [1], [0, 0, 1, 1], [], []>} : vector<72x64xbf16>, vector<64x32xbf16>, vector<72x32xf32> -> vector<72x32xf32>
    %c0_5 = arith.constant 0 : index
    %c1 = arith.constant 1 : index
    %c0_6 = arith.constant 0 : index
    %5 = vector.load %arg1[%c0_5, %c1, %c0_6] : memref<1x82x64xbf16, #tpu.memory_space<vmem>>, vector<1x72x64xbf16>
    %6 = vector.shape_cast %5 : vector<1x72x64xbf16> to vector<72x64xbf16>
    %c1_7 = arith.constant 1 : index
    %c0_8 = arith.constant 0 : index
    %c0_9 = arith.constant 0 : index
    %7 = vector.load %arg2[%c1_7, %c0_8, %c0_9] : memref<4x64x32xbf16, #tpu.memory_space<vmem>>, vector<1x64x32xbf16>
    %8 = vector.shape_cast %7 : vector<1x64x32xbf16> to vector<64x32xbf16>
    %cst_10 = arith.constant dense<0.000000e+00> : vector<72x32xf32>
    %9 = tpu.matmul %6, %8, %cst_10 {dimension_numbers = #tpu.dot_dimension_numbers<[1], [0], [0], [1], [0, 0, 1, 1], [], []>} : vector<72x64xbf16>, vector<64x32xbf16>, vector<72x32xf32> -> vector<72x32xf32>
    %10 = arith.addf %4, %9 : vector<72x32xf32>
    %c0_11 = arith.constant 0 : index
    %c9 = arith.constant 9 : index
    %c0_12 = arith.constant 0 : index
    %11 = vector.load %arg1[%c0_11, %c9, %c0_12] : memref<1x82x64xbf16, #tpu.memory_space<vmem>>, vector<1x72x64xbf16>
    %12 = vector.shape_cast %11 : vector<1x72x64xbf16> to vector<72x64xbf16>
    %c2 = arith.constant 2 : index
    %c0_13 = arith.constant 0 : index
    %c0_14 = arith.constant 0 : index
    %13 = vector.load %arg2[%c2, %c0_13, %c0_14] : memref<4x64x32xbf16, #tpu.memory_space<vmem>>, vector<1x64x32xbf16>
    %14 = vector.shape_cast %13 : vector<1x64x32xbf16> to vector<64x32xbf16>
    %cst_15 = arith.constant dense<0.000000e+00> : vector<72x32xf32>
    %15 = tpu.matmul %12, %14, %cst_15 {dimension_numbers = #tpu.dot_dimension_numbers<[1], [0], [0], [1], [0, 0, 1, 1], [], []>} : vector<72x64xbf16>, vector<64x32xbf16>, vector<72x32xf32> -> vector<72x32xf32>
    %16 = arith.addf %10, %15 : vector<72x32xf32>
    %c0_16 = arith.constant 0 : index
    %c10 = arith.constant 10 : index
    %c0_17 = arith.constant 0 : index
    %17 = vector.load %arg1[%c0_16, %c10, %c0_17] : memref<1x82x64xbf16, #tpu.memory_space<vmem>>, vector<1x72x64xbf16>
    %18 = vector.shape_cast %17 : vector<1x72x64xbf16> to vector<72x64xbf16>
    %c3 = arith.constant 3 : index
    %c0_18 = arith.constant 0 : index
    %c0_19 = arith.constant 0 : index
    %19 = vector.load %arg2[%c3, %c0_18, %c0_19] : memref<4x64x32xbf16, #tpu.memory_space<vmem>>, vector<1x64x32xbf16>
    %20 = vector.shape_cast %19 : vector<1x64x32xbf16> to vector<64x32xbf16>
    %cst_20 = arith.constant dense<0.000000e+00> : vector<72x32xf32>
    %21 = tpu.matmul %18, %20, %cst_20 {dimension_numbers = #tpu.dot_dimension_numbers<[1], [0], [0], [1], [0, 0, 1, 1], [], []>} : vector<72x64xbf16>, vector<64x32xbf16>, vector<72x32xf32> -> vector<72x32xf32>
    %22 = arith.addf %16, %21 : vector<72x32xf32>
    %c0_21 = arith.constant 0 : index
    %c0_22 = arith.constant 0 : index
    %23 = vector.load %arg3[%c0_21, %c0_22] : memref<1x32xf32, #tpu.memory_space<vmem>>, vector<1x32xf32>
    %24 = vector.broadcast %23 : vector<1x32xf32> to vector<72x32xf32>
    %25 = arith.addf %22, %24 : vector<72x32xf32>
    %cst_23 = arith.constant 0.000000e+00 : f32
    %26 = vector.broadcast %cst_23 : f32 to vector<72x32xf32>
    %27 = arith.cmpf ogt, %25, %26 : vector<72x32xf32>
    %cst_24 = arith.constant 2.000000e-01 : f32
    %28 = vector.broadcast %cst_24 : f32 to vector<72x32xf32>
    %29 = arith.mulf %28, %25 : vector<72x32xf32>
    %30 = arith.select %27, %25, %29 : vector<72x32xi1>, vector<72x32xf32>
    %c0_25 = arith.constant 0 : index
    %c0_26 = arith.constant 0 : index
    %31 = vector.load %arg4[%c0_25, %c0_26] : memref<1x32xf32, #tpu.memory_space<vmem>>, vector<1x32xf32>
    %32 = vector.broadcast %31 : vector<1x32xf32> to vector<72x32xf32>
    %33 = arith.mulf %30, %32 : vector<72x32xf32>
    %c0_27 = arith.constant 0 : index
    %c0_28 = arith.constant 0 : index
    %34 = vector.load %arg5[%c0_27, %c0_28] : memref<1x32xf32, #tpu.memory_space<vmem>>, vector<1x32xf32>
    %35 = vector.broadcast %34 : vector<1x32xf32> to vector<72x32xf32>
    %36 = arith.addf %33, %35 : vector<72x32xf32>
    %37 = arith.truncf %36 : vector<72x32xf32> to vector<72x32xbf16>
    %c0_29 = arith.constant 0 : index
    %c0_30 = arith.constant 0 : index
    %c0_31 = arith.constant 0 : index
    %38 = vector.load %arg6[%c0_29, %c0_30, %c0_31] : memref<1x72x32xbf16, #tpu.memory_space<vmem>>, vector<1x72x32xbf16>
    %39 = vector.shape_cast %38 : vector<1x72x32xbf16> to vector<72x32xbf16>
    %40 = vector.shape_cast %37 : vector<72x32xbf16> to vector<1x72x32xbf16>
    tpu.vector_store %arg6[%c0_29, %c0_30, %c0_31], %40 {strides = array<i32>} : memref<1x72x32xbf16, #tpu.memory_space<vmem>>, vector<1x72x32xbf16>,
    return
  }
  func.func @transform_0(%arg0: i32) -> (i32, i32, i32) {
    %c0_i32 = arith.constant 0 : i32
    %c0_i32_0 = arith.constant 0 : i32
    %c0_i32_1 = arith.constant 0 : i32
    return %arg0, %c0_i32, %c0_i32_0 : i32, i32, i32
  }
  func.func @transform_1(%arg0: i32) -> (i32, i32, i32) {
    %c0_i32 = arith.constant 0 : i32
    %c0_i32_0 = arith.constant 0 : i32
    %c0_i32_1 = arith.constant 0 : i32
    %c0_i32_2 = arith.constant 0 : i32
    return %c0_i32, %c0_i32_0, %c0_i32_1 : i32, i32, i32
  }
  func.func @transform_2(%arg0: i32) -> (i32, i32) {
    %c0_i32 = arith.constant 0 : i32
    %c0_i32_0 = arith.constant 0 : i32
    %c0_i32_1 = arith.constant 0 : i32
    return %c0_i32, %c0_i32_0 : i32, i32
  }
  func.func @transform_3(%arg0: i32) -> (i32, i32) {
    %c0_i32 = arith.constant 0 : i32
    %c0_i32_0 = arith.constant 0 : i32
    %c0_i32_1 = arith.constant 0 : i32
    return %c0_i32, %c0_i32_0 : i32, i32
  }
  func.func @transform_4(%arg0: i32) -> (i32, i32) {
    %c0_i32 = arith.constant 0 : i32
    %c0_i32_0 = arith.constant 0 : i32
    %c0_i32_1 = arith.constant 0 : i32
    return %c0_i32, %c0_i32_0 : i32, i32
  }
  func.func @transform_5(%arg0: i32) -> (i32, i32, i32) {
    %c0_i32 = arith.constant 0 : i32
    %c0_i32_0 = arith.constant 0 : i32
    %c0_i32_1 = arith.constant 0 : i32
    return %arg0, %c0_i32, %c0_i32_0 : i32, i32, i32
  }
}

module attributes {stable_mosaic.version = 11 : i64} {
  func.func @_conv_block_kernel(%arg0: i32, %arg1: memref<1x26x128xbf16, #tpu.memory_space<vmem>>, %arg2: memref<4x128x64xbf16, #tpu.memory_space<vmem>>, %arg3: memref<1x64xf32, #tpu.memory_space<vmem>>, %arg4: memref<1x64xf32, #tpu.memory_space<vmem>>, %arg5: memref<1x64xf32, #tpu.memory_space<vmem>>, %arg6: memref<1x20x64xbf16, #tpu.memory_space<vmem>>) attributes {dimension_semantics = [#tpu.dimension_semantics<parallel>], iteration_bounds = array<i64: 2>, scalar_prefetch = 0 : i64, scratch_operands = 0 : i64, tpu.core_type = #tpu.core_type<tc>, window_params = [{transform_indices = @transform_0, window_bounds = array<i64: 1, 26, 128>}, {pipeline_mode = #tpu.pipeline_mode<synchronous>, transform_indices = @transform_1, window_bounds = array<i64: 4, 128, 64>}, {pipeline_mode = #tpu.pipeline_mode<synchronous>, transform_indices = @transform_2, window_bounds = array<i64: 1, 64>}, {pipeline_mode = #tpu.pipeline_mode<synchronous>, transform_indices = @transform_3, window_bounds = array<i64: 1, 64>}, {pipeline_mode = #tpu.pipeline_mode<synchronous>, transform_indices = @transform_4, window_bounds = array<i64: 1, 64>}, {transform_indices = @transform_5, window_bounds = array<i64: 1, 20, 64>}]} {
    %c0 = arith.constant 0 : index
    %c0_0 = arith.constant 0 : index
    %c0_1 = arith.constant 0 : index
    %0 = vector.load %arg1[%c0, %c0_0, %c0_1] : memref<1x26x128xbf16, #tpu.memory_space<vmem>>, vector<1x20x128xbf16>
    %1 = vector.shape_cast %0 : vector<1x20x128xbf16> to vector<20x128xbf16>
    %c0_2 = arith.constant 0 : index
    %c0_3 = arith.constant 0 : index
    %c0_4 = arith.constant 0 : index
    %2 = vector.load %arg2[%c0_2, %c0_3, %c0_4] : memref<4x128x64xbf16, #tpu.memory_space<vmem>>, vector<1x128x64xbf16>
    %3 = vector.shape_cast %2 : vector<1x128x64xbf16> to vector<128x64xbf16>
    %cst = arith.constant dense<0.000000e+00> : vector<20x64xf32>
    %4 = tpu.matmul %1, %3, %cst {dimension_numbers = #tpu.dot_dimension_numbers<[1], [0], [0], [1], [0, 0, 1, 1], [], []>} : vector<20x128xbf16>, vector<128x64xbf16>, vector<20x64xf32> -> vector<20x64xf32>
    %c0_5 = arith.constant 0 : index
    %c1 = arith.constant 1 : index
    %c0_6 = arith.constant 0 : index
    %5 = vector.load %arg1[%c0_5, %c1, %c0_6] : memref<1x26x128xbf16, #tpu.memory_space<vmem>>, vector<1x20x128xbf16>
    %6 = vector.shape_cast %5 : vector<1x20x128xbf16> to vector<20x128xbf16>
    %c1_7 = arith.constant 1 : index
    %c0_8 = arith.constant 0 : index
    %c0_9 = arith.constant 0 : index
    %7 = vector.load %arg2[%c1_7, %c0_8, %c0_9] : memref<4x128x64xbf16, #tpu.memory_space<vmem>>, vector<1x128x64xbf16>
    %8 = vector.shape_cast %7 : vector<1x128x64xbf16> to vector<128x64xbf16>
    %cst_10 = arith.constant dense<0.000000e+00> : vector<20x64xf32>
    %9 = tpu.matmul %6, %8, %cst_10 {dimension_numbers = #tpu.dot_dimension_numbers<[1], [0], [0], [1], [0, 0, 1, 1], [], []>} : vector<20x128xbf16>, vector<128x64xbf16>, vector<20x64xf32> -> vector<20x64xf32>
    %10 = arith.addf %4, %9 : vector<20x64xf32>
    %c0_11 = arith.constant 0 : index
    %c5 = arith.constant 5 : index
    %c0_12 = arith.constant 0 : index
    %11 = vector.load %arg1[%c0_11, %c5, %c0_12] : memref<1x26x128xbf16, #tpu.memory_space<vmem>>, vector<1x20x128xbf16>
    %12 = vector.shape_cast %11 : vector<1x20x128xbf16> to vector<20x128xbf16>
    %c2 = arith.constant 2 : index
    %c0_13 = arith.constant 0 : index
    %c0_14 = arith.constant 0 : index
    %13 = vector.load %arg2[%c2, %c0_13, %c0_14] : memref<4x128x64xbf16, #tpu.memory_space<vmem>>, vector<1x128x64xbf16>
    %14 = vector.shape_cast %13 : vector<1x128x64xbf16> to vector<128x64xbf16>
    %cst_15 = arith.constant dense<0.000000e+00> : vector<20x64xf32>
    %15 = tpu.matmul %12, %14, %cst_15 {dimension_numbers = #tpu.dot_dimension_numbers<[1], [0], [0], [1], [0, 0, 1, 1], [], []>} : vector<20x128xbf16>, vector<128x64xbf16>, vector<20x64xf32> -> vector<20x64xf32>
    %16 = arith.addf %10, %15 : vector<20x64xf32>
    %c0_16 = arith.constant 0 : index
    %c6 = arith.constant 6 : index
    %c0_17 = arith.constant 0 : index
    %17 = vector.load %arg1[%c0_16, %c6, %c0_17] : memref<1x26x128xbf16, #tpu.memory_space<vmem>>, vector<1x20x128xbf16>
    %18 = vector.shape_cast %17 : vector<1x20x128xbf16> to vector<20x128xbf16>
    %c3 = arith.constant 3 : index
    %c0_18 = arith.constant 0 : index
    %c0_19 = arith.constant 0 : index
    %19 = vector.load %arg2[%c3, %c0_18, %c0_19] : memref<4x128x64xbf16, #tpu.memory_space<vmem>>, vector<1x128x64xbf16>
    %20 = vector.shape_cast %19 : vector<1x128x64xbf16> to vector<128x64xbf16>
    %cst_20 = arith.constant dense<0.000000e+00> : vector<20x64xf32>
    %21 = tpu.matmul %18, %20, %cst_20 {dimension_numbers = #tpu.dot_dimension_numbers<[1], [0], [0], [1], [0, 0, 1, 1], [], []>} : vector<20x128xbf16>, vector<128x64xbf16>, vector<20x64xf32> -> vector<20x64xf32>
    %22 = arith.addf %16, %21 : vector<20x64xf32>
    %c0_21 = arith.constant 0 : index
    %c0_22 = arith.constant 0 : index
    %23 = vector.load %arg3[%c0_21, %c0_22] : memref<1x64xf32, #tpu.memory_space<vmem>>, vector<1x64xf32>
    %24 = vector.broadcast %23 : vector<1x64xf32> to vector<20x64xf32>
    %25 = arith.addf %22, %24 : vector<20x64xf32>
    %cst_23 = arith.constant 0.000000e+00 : f32
    %26 = vector.broadcast %cst_23 : f32 to vector<20x64xf32>
    %27 = arith.cmpf ogt, %25, %26 : vector<20x64xf32>
    %cst_24 = arith.constant 2.000000e-01 : f32
    %28 = vector.broadcast %cst_24 : f32 to vector<20x64xf32>
    %29 = arith.mulf %28, %25 : vector<20x64xf32>
    %30 = arith.select %27, %25, %29 : vector<20x64xi1>, vector<20x64xf32>
    %c0_25 = arith.constant 0 : index
    %c0_26 = arith.constant 0 : index
    %31 = vector.load %arg4[%c0_25, %c0_26] : memref<1x64xf32, #tpu.memory_space<vmem>>, vector<1x64xf32>
    %32 = vector.broadcast %31 : vector<1x64xf32> to vector<20x64xf32>
    %33 = arith.mulf %30, %32 : vector<20x64xf32>
    %c0_27 = arith.constant 0 : index
    %c0_28 = arith.constant 0 : index
    %34 = vector.load %arg5[%c0_27, %c0_28] : memref<1x64xf32, #tpu.memory_space<vmem>>, vector<1x64xf32>
    %35 = vector.broadcast %34 : vector<1x64xf32> to vector<20x64xf32>
    %36 = arith.addf %33, %35 : vector<20x64xf32>
    %37 = arith.truncf %36 : vector<20x64xf32> to vector<20x64xbf16>
    %c0_29 = arith.constant 0 : index
    %c0_30 = arith.constant 0 : index
    %c0_31 = arith.constant 0 : index
    %38 = vector.load %arg6[%c0_29, %c0_30, %c0_31] : memref<1x20x64xbf16, #tpu.memory_space<vmem>>, vector<1x20x64xbf16>
    %39 = vector.shape_cast %38 : vector<1x20x64xbf16> to vector<20x64xbf16>
    %40 = vector.shape_cast %37 : vector<20x64xbf16> to vector<1x20x64xbf16>
    tpu.vector_store %arg6[%c0_29, %c0_30, %c0_31], %40 {strides = array<i32>} : memref<1x20x64xbf16, #tpu.memory_space<vmem>>, vector<1x20x64xbf16>,
    return
  }
  func.func @transform_0(%arg0: i32) -> (i32, i32, i32) {
    %c0_i32 = arith.constant 0 : i32
    %c0_i32_0 = arith.constant 0 : i32
    %c0_i32_1 = arith.constant 0 : i32
    return %arg0, %c0_i32, %c0_i32_0 : i32, i32, i32
  }
  func.func @transform_1(%arg0: i32) -> (i32, i32, i32) {
    %c0_i32 = arith.constant 0 : i32
    %c0_i32_0 = arith.constant 0 : i32
    %c0_i32_1 = arith.constant 0 : i32
    %c0_i32_2 = arith.constant 0 : i32
    return %c0_i32, %c0_i32_0, %c0_i32_1 : i32, i32, i32
  }
  func.func @transform_2(%arg0: i32) -> (i32, i32) {
    %c0_i32 = arith.constant 0 : i32
    %c0_i32_0 = arith.constant 0 : i32
    %c0_i32_1 = arith.constant 0 : i32
    return %c0_i32, %c0_i32_0 : i32, i32
  }
  func.func @transform_3(%arg0: i32) -> (i32, i32) {
    %c0_i32 = arith.constant 0 : i32
    %c0_i32_0 = arith.constant 0 : i32
    %c0_i32_1 = arith.constant 0 : i32
    return %c0_i32, %c0_i32_0 : i32, i32
  }
  func.func @transform_4(%arg0: i32) -> (i32, i32) {
    %c0_i32 = arith.constant 0 : i32
    %c0_i32_0 = arith.constant 0 : i32
    %c0_i32_1 = arith.constant 0 : i32
    return %c0_i32, %c0_i32_0 : i32, i32
  }
  func.func @transform_5(%arg0: i32) -> (i32, i32, i32) {
    %c0_i32 = arith.constant 0 : i32
    %c0_i32_0 = arith.constant 0 : i32
    %c0_i32_1 = arith.constant 0 : i32
    return %arg0, %c0_i32, %c0_i32_0 : i32, i32, i32
  }
}

module attributes {stable_mosaic.version = 11 : i64} {
  func.func @_conv_block_kernel(%arg0: i32, %arg1: memref<1x10x256xbf16, #tpu.memory_space<vmem>>, %arg2: memref<4x256x128xbf16, #tpu.memory_space<vmem>>, %arg3: memref<1x128xf32, #tpu.memory_space<vmem>>, %arg4: memref<1x128xf32, #tpu.memory_space<vmem>>, %arg5: memref<1x128xf32, #tpu.memory_space<vmem>>, %arg6: memref<1x6x128xbf16, #tpu.memory_space<vmem>>) attributes {dimension_semantics = [#tpu.dimension_semantics<parallel>], iteration_bounds = array<i64: 2>, scalar_prefetch = 0 : i64, scratch_operands = 0 : i64, tpu.core_type = #tpu.core_type<tc>, window_params = [{transform_indices = @transform_0, window_bounds = array<i64: 1, 10, 256>}, {pipeline_mode = #tpu.pipeline_mode<synchronous>, transform_indices = @transform_1, window_bounds = array<i64: 4, 256, 128>}, {pipeline_mode = #tpu.pipeline_mode<synchronous>, transform_indices = @transform_2, window_bounds = array<i64: 1, 128>}, {pipeline_mode = #tpu.pipeline_mode<synchronous>, transform_indices = @transform_3, window_bounds = array<i64: 1, 128>}, {pipeline_mode = #tpu.pipeline_mode<synchronous>, transform_indices = @transform_4, window_bounds = array<i64: 1, 128>}, {transform_indices = @transform_5, window_bounds = array<i64: 1, 6, 128>}]} {
    %c0 = arith.constant 0 : index
    %c0_0 = arith.constant 0 : index
    %c0_1 = arith.constant 0 : index
    %0 = vector.load %arg1[%c0, %c0_0, %c0_1] : memref<1x10x256xbf16, #tpu.memory_space<vmem>>, vector<1x6x256xbf16>
    %1 = vector.shape_cast %0 : vector<1x6x256xbf16> to vector<6x256xbf16>
    %c0_2 = arith.constant 0 : index
    %c0_3 = arith.constant 0 : index
    %c0_4 = arith.constant 0 : index
    %2 = vector.load %arg2[%c0_2, %c0_3, %c0_4] : memref<4x256x128xbf16, #tpu.memory_space<vmem>>, vector<1x256x128xbf16>
    %3 = vector.shape_cast %2 : vector<1x256x128xbf16> to vector<256x128xbf16>
    %cst = arith.constant dense<0.000000e+00> : vector<6x128xf32>
    %4 = tpu.matmul %1, %3, %cst {dimension_numbers = #tpu.dot_dimension_numbers<[1], [0], [0], [1], [0, 0, 1, 1], [], []>} : vector<6x256xbf16>, vector<256x128xbf16>, vector<6x128xf32> -> vector<6x128xf32>
    %c0_5 = arith.constant 0 : index
    %c1 = arith.constant 1 : index
    %c0_6 = arith.constant 0 : index
    %5 = vector.load %arg1[%c0_5, %c1, %c0_6] : memref<1x10x256xbf16, #tpu.memory_space<vmem>>, vector<1x6x256xbf16>
    %6 = vector.shape_cast %5 : vector<1x6x256xbf16> to vector<6x256xbf16>
    %c1_7 = arith.constant 1 : index
    %c0_8 = arith.constant 0 : index
    %c0_9 = arith.constant 0 : index
    %7 = vector.load %arg2[%c1_7, %c0_8, %c0_9] : memref<4x256x128xbf16, #tpu.memory_space<vmem>>, vector<1x256x128xbf16>
    %8 = vector.shape_cast %7 : vector<1x256x128xbf16> to vector<256x128xbf16>
    %cst_10 = arith.constant dense<0.000000e+00> : vector<6x128xf32>
    %9 = tpu.matmul %6, %8, %cst_10 {dimension_numbers = #tpu.dot_dimension_numbers<[1], [0], [0], [1], [0, 0, 1, 1], [], []>} : vector<6x256xbf16>, vector<256x128xbf16>, vector<6x128xf32> -> vector<6x128xf32>
    %10 = arith.addf %4, %9 : vector<6x128xf32>
    %c0_11 = arith.constant 0 : index
    %c3 = arith.constant 3 : index
    %c0_12 = arith.constant 0 : index
    %11 = vector.load %arg1[%c0_11, %c3, %c0_12] : memref<1x10x256xbf16, #tpu.memory_space<vmem>>, vector<1x6x256xbf16>
    %12 = vector.shape_cast %11 : vector<1x6x256xbf16> to vector<6x256xbf16>
    %c2 = arith.constant 2 : index
    %c0_13 = arith.constant 0 : index
    %c0_14 = arith.constant 0 : index
    %13 = vector.load %arg2[%c2, %c0_13, %c0_14] : memref<4x256x128xbf16, #tpu.memory_space<vmem>>, vector<1x256x128xbf16>
    %14 = vector.shape_cast %13 : vector<1x256x128xbf16> to vector<256x128xbf16>
    %cst_15 = arith.constant dense<0.000000e+00> : vector<6x128xf32>
    %15 = tpu.matmul %12, %14, %cst_15 {dimension_numbers = #tpu.dot_dimension_numbers<[1], [0], [0], [1], [0, 0, 1, 1], [], []>} : vector<6x256xbf16>, vector<256x128xbf16>, vector<6x128xf32> -> vector<6x128xf32>
    %16 = arith.addf %10, %15 : vector<6x128xf32>
    %c0_16 = arith.constant 0 : index
    %c4 = arith.constant 4 : index
    %c0_17 = arith.constant 0 : index
    %17 = vector.load %arg1[%c0_16, %c4, %c0_17] : memref<1x10x256xbf16, #tpu.memory_space<vmem>>, vector<1x6x256xbf16>
    %18 = vector.shape_cast %17 : vector<1x6x256xbf16> to vector<6x256xbf16>
    %c3_18 = arith.constant 3 : index
    %c0_19 = arith.constant 0 : index
    %c0_20 = arith.constant 0 : index
    %19 = vector.load %arg2[%c3_18, %c0_19, %c0_20] : memref<4x256x128xbf16, #tpu.memory_space<vmem>>, vector<1x256x128xbf16>
    %20 = vector.shape_cast %19 : vector<1x256x128xbf16> to vector<256x128xbf16>
    %cst_21 = arith.constant dense<0.000000e+00> : vector<6x128xf32>
    %21 = tpu.matmul %18, %20, %cst_21 {dimension_numbers = #tpu.dot_dimension_numbers<[1], [0], [0], [1], [0, 0, 1, 1], [], []>} : vector<6x256xbf16>, vector<256x128xbf16>, vector<6x128xf32> -> vector<6x128xf32>
    %22 = arith.addf %16, %21 : vector<6x128xf32>
    %c0_22 = arith.constant 0 : index
    %c0_23 = arith.constant 0 : index
    %23 = vector.load %arg3[%c0_22, %c0_23] : memref<1x128xf32, #tpu.memory_space<vmem>>, vector<1x128xf32>
    %24 = vector.broadcast %23 : vector<1x128xf32> to vector<6x128xf32>
    %25 = arith.addf %22, %24 : vector<6x128xf32>
    %cst_24 = arith.constant 0.000000e+00 : f32
    %26 = vector.broadcast %cst_24 : f32 to vector<6x128xf32>
    %27 = arith.cmpf ogt, %25, %26 : vector<6x128xf32>
    %cst_25 = arith.constant 2.000000e-01 : f32
    %28 = vector.broadcast %cst_25 : f32 to vector<6x128xf32>
    %29 = arith.mulf %28, %25 : vector<6x128xf32>
    %30 = arith.select %27, %25, %29 : vector<6x128xi1>, vector<6x128xf32>
    %c0_26 = arith.constant 0 : index
    %c0_27 = arith.constant 0 : index
    %31 = vector.load %arg4[%c0_26, %c0_27] : memref<1x128xf32, #tpu.memory_space<vmem>>, vector<1x128xf32>
    %32 = vector.broadcast %31 : vector<1x128xf32> to vector<6x128xf32>
    %33 = arith.mulf %30, %32 : vector<6x128xf32>
    %c0_28 = arith.constant 0 : index
    %c0_29 = arith.constant 0 : index
    %34 = vector.load %arg5[%c0_28, %c0_29] : memref<1x128xf32, #tpu.memory_space<vmem>>, vector<1x128xf32>
    %35 = vector.broadcast %34 : vector<1x128xf32> to vector<6x128xf32>
    %36 = arith.addf %33, %35 : vector<6x128xf32>
    %37 = arith.truncf %36 : vector<6x128xf32> to vector<6x128xbf16>
    %c0_30 = arith.constant 0 : index
    %c0_31 = arith.constant 0 : index
    %c0_32 = arith.constant 0 : index
    %38 = vector.load %arg6[%c0_30, %c0_31, %c0_32] : memref<1x6x128xbf16, #tpu.memory_space<vmem>>, vector<1x6x128xbf16>
    %39 = vector.shape_cast %38 : vector<1x6x128xbf16> to vector<6x128xbf16>
    %40 = vector.shape_cast %37 : vector<6x128xbf16> to vector<1x6x128xbf16>
    tpu.vector_store %arg6[%c0_30, %c0_31, %c0_32], %40 {strides = array<i32>} : memref<1x6x128xbf16, #tpu.memory_space<vmem>>, vector<1x6x128xbf16>,
    return
  }
  func.func @transform_0(%arg0: i32) -> (i32, i32, i32) {
    %c0_i32 = arith.constant 0 : i32
    %c0_i32_0 = arith.constant 0 : i32
    %c0_i32_1 = arith.constant 0 : i32
    return %arg0, %c0_i32, %c0_i32_0 : i32, i32, i32
  }
  func.func @transform_1(%arg0: i32) -> (i32, i32, i32) {
    %c0_i32 = arith.constant 0 : i32
    %c0_i32_0 = arith.constant 0 : i32
    %c0_i32_1 = arith.constant 0 : i32
    %c0_i32_2 = arith.constant 0 : i32
    return %c0_i32, %c0_i32_0, %c0_i32_1 : i32, i32, i32
  }
  func.func @transform_2(%arg0: i32) -> (i32, i32) {
    %c0_i32 = arith.constant 0 : i32
    %c0_i32_0 = arith.constant 0 : i32
    %c0_i32_1 = arith.constant 0 : i32
    return %c0_i32, %c0_i32_0 : i32, i32
  }
  func.func @transform_3(%arg0: i32) -> (i32, i32) {
    %c0_i32 = arith.constant 0 : i32
    %c0_i32_0 = arith.constant 0 : i32
    %c0_i32_1 = arith.constant 0 : i32
    return %c0_i32, %c0_i32_0 : i32, i32
  }
  func.func @transform_4(%arg0: i32) -> (i32, i32) {
    %c0_i32 = arith.constant 0 : i32
    %c0_i32_0 = arith.constant 0 : i32
    %c0_i32_1 = arith.constant 0 : i32
    return %c0_i32, %c0_i32_0 : i32, i32
  }
  func.func @transform_5(%arg0: i32) -> (i32, i32, i32) {
    %c0_i32 = arith.constant 0 : i32
    %c0_i32_0 = arith.constant 0 : i32
    %c0_i32_1 = arith.constant 0 : i32
    return %arg0, %c0_i32, %c0_i32_0 : i32, i32, i32
  }
}

module attributes {stable_mosaic.version = 11 : i64} {
  func.func @_linear_sigmoid_kernel(%arg0: memref<2x512xbf16, #tpu.memory_space<vmem>>, %arg1: memref<512x1xbf16, #tpu.memory_space<vmem>>, %arg2: memref<1x1xf32, #tpu.memory_space<vmem>>, %arg3: memref<2x1xf32, #tpu.memory_space<vmem>>) attributes {dimension_semantics = [], scalar_prefetch = 0 : i64, scratch_operands = 0 : i64, tpu.core_type = #tpu.core_type<tc>} {
    %c0 = arith.constant 0 : index
    %c0_0 = arith.constant 0 : index
    %0 = vector.load %arg0[%c0, %c0_0] : memref<2x512xbf16, #tpu.memory_space<vmem>>, vector<2x512xbf16>
    %c0_1 = arith.constant 0 : index
    %c0_2 = arith.constant 0 : index
    %1 = vector.load %arg1[%c0_1, %c0_2] : memref<512x1xbf16, #tpu.memory_space<vmem>>, vector<512x1xbf16>
    %cst = arith.constant dense<0.000000e+00> : vector<2x1xf32>
    %2 = tpu.matmul %0, %1, %cst {dimension_numbers = #tpu.dot_dimension_numbers<[1], [0], [0], [1], [0, 0, 1, 1], [], []>} : vector<2x512xbf16>, vector<512x1xbf16>, vector<2x1xf32> -> vector<2x1xf32>
    %c0_3 = arith.constant 0 : index
    %c0_4 = arith.constant 0 : index
    %3 = vector.load %arg2[%c0_3, %c0_4] : memref<1x1xf32, #tpu.memory_space<vmem>>, vector<1x1xf32>
    %4 = vector.broadcast %3 : vector<1x1xf32> to vector<2x1xf32>
    %5 = arith.addf %2, %4 : vector<2x1xf32>
    %cst_5 = arith.constant 0.000000e+00 : f32
    %6 = vector.broadcast %cst_5 : f32 to vector<2x1xf32>
    %7 = arith.subf %6, %5 : vector<2x1xf32>
    %8 = math.exp %7 : vector<2x1xf32>
    %cst_6 = arith.constant 1.000000e+00 : f32
    %9 = vector.broadcast %cst_6 : f32 to vector<2x1xf32>
    %10 = arith.addf %9, %8 : vector<2x1xf32>
    %11 = tpu.reciprocal %10 {approx = true} : vector<2x1xf32> -> vector<2x1xf32>
    %c0_7 = arith.constant 0 : index
    %c0_8 = arith.constant 0 : index
    %12 = vector.load %arg3[%c0_7, %c0_8] : memref<2x1xf32, #tpu.memory_space<vmem>>, vector<2x1xf32>
    tpu.vector_store %arg3[%c0_7, %c0_8], %11 {strides = array<i32>} : memref<2x1xf32, #tpu.memory_space<vmem>>, vector<2x1xf32>,
    return
  }
}

</mosaic_0001>

<bundles_post_ra>
// kernel: discriminator_forward.5
= control target key start
LH: loop header
LB: loop body
LE: loop exit
PB: predicated region body
PF: predicated region fallthrough
CT: control target
= control target key end

     0   :  { %s2825_s18 = smov 0   ;;  %s3450_s0 = inlined_call_operand.vmem [shape: bf16[2,290,4], index: 0, kind: input, shape index: {}]   ;;  %s3451_s1 = inlined_call_operand.vmem [shape: bf16[4,4,16], index: 1, kind: input, shape index: {}]   ;;  %s3452_s2 = inlined_call_operand.vmem [shape: f32[1,16], index: 2, kind: input, shape index: {}]   ;;  %s3453_s3 = inlined_call_operand.vmem [shape: f32[1,16], index: 3, kind: input, shape index: {}]   ;;  %s3454_s4 = inlined_call_operand.vmem [shape: f32[1,16], index: 4, kind: input, shape index: {}]   ;;  %s3455_s5 = inlined_call_operand.vmem [shape: bf16[2,272,16], index: 5, kind: output, shape index: {}]  }
   0x1 LB: > { %s2196_s19 = sadd.s32 4294967295, %s2791_s18   ;;  %p2200_p0 = scmp.ge.s32.totalorder %s2791_s18, 1  ;;  %s2791_s18 = sphi %s2825_s18, %s15_s18  }
   0x2   : > { %p187_p1 = scmp.lt.s32.totalorder %s2791_s18, 3 }
   0x4   : > { %p188_p2 = pnand %p2200_p0, %p187_p1 }
   0x5   : > { %p215_p3 = scmp.lt.s32.totalorder (!%p188_p2), %s2196_s19, 1 }
   0x6   : > { %191 = sbr.rel (%p188_p2) target bundleno = 501 (0x1f5), region = 40 }
   0xb   : > { %v260_v0 = vld [vmem:[%s3451_s1] sm:$0x3]  ;;  %vm545_vm0 = vcmask 1041408   ;;  %v2793_v1 = vmov 0.0   ;;  %v2203_v3 = vld [vmem:[%s3451_s1 + $0x2] sm:$0x3] }
   0xc   : > { %2526 = vmatprep.subr.bf16.mxu1 %v2793_v1  ;;  %v753_v2 = vsel %vm545_vm0, %v260_v0, 0  ;;  %2456 = vmatprep.subr.bf16.mxu0 %v2793_v1  ;;  %vm2794_vm1 = vmmov 0   ;;  %v547_v4 = vsel %vm545_vm0, %v2203_v3, 0  ;;  %s3457_s19 = smov (!%p215_p3, %s2196_s19), 1  ;;  %v2292_v5 = vld [vmem:[%s3451_s1 + $0x6] sm:$0x3] }
   0xd   : > { %2527 = vmatpush3.bf16.msra.mxu1 %v753_v2  ;;  %2528 = vmatprep.mubr.msk.bf16.mxu1 %vm2794_vm1, %v2793_v1  ;;  %s2736_s24 = smul.u32 148, %s3457_s19  ;;  %vm493_vm2 = vcmask 31744   ;;  %v1540_v7 = vsel %vm545_vm0, %v2292_v5, 0  ;;  %v2256_v12 = vld [vmem:[%s3451_s1 + $0x4] sm:$0x3]  ;;  %vm1452_vm4 = vcmask 1046528  }
   0xe   : > { %2457 = vmatpush3.bf16.msra.mxu0 %v547_v4  ;;  %2458 = vmatprep.mubr.msk.bf16.mxu0 %vm2794_vm1, %v2793_v1  ;;  %vm352_vm3 = vsmask.f32 7424  ;;  %v1241_v19 = vsel %vm545_vm0, %v2256_v12, 0  ;;  %s2737_s11 = smul.u32 136, %s3457_s19  ;;  %vm2106_vm7 = vcmask 125952  }
   0xf   : > { %2596 = vmatprep.subr.bf16.mxu0 %v2793_v1  ;;  %2666 = vmatprep.subr.bf16.mxu1 %v2793_v1  ;;  %s2858_s29 = scalar_lea.vmem %s3450_s0, %s2736_s24 }
  0x10   : > { %v2748_v6 = vld [vmem:[%s2858_s29] sm:$0xff]   ;;  %v2749_v8 = vld [vmem:[%s2858_s29 + $0x8] sm:$0xff]   ;;  %v2750_v13 = vld [vmem:[%s2858_s29 + $0x10] sm:$0xff]   ;;  %s3248_s16 = scalar_lea.vmem %s3455_s5, %s2737_s11 }
  0x11   : > { %2529 = vmatmul.mubr.msk.bf16.vlgmr.msra.gmra.mxu1 %vm493_vm2, %v2748_v6  ;;  %v354_v9 = vshrl.u32 %v2748_v6, 16  ;;  %v356_v10 = vshll.u32 %v2748_v6, 16  ;;  %v361_v11 = vshll.u32 %v2749_v8, 16  ;;  %v365_v17 = vshrl.u32 %v2749_v8, 16  ;;  %v2751_v23 = vld [vmem:[%s2858_s29 + $0x18] sm:$0xff]   ;;  %v2752_v29 = vld [vmem:[%s2858_s29 + $0x20] sm:$0xff]  }
  0x12   : > { %2667 = vmatpush3.bf16.msra.mxu1 %v1540_v7  ;;  %2532 = vmatprep.mubr.msk.bf16.mxu1 %vm2794_vm1, %v2793_v1  ;;  %v369_v18 = vshll.u32 %v2750_v13, 16  ;;  %v373_v25 = vshrl.u32 %v2750_v13, 16  ;;  %v377_v26 = vshll.u32 %v2751_v23, 16  ;;  %v381_v31 = vshrl.u32 %v2751_v23, 16  ;;  %v2753_v35 = vld [vmem:[%s2858_s29 + $0x28] sm:$0xff]   ;;  %v2754_v39 = vld [vmem:[%s2858_s29 + $0x30] sm:$0xff]  }
  0x13   : > { %v358_v14 = vrot.slane %v356_v10, 1  ;;  %v363_v15 = vrot.slane %v361_v11, 1  ;;  %v385_v32 = vshll.u32 %v2752_v29, 16  ;;  %v389_v37 = vshrl.u32 %v2752_v29, 16  ;;  %v2755_v47 = vld [vmem:[%s2858_s29 + $0x38] sm:$0xff]   ;;  %v2756_v53 = vld [vmem:[%s2858_s29 + $0x40] sm:$0xff]  }
  0x14   : > { %v371_v22 = vrot.slane %v369_v18, 1  ;;  %v379_v28 = vrot.slane %v377_v26, 1  ;;  %v393_v38 = vshll.u32 %v2753_v35, 16  ;;  %v397_v42 = vshrl.u32 %v2753_v35, 16  ;;  %v2757_v59 = vld [vmem:[%s2858_s29 + $0x48] sm:$0xff]   ;;  %v2758_v2 = vld [vmem:[%s2858_s29 + $0x50] sm:$0xff]  }
  0x15   : > { %v359_v16 = vor.u32 %v358_v14, %v354_v9  ;;  %v367_v21 = vor.u32 %v365_v17, %v363_v15  ;;  %v387_v34 = vrot.slane %v385_v32, 1  ;;  %v401_v43 = vshll.u32 %v2754_v39, 16  ;;  %v2760_v14 = vld [vmem:[%s2858_s29 + $0x60] sm:$0xff]   ;;  %v2762_v26 = vld [vmem:[%s2858_s29 + $0x70] sm:$0xff]   ;;  %v2763_v32 = vld [vmem:[%s2858_s29 + $0x78] sm:$0xff]  }
  0x16   : > { %v375_v27 = vor.u32 %v373_v25, %v371_v22  ;;  %v383_v33 = vor.u32 %v381_v31, %v379_v28  ;;  %v395_v41 = vrot.slane %v393_v38, 1  ;;  %v405_v49 = vshrl.u32 %v2754_v39, 16  ;;  %v2764_v38 = vld [vmem:[%s2858_s29 + $0x80] sm:$0xff]  }
  0x17   : > { %v364_v20 = vsel %vm352_vm3, %v359_v16, %v363_v15  ;;  %v372_v24 = vsel %vm352_vm3, %v367_v21, %v371_v22  ;;  %v391_v40 = vor.u32 %v389_v37, %v387_v34  ;;  %v403_v46 = vrot.slane %v401_v43, 1 }
  0x18   : > { %2459 = vmatmul.mubr.msk.bf16.vlgmr.msra.gmra.mxu0 %vm493_vm2, %v364_v20  ;;  %v380_v30 = vsel %vm352_vm3, %v375_v27, %v379_v28  ;;  %v388_v36 = vsel %vm352_vm3, %v383_v33, %v387_v34  ;;  %v399_v45 = vor.u32 %v397_v42, %v395_v41  ;;  %v409_v50 = vshll.u32 %v2755_v47, 16  ;;  %v2761_v20 = vld [vmem:[%s2858_s29 + $0x68] sm:$0xff]  }
  0x19   : > { %2597 = vmatpush3.bf16.msra.mxu0 %v1241_v19  ;;  %2533 = vmatmul.mubr.msk.bf16.gmra.mxu1 %vm493_vm2, %v2749_v8  ;;  %v396_v44 = vsel %vm352_vm3, %v391_v40, %v395_v41  ;;  %v407_v51 = vor.u32 %v405_v49, %v403_v46  ;;  %v413_v55 = vshrl.u32 %v2755_v47, 16  ;;  %v417_v56 = vshll.u32 %v2756_v53, 16  ;;  %v2759_v8 = vld [vmem:[%s2858_s29 + $0x58] sm:$0xff]  }
  0x1a   : > { %2462 = vmatprep.mubr.msk.bf16.mxu0 %vm2794_vm1, %v2793_v1  ;;  %2536 = vmatprep.mubr.msk.bf16.mxu1 %vm2794_vm1, %v2793_v1  ;;  %v404_v48 = vsel %vm352_vm3, %v399_v45, %v403_v46  ;;  %v411_v52 = vrot.slane %v409_v50, 1  ;;  %v421_v61 = vshrl.u32 %v2756_v53, 16  ;;  %v425_v62 = vshll.u32 %v2757_v59, 16  ;;  %v924_v45 = vld [vmem:[%s2858_s29 + $0x8] sm:$0xf] }
  0x1b   : > { %v419_v58 = vrot.slane %v417_v56, 1  ;;  %v429_v4 = vshrl.u32 %v2757_v59, 16  ;;  %v433_v5 = vshll.u32 %v2758_v2, 16  ;;  %v437_v10 = vshrl.u32 %v2758_v2, 16  ;;  %v925_v46 = vld [vmem:[%s2858_s29 + $0xc] sm:$0xf] }
  0x1c   : > { %v412_v54 = vsel %vm352_vm3, %v407_v51, %v411_v52  ;;  %v415_v57 = vor.u32 %v413_v55, %v411_v52  ;;  %v427_v0 = vrot.slane %v425_v62, 1  ;;  %v441_v11 = vshll.u32 %v2759_v8, 16  ;;  %v2767_v52 = vld [vmem:[%s2858_s29 + $0x10] sm:$0xff]  }
  0x1d   : > { %v423_v63 = vor.u32 %v421_v61, %v419_v58  ;;  %v435_v7 = vrot.slane %v433_v5, 1  ;;  %v445_v16 = vshrl.u32 %v2759_v8, 16  ;;  %v449_v17 = vshll.u32 %v2760_v14, 16 }
  0x1e   : > { %v420_v60 = vsel %vm352_vm3, %v415_v57, %v419_v58  ;;  %v431_v6 = vor.u32 %v429_v4, %v427_v0  ;;  %v453_v22 = vshrl.u32 %v2760_v14, 16  ;;  %v461_v28 = vshrl.u32 %v2761_v20, 16 }
  0x1f   : > { %v428_v3 = vsel %vm352_vm3, %v423_v63, %v427_v0  ;;  %v439_v12 = vor.u32 %v437_v10, %v435_v7  ;;  %v451_v19 = vrot.slane %v449_v17, 1  ;;  %v469_v34 = vshrl.u32 %v2762_v26, 16  ;;  %v2769_v0 = vld [vmem:[%s2858_s29 + $0x18] sm:$0xff]   ;;  %v2771_v17 = vld [vmem:[%s2858_s29 + $0x28] sm:$0xff]  }
  0x20   : > { %2463 = vmatmul.mubr.msk.bf16.gmra.mxu0 %vm493_vm2, %v372_v24  ;;  %v436_v9 = vsel %vm352_vm3, %v431_v6, %v435_v7  ;;  %v477_v40 = vshrl.u32 %v2763_v32, 16  ;;  %v481_v41 = vshll.u32 %v2764_v38, 16  ;;  %v485_v49 = vshrl.u32 %v2764_v38, 16 }
  0x21   : > { %2537 = vmatmul.mubr.msk.bf16.gmra.mxu1 %vm493_vm2, %v2750_v13  ;;  %2466 = vmatprep.mubr.msk.bf16.mxu0 %vm2794_vm1, %v2793_v1  ;;  %v443_v13 = vrot.slane %v441_v11, 1  ;;  %v455_v24 = vor.u32 %v453_v22, %v451_v19  ;;  %v2257_v51 = vcombine.low %v924_v45, %v925_v46  ;;  %v1454_v58 = vrot.slane %v2767_v52, 1 }
  0x22   : > { %2540 = vmatprep.mubr.msk.bf16.mxu1 %vm2794_vm1, %v2793_v1  ;;  %v483_v43 = vrot.slane %v481_v41, 1  ;;  %v1057_v62 = vshll.u32 %v2767_v52, 16  ;;  %v1456_v4 = vrot.slane %v2769_v0, 1  ;;  %v1061_v6 = vshrl.u32 %v2767_v52, 16  ;;  %v2774_v41 = vld [vmem:[%s2858_s29 + $0x40] sm:$0xff]  }
  0x23   : > { %v444_v15 = vsel %vm352_vm3, %v439_v12, %v443_v13  ;;  %v447_v18 = vor.u32 %v445_v16, %v443_v13  ;;  %v1052_v56 = vshll.u32 %v2257_v51, 16  ;;  %v1065_v7 = vshll.u32 %v2769_v0, 16 }
  0x25   : > { %v452_v21 = vsel %vm352_vm3, %v447_v18, %v451_v19  ;;  %v1054_v61 = vrot.slane %v1052_v56, 1  ;;  %v1067_v11 = vrot.slane %v1065_v7, 1 }
  0x28   : > { %2467 = vmatmul.mubr.msk.bf16.gmra.mxu0 %vm493_vm2, %v380_v30 }
  0x29   : > { %2541 = vmatmul.mubr.msk.bf16.gmra.mxu1 %vm493_vm2, %v2751_v23  ;;  %2470 = vmatprep.mubr.msk.bf16.mxu0 %vm2794_vm1, %v2793_v1  ;;  %v457_v23 = vshll.u32 %v2761_v20, 16 }
  0x2a   : > { %2544 = vmatprep.mubr.msk.bf16.mxu1 %vm2794_vm1, %v2793_v1 }
  0x2b   : > { %v459_v25 = vrot.slane %v457_v23, 1  ;;  %v1081_v23 = vshll.u32 %v2771_v17, 16 }
  0x2d   : > { %v460_v27 = vsel %vm352_vm3, %v455_v24, %v459_v25  ;;  %v463_v30 = vor.u32 %v461_v28, %v459_v25  ;;  %v2772_v25 = vld [vmem:[%s2858_s29 + $0x30] sm:$0xff]  }
  0x2e   : > { %v1462_v28 = vrot.slane %v2772_v25, 1 }
  0x30   : > { %2471 = vmatmul.mubr.msk.bf16.gmra.mxu0 %vm493_vm2, %v388_v36 }
  0x31   : > { %2545 = vmatmul.mubr.msk.bf16.gmra.mxu1 %vm493_vm2, %v2752_v29  ;;  %2474 = vmatprep.mubr.msk.bf16.mxu0 %vm2794_vm1, %v2793_v1  ;;  %v465_v29 = vshll.u32 %v2762_v26, 16 }
  0x32   : > { %2548 = vmatprep.mubr.msk.bf16.mxu1 %vm2794_vm1, %v2793_v1 }
  0x33   : > { %v467_v31 = vrot.slane %v465_v29, 1 }
  0x35   : > { %v468_v33 = vsel %vm352_vm3, %v463_v30, %v467_v31  ;;  %v471_v36 = vor.u32 %v469_v34, %v467_v31  ;;  %v1085_v30 = vshrl.u32 %v2771_v17, 16  ;;  %v1089_v31 = vshll.u32 %v2772_v25, 16 }
  0x38   : > { %2475 = vmatmul.mubr.msk.bf16.gmra.mxu0 %vm493_vm2, %v396_v44  ;;  %v2765_v44 = vld [vmem:[%s2858_s29 + $0x88] ss:$0 sps:$4 sm:$0x11]  }
  0x39   : > { %2549 = vmatmul.mubr.msk.bf16.gmra.mxu1 %vm493_vm2, %v2753_v35  ;;  %2478 = vmatprep.mubr.msk.bf16.mxu0 %vm2794_vm1, %v2793_v1  ;;  %v473_v35 = vshll.u32 %v2763_v32, 16  ;;  %v489_v50 = vshll.u32 %v2765_v44, 16  ;;  %v1466_v44 = vrot.slane %v2774_v41, 1 }
  0x3a   : > { %2552 = vmatprep.mubr.msk.bf16.mxu1 %vm2794_vm1, %v2793_v1 }
  0x3b   : > { %v475_v37 = vrot.slane %v473_v35, 1  ;;  %v491_v55 = vrot.slane %v489_v50, 1  ;;  %v1091_v35 = vrot.slane %v1089_v31, 1 }
  0x3d   : > { %v479_v42 = vor.u32 %v477_v40, %v475_v37 }
  0x40   : > { %2479 = vmatmul.mubr.msk.bf16.gmra.mxu0 %vm493_vm2, %v404_v48  ;;  %v484_v48 = vsel %vm352_vm3, %v479_v42, %v483_v43 }
  0x41   : > { %2553 = vmatmul.mubr.msk.bf16.gmra.mxu1 %vm493_vm2, %v2754_v39  ;;  %2482 = vmatprep.mubr.msk.bf16.mxu0 %vm2794_vm1, %v2793_v1  ;;  %v476_v39 = vsel %vm352_vm3, %v471_v36, %v475_v37 }
  0x42   : > { %2556 = vmatprep.mubr.msk.bf16.mxu1 %vm2794_vm1, %v2793_v1 }
  0x48   : > { %2483 = vmatmul.mubr.msk.bf16.gmra.mxu0 %vm493_vm2, %v412_v54  ;;  %v487_v54 = vor.u32 %v485_v49, %v483_v43  ;;  %v2775_v49 = vld [vmem:[%s2858_s29 + $0x48] sm:$0xff]  }
  0x49   : > { %2557 = vmatmul.mubr.msk.bf16.gmra.mxu1 %vm493_vm2, %v2755_v47  ;;  %2486 = vmatprep.mubr.msk.bf16.mxu0 %vm2794_vm1, %v2793_v1  ;;  %v1446_v47 = vld [vmem:[%s2858_s29 + $0x8] sm:$0xe]  ;;  %v1468_v52 = vrot.slane %v2775_v49, 1 }
  0x4a   : > { %2560 = vmatprep.mubr.msk.bf16.mxu1 %vm2794_vm1, %v2793_v1 }
  0x4b   : > { %v1469_v56 = vsel %vm1452_vm4, %v1466_v44, %v1468_v52 }
  0x50   : > { %2487 = vmatmul.mubr.msk.bf16.gmra.mxu0 %vm493_vm2, %v420_v60  ;;  %v1050_v60 = vshrl.u32 %v2257_v51, 16 }
  0x51   : > { %2561 = vmatmul.mubr.msk.bf16.gmra.mxu1 %vm493_vm2, %v2756_v53  ;;  %2490 = vmatprep.mubr.msk.bf16.mxu0 %vm2794_vm1, %v2793_v1  ;;  %v2293_v53 = vcombine.low %v1446_v47, %v925_v46  ;;  %v1105_v47 = vshll.u32 %v2774_v41, 16 }
  0x52   : > { %2564 = vmatprep.mubr.msk.bf16.mxu1 %vm2794_vm1, %v2793_v1 }
  0x53   : > { %v1453_v57 = vrot.slane %v2293_v53, 1  ;;  %v1107_v51 = vrot.slane %v1105_v47, 1 }
  0x55   : > { %v1455_v63 = vsel %vm1452_vm4, %v1453_v57, %v1454_v58  ;;  %v2776_v57 = vld [vmem:[%s2858_s29 + $0x50] sm:$0xff]  }
  0x58   : > { %2491 = vmatmul.mubr.msk.bf16.gmra.mxu0 %vm493_vm2, %v428_v3  ;;  %v1059_v3 = vrot.slane %v1057_v62, 1 }
  0x59   : > { %2565 = vmatmul.mubr.msk.bf16.gmra.mxu1 %vm493_vm2, %v2757_v59  ;;  %2494 = vmatprep.mubr.msk.bf16.mxu0 %vm2794_vm1, %v2793_v1  ;;  %v492_v59 = vsel %vm352_vm3, %v487_v54, %v491_v55  ;;  %v1109_v54 = vshrl.u32 %v2774_v41, 16  ;;  %v1113_v55 = vshll.u32 %v2775_v49, 16  ;;  %v2779_v41 = vld [vmem:[%s2858_s29 + $0x68] sm:$0xff]  }
  0x5a   : > { %2568 = vmatprep.mubr.msk.bf16.mxu1 %vm2794_vm1, %v2793_v1  ;;  %v1063_v10 = vor.u32 %v1061_v6, %v1059_v3 }
  0x5c   : > { %v1068_v13 = vsel %vm352_vm3, %v1063_v10, %v1067_v11 }
  0x60   : > { %2495 = vmatmul.mubr.msk.bf16.gmra.mxu0 %vm493_vm2, %v436_v9  ;;  %v2770_v9 = vld [vmem:[%s2858_s29 + $0x20] sm:$0xff]  }
  0x61   : > { %2569 = vmatmul.mubr.msk.bf16.gmra.mxu1 %vm493_vm2, %v2758_v2  ;;  %2498 = vmatprep.mubr.msk.bf16.mxu0 %vm2794_vm1, %v2793_v1  ;;  %v1055_v2 = vor.u32 %v1054_v61, %v1050_v60  ;;  %v1458_v12 = vrot.slane %v2770_v9, 1  ;;  %v1077_v22 = vshrl.u32 %v2770_v9, 16  ;;  %v1115_v60 = vrot.slane %v1113_v55, 1 }
  0x62   : > { %2572 = vmatprep.mubr.msk.bf16.mxu1 %vm2794_vm1, %v2793_v1  ;;  %v1470_v61 = vrot.slane %v2776_v57, 1 }
  0x63   : > { %v1060_v5 = vsel %vm352_vm3, %v1055_v2, %v1059_v3  ;;  %v1459_v16 = vsel %vm1452_vm4, %v1456_v4, %v1458_v12  ;;  %v1117_v2 = vshrl.u32 %v2775_v49, 16  ;;  %v1121_v3 = vshll.u32 %v2776_v57, 16 }
  0x64   : > { %v1476_v49 = vrot.slane %v2779_v41, 1 }
  0x65   : > { %v1119_v10 = vor.u32 %v1117_v2, %v1115_v60 }
  0x68   : > { %2499 = vmatmul.mubr.msk.bf16.gmra.mxu0 %vm493_vm2, %v444_v15  ;;  %v1073_v15 = vshll.u32 %v2770_v9, 16 }
  0x69   : > { %2573 = vmatmul.mubr.msk.bf16.gmra.mxu1 %vm493_vm2, %v2759_v8  ;;  %2502 = vmatprep.mubr.msk.bf16.mxu0 %vm2794_vm1, %v2793_v1  ;;  %v1457_v8 = vsel %vm1452_vm4, %v1454_v58, %v1456_v4  ;;  %v1471_v4 = vsel %vm1452_vm4, %v1468_v52, %v1470_v61 }
  0x6a   : > { %2576 = vmatprep.mubr.msk.bf16.mxu1 %vm2794_vm1, %v2793_v1  ;;  %v1075_v19 = vrot.slane %v1073_v15, 1 }
  0x70   : > { %2503 = vmatmul.mubr.msk.bf16.gmra.mxu0 %vm493_vm2, %v452_v21 }
  0x71   : > { %2577 = vmatmul.mubr.msk.bf16.gmra.mxu1 %vm493_vm2, %v2760_v14  ;;  %2506 = vmatprep.mubr.msk.bf16.mxu0 %vm2794_vm1, %v2793_v1  ;;  %v1069_v14 = vshrl.u32 %v2769_v0, 16 }
  0x72   : > { %2580 = vmatprep.mubr.msk.bf16.mxu1 %vm2794_vm1, %v2793_v1 }
  0x73   : > { %v1071_v18 = vor.u32 %v1069_v14, %v1067_v11  ;;  %v1123_v11 = vrot.slane %v1121_v3, 1 }
  0x75   : > { %v1076_v21 = vsel %vm352_vm3, %v1071_v18, %v1075_v19  ;;  %v1124_v18 = vsel %vm352_vm3, %v1119_v10, %v1123_v11 }
  0x78   : > { %2507 = vmatmul.mubr.msk.bf16.gmra.mxu0 %vm493_vm2, %v460_v27  ;;  %v1083_v27 = vrot.slane %v1081_v23, 1  ;;  %v2778_v23 = vld [vmem:[%s2858_s29 + $0x60] sm:$0xff]  }
  0x79   : > { %2581 = vmatmul.mubr.msk.bf16.gmra.mxu1 %vm493_vm2, %v2761_v20  ;;  %2510 = vmatprep.mubr.msk.bf16.mxu0 %vm2794_vm1, %v2793_v1  ;;  %v1460_v20 = vrot.slane %v2771_v17, 1  ;;  %v1474_v31 = vrot.slane %v2778_v23, 1  ;;  %v1141_v55 = vshrl.u32 %v2778_v23, 16 }
  0x7a   : > { %2584 = vmatprep.mubr.msk.bf16.mxu1 %vm2794_vm1, %v2793_v1  ;;  %v1087_v34 = vor.u32 %v1085_v30, %v1083_v27 }
  0x7b   : > { %v1461_v24 = vsel %vm1452_vm4, %v1458_v12, %v1460_v20 }
  0x7c   : > { %v1092_v37 = vsel %vm352_vm3, %v1087_v34, %v1091_v35 }
  0x80   : > { %2511 = vmatmul.mubr.msk.bf16.gmra.mxu0 %vm493_vm2, %v468_v33  ;;  %v2773_v33 = vld [vmem:[%s2858_s29 + $0x38] sm:$0xff]  }
  0x81   : > { %2585 = vmatmul.mubr.msk.bf16.gmra.mxu1 %vm493_vm2, %v2762_v26  ;;  %2514 = vmatprep.mubr.msk.bf16.mxu0 %vm2794_vm1, %v2793_v1  ;;  %v1079_v26 = vor.u32 %v1077_v22, %v1075_v19  ;;  %v1464_v36 = vrot.slane %v2773_v33, 1  ;;  %v1101_v46 = vshrl.u32 %v2773_v33, 16  ;;  %v1125_v19 = vshrl.u32 %v2776_v57, 16 }
  0x82   : > { %2588 = vmatprep.mubr.msk.bf16.mxu1 %vm2794_vm1, %v2793_v1 }
  0x83   : > { %v1084_v29 = vsel %vm352_vm3, %v1079_v26, %v1083_v27  ;;  %v1465_v40 = vsel %vm1452_vm4, %v1462_v28, %v1464_v36 }
  0x88   : > { %2515 = vmatmul.mubr.msk.bf16.gmra.mxu0 %vm493_vm2, %v476_v39  ;;  %v1097_v39 = vshll.u32 %v2773_v33, 16 }
  0x89   : > { %2589 = vmatmul.mubr.msk.bf16.gmra.mxu1 %vm493_vm2, %v2763_v32  ;;  %2518 = vmatprep.mubr.msk.bf16.mxu0 %vm2794_vm1, %v2793_v1  ;;  %v1463_v32 = vsel %vm1452_vm4, %v1460_v20, %v1462_v28  ;;  %v1127_v28 = vor.u32 %v1125_v19, %v1123_v11  ;;  %v1149_v11 = vshrl.u32 %v2779_v41, 16 }
  0x8a   : > { %2592 = vmatprep.mubr.msk.bf16.mxu1 %vm2794_vm1, %v2793_v1  ;;  %v1099_v43 = vrot.slane %v1097_v39, 1 }
  0x8c   : > { %v1103_v50 = vor.u32 %v1101_v46, %v1099_v43 }
  0x8e   : > { %v1108_v53 = vsel %vm352_vm3, %v1103_v50, %v1107_v51 }
  0x90   : > { %2519 = vmatmul.mubr.msk.bf16.gmra.mxu0 %vm493_vm2, %v484_v48  ;;  %v1467_v48 = vsel %vm1452_vm4, %v1464_v36, %v1466_v44 }
  0x91   : > { %2593 = vmatmul.mubr.msk.bf16.gmra.mxu1 %vm493_vm2, %v2764_v38  ;;  %2522 = vmatprep.mubr.msk.bf16.mxu0 %vm2794_vm1, %v2793_v1  ;;  %v1093_v38 = vshrl.u32 %v2772_v25, 16 }
  0x92   : > { %2668 = vmatprep.mubr.msk.bf16.mxu1 %vm2794_vm1, %v2793_v1 }
  0x93   : > { %v1095_v42 = vor.u32 %v1093_v38, %v1091_v35  ;;  %v1137_v38 = vshll.u32 %v2778_v23, 16 }
  0x95   : > { %v1100_v45 = vsel %vm352_vm3, %v1095_v42, %v1099_v43  ;;  %v1139_v47 = vrot.slane %v1137_v38, 1 }
  0x98   : > { %2523 = vmatmul.mubr.msk.bf16.gmra.mxu0 %vm493_vm2, %v492_v59  ;;  %v1111_v59 = vor.u32 %v1109_v54, %v1107_v51 }
  0x99   : > { %2669 = vmatmul.mubr.msk.bf16.vlgmr.msra.gmra.mxu1 %vm493_vm2, %v1455_v63  ;;  %2598 = vmatprep.mubr.msk.bf16.mxu0 %vm2794_vm1, %v2793_v1 }
  0x9a   : > { %2672 = vmatprep.mubr.msk.bf16.mxu1 %vm2794_vm1, %v2793_v1  ;;  %v1116_v0 = vsel %vm352_vm3, %v1111_v59, %v1115_v60  ;;  %v2780_v59 = vld [vmem:[%s2858_s29 + $0x70] sm:$0xff]  }
  0xa0   : > { %2599 = vmatmul.mubr.msk.bf16.vlgmr.msra.gmra.mxu0 %vm493_vm2, %v1060_v5  ;;  %v2777_v5 = vld [vmem:[%s2858_s29 + $0x58] sm:$0xff]  }
  0xa1   : > { %2673 = vmatmul.mubr.msk.bf16.gmra.mxu1 %vm493_vm2, %v1457_v8  ;;  %2602 = vmatprep.mubr.msk.bf16.mxu0 %vm2794_vm1, %v2793_v1  ;;  %v1129_v20 = vshll.u32 %v2777_v5, 16 }
  0xa2   : > { %2676 = vmatprep.mubr.msk.bf16.mxu1 %vm2794_vm1, %v2793_v1 }
  0xa8   : > { %2603 = vmatmul.mubr.msk.bf16.gmra.mxu0 %vm493_vm2, %v1068_v13  ;;  %v1472_v13 = vrot.slane %v2777_v5, 1 }
  0xa9   : > { %2677 = vmatmul.mubr.msk.bf16.gmra.mxu1 %vm493_vm2, %v1459_v16  ;;  %2606 = vmatprep.mubr.msk.bf16.mxu0 %vm2794_vm1, %v2793_v1 }
  0xaa   : > { %2680 = vmatprep.mubr.msk.bf16.mxu1 %vm2794_vm1, %v2793_v1  ;;  %v1473_v22 = vsel %vm1452_vm4, %v1470_v61, %v1472_v13 }
  0xb0   : > { %2607 = vmatmul.mubr.msk.bf16.gmra.mxu0 %vm493_vm2, %v1076_v21 }
  0xb1   : > { %2681 = vmatmul.mubr.msk.bf16.gmra.mxu1 %vm493_vm2, %v1461_v24  ;;  %2610 = vmatprep.mubr.msk.bf16.mxu0 %vm2794_vm1, %v2793_v1 }
  0xb2   : > { %2684 = vmatprep.mubr.msk.bf16.mxu1 %vm2794_vm1, %v2793_v1 }
  0xb8   : > { %2611 = vmatmul.mubr.msk.bf16.gmra.mxu0 %vm493_vm2, %v1084_v29  ;;  %v1131_v29 = vrot.slane %v1129_v20, 1 }
  0xb9   : > { %2685 = vmatmul.mubr.msk.bf16.gmra.mxu1 %vm493_vm2, %v1463_v32  ;;  %2614 = vmatprep.mubr.msk.bf16.mxu0 %vm2794_vm1, %v2793_v1 }
  0xba   : > { %2688 = vmatprep.mubr.msk.bf16.mxu1 %vm2794_vm1, %v2793_v1  ;;  %v1132_v36 = vsel %vm352_vm3, %v1127_v28, %v1131_v29 }
  0xc0   : > { %2615 = vmatmul.mubr.msk.bf16.gmra.mxu0 %vm493_vm2, %v1092_v37  ;;  %v1133_v37 = vshrl.u32 %v2777_v5, 16 }
  0xc1   : > { %2689 = vmatmul.mubr.msk.bf16.gmra.mxu1 %vm493_vm2, %v1465_v40  ;;  %2618 = vmatprep.mubr.msk.bf16.mxu0 %vm2794_vm1, %v2793_v1  ;;  %v1475_v40 = vsel %vm1452_vm4, %v1472_v13, %v1474_v31 }
  0xc2   : > { %2692 = vmatprep.mubr.msk.bf16.mxu1 %vm2794_vm1, %v2793_v1  ;;  %v1135_v46 = vor.u32 %v1133_v37, %v1131_v29 }
  0xc4   : > { %v1140_v54 = vsel %vm352_vm3, %v1135_v46, %v1139_v47 }
  0xc8   : > { %2619 = vmatmul.mubr.msk.bf16.gmra.mxu0 %vm493_vm2, %v1100_v45 }
  0xc9   : > { %2693 = vmatmul.mubr.msk.bf16.gmra.mxu1 %vm493_vm2, %v1467_v48  ;;  %2622 = vmatprep.mubr.msk.bf16.mxu0 %vm2794_vm1, %v2793_v1 }
  0xca   : > { %2696 = vmatprep.mubr.msk.bf16.mxu1 %vm2794_vm1, %v2793_v1 }
  0xd0   : > { %2623 = vmatmul.mubr.msk.bf16.gmra.mxu0 %vm493_vm2, %v1108_v53 }
  0xd1   : > { %v789_v58 = vpop.f32.mrf.mxu1  ;;  %2697 = vmatmul.mubr.msk.bf16.gmra.mxu1 %vm493_vm2, %v1469_v56  ;;  %2626 = vmatprep.mubr.msk.bf16.mxu0 %vm2794_vm1, %v2793_v1  ;;  %v1145_v56 = vshll.u32 %v2779_v41, 16 }
  0xd2   : > { %2700 = vmatprep.mubr.msk.bf16.mxu1 %vm2794_vm1, %v2793_v1 }
  0xd3   : > { %v2530_v62 = vpop.f32.mrf.mxu1  ;;  %v1147_v2 = vrot.slane %v1145_v56, 1  ;;  %v2783_v56 = vld [vmem:[%s2858_s29 + $0x88] sm:$0xff]  }
  0xd5   : > { %v792_v63 = vpop.f32.mrf.mxu1 }
  0xd7   : > { %v2531_v6 = vpop.f32.mrf.mxu1 }
  0xd8   : > { %v583_v7 = vpop.f32.mrf.mxu0  ;;  %2627 = vmatmul.mubr.msk.bf16.gmra.mxu0 %vm493_vm2, %v1116_v0 }
  0xd9   : > { %v3078_v8 = vadd.f32 %v789_v58, %v583_v7  ;;  %v797_v9 = vpop.f32.mrf.mxu1  ;;  %2701 = vmatmul.mubr.msk.bf16.gmra.mxu1 %vm493_vm2, %v1471_v4  ;;  %2630 = vmatprep.mubr.msk.bf16.mxu0 %vm2794_vm1, %v2793_v1  ;;  %v1477_v58 = vsel %vm1452_vm4, %v1474_v31, %v1476_v49  ;;  %v1478_v4 = vrot.slane %v2780_v59, 1  ;;  %v1157_v31 = vshrl.u32 %v2780_v59, 16 }
  0xda   : > { %v2460_v12 = vpop.f32.mrf.mxu0  ;;  %2704 = vmatprep.mubr.msk.bf16.mxu1 %vm2794_vm1, %v2793_v1 }
  0xdb   : > { %v2534_v14 = vpop.f32.mrf.mxu1  ;;  %v1153_v12 = vshll.u32 %v2780_v59, 16 }
  0xdc   : > { %v586_v15 = vpop.f32.mrf.mxu0  ;;  %v1479_v14 = vsel %vm1452_vm4, %v1476_v49, %v1478_v4 }
  0xdd   : > { %v3085_v16 = vadd.f32 %v792_v63, %v586_v15  ;;  %v800_v17 = vpop.f32.mrf.mxu1  ;;  %v1143_v63 = vor.u32 %v1141_v55, %v1139_v47  ;;  %v2781_v15 = vld [vmem:[%s2858_s29 + $0x78] sm:$0xff]  }
  0xde   : > { %v2461_v21 = vpop.f32.mrf.mxu0 }
  0xdf   : > { %v2535_v24 = vpop.f32.mrf.mxu1  ;;  %v1148_v10 = vsel %vm352_vm3, %v1143_v63, %v1147_v2  ;;  %v1151_v21 = vor.u32 %v1149_v11, %v1147_v2  ;;  %v1484_v2 = vrot.slane %v2783_v56, 1  ;;  %v1177_v11 = vshll.u32 %v2783_v56, 16 }
  0xe0   : > { %v591_v25 = vpop.f32.mrf.mxu0  ;;  %2631 = vmatmul.mubr.msk.bf16.gmra.mxu0 %vm493_vm2, %v1124_v18  ;;  %v1480_v24 = vrot.slane %v2781_v15, 1 }
  0xe1   : > { %v3091_v26 = vadd.f32 %v797_v9, %v591_v25  ;;  %v805_v27 = vpop.f32.mrf.mxu1  ;;  %2705 = vmatmul.mubr.msk.bf16.gmra.mxu1 %vm493_vm2, %v1473_v22  ;;  %2634 = vmatprep.mubr.msk.bf16.mxu0 %vm2794_vm1, %v2793_v1  ;;  %v1155_v22 = vrot.slane %v1153_v12, 1 }
  0xe2   : > { %v2464_v30 = vpop.f32.mrf.mxu0  ;;  %2708 = vmatprep.mubr.msk.bf16.mxu1 %vm2794_vm1, %v2793_v1 }
  0xe3   : > { %v2538_v32 = vpop.f32.mrf.mxu1  ;;  %v1156_v30 = vsel %vm352_vm3, %v1151_v21, %v1155_v22  ;;  %v1159_v41 = vor.u32 %v1157_v31, %v1155_v22  ;;  %v1179_v22 = vrot.slane %v1177_v11, 1 }
  0xe4   : > { %v594_v33 = vpop.f32.mrf.mxu0  ;;  %v1161_v32 = vshll.u32 %v2781_v15, 16 }
  0xe5   : > { %v3098_v34 = vadd.f32 %v800_v17, %v594_v33  ;;  %v808_v35 = vpop.f32.mrf.mxu1 }
  0xe6   : > { %v2465_v39 = vpop.f32.mrf.mxu0 }
  0xe7   : > { %v2539_v42 = vpop.f32.mrf.mxu1 }
  0xe8   : > { %v599_v43 = vpop.f32.mrf.mxu0  ;;  %2635 = vmatmul.mubr.msk.bf16.gmra.mxu0 %vm493_vm2, %v1132_v36  ;;  %v2782_v36 = vld [vmem:[%s2858_s29 + $0x80] sm:$0xff]   ;;  %v1163_v42 = vrot.slane %v1161_v32, 1  ;;  %v1181_v32 = vshrl.u32 %v2783_v56, 16 }
  0xe9   : > { %v3104_v44 = vadd.f32 %v805_v27, %v599_v43  ;;  %v813_v45 = vpop.f32.mrf.mxu1  ;;  %2709 = vmatmul.mubr.msk.bf16.gmra.mxu1 %vm493_vm2, %v1475_v40  ;;  %2638 = vmatprep.mubr.msk.bf16.mxu0 %vm2794_vm1, %v2793_v1 }
  0xea   : > { %v2468_v48 = vpop.f32.mrf.mxu0  ;;  %2712 = vmatprep.mubr.msk.bf16.mxu1 %vm2794_vm1, %v2793_v1 }
  0xeb   : > { %v2542_v50 = vpop.f32.mrf.mxu1 }
  0xec   : > { %v602_v51 = vpop.f32.mrf.mxu0  ;;  %v1164_v50 = vsel %vm352_vm3, %v1159_v41, %v1163_v42 }
  0xed   : > { %v3111_v52 = vadd.f32 %v808_v35, %v602_v51  ;;  %v816_v53 = vpop.f32.mrf.mxu1  ;;  %v1481_v35 = vsel %vm1452_vm4, %v1478_v4, %v1480_v24  ;;  %v1165_v51 = vshrl.u32 %v2781_v15, 16 }
  0xee   : > { %v2469_v57 = vpop.f32.mrf.mxu0 }
  0xef   : > { %v2543_v60 = vpop.f32.mrf.mxu1 }
  0xf0   : > { %v607_v61 = vpop.f32.mrf.mxu0  ;;  %2639 = vmatmul.mubr.msk.bf16.gmra.mxu0 %vm493_vm2, %v1140_v54 }
  0xf1   : > { %v3117_v62 = vadd.f32 %v813_v45, %v607_v61  ;;  %v821_v0 = vpop.f32.mrf.mxu1  ;;  %2713 = vmatmul.mubr.msk.bf16.gmra.mxu1 %vm493_vm2, %v1477_v58  ;;  %2642 = vmatprep.mubr.msk.bf16.mxu0 %vm2794_vm1, %v2793_v1  ;;  %v1482_v45 = vrot.slane %v2782_v36, 1  ;;  %v1167_v61 = vor.u32 %v1165_v51, %v1163_v42  ;;  %v1183_v42 = vor.u32 %v1181_v32, %v1179_v22 }
  0xf2   : > { %v2472_v3 = vpop.f32.mrf.mxu0  ;;  %2716 = vmatprep.mubr.msk.bf16.mxu1 %vm2794_vm1, %v2793_v1 }
  0xf3   : > { %v2546_v5 = vpop.f32.mrf.mxu1  ;;  %v1483_v55 = vsel %vm1452_vm4, %v1480_v24, %v1482_v45 }
  0xf4   : > { %v610_v6 = vpop.f32.mrf.mxu0 }
  0xf5   : > { %v3124_v7 = vadd.f32 %v816_v53, %v610_v6  ;;  %v824_v9 = vpop.f32.mrf.mxu1  ;;  %v1169_v53 = vshll.u32 %v2782_v36, 16 }
  0xf6   : > { %v2473_v13 = vpop.f32.mrf.mxu0 }
  0xf7   : > { %v2547_v17 = vpop.f32.mrf.mxu1  ;;  %v1171_v63 = vrot.slane %v1169_v53, 1  ;;  %v1485_v13 = vsel %vm1452_vm4, %v1482_v45, %v1484_v2 }
  0xf8   : > { %v615_v18 = vpop.f32.mrf.mxu0  ;;  %2643 = vmatmul.mubr.msk.bf16.gmra.mxu0 %vm493_vm2, %v1148_v10  ;;  %v1173_v10 = vshrl.u32 %v2782_v36, 16 }
  0xf9   : > { %v3130_v19 = vadd.f32 %v821_v0, %v615_v18  ;;  %v829_v20 = vpop.f32.mrf.mxu1  ;;  %2717 = vmatmul.mubr.msk.bf16.gmra.mxu1 %vm493_vm2, %v1479_v14  ;;  %2646 = vmatprep.mubr.msk.bf16.mxu0 %vm2794_vm1, %v2793_v1  ;;  %v2784_v14 = vld [vmem:[%s2858_s29 + $0x90] ss:$0 sps:$4 sm:$0x11]  }
  0xfa   : > { %v2476_v23 = vpop.f32.mrf.mxu0  ;;  %2720 = vmatprep.mubr.msk.bf16.mxu1 %vm2794_vm1, %v2793_v1  ;;  %v1175_v21 = vor.u32 %v1173_v10, %v1171_v63  ;;  %v1486_v24 = vrot.slane %v2784_v14, 1 }
  0xfb   : > { %v2550_v25 = vpop.f32.mrf.mxu1 }
  0xfc   : > { %v618_v27 = vpop.f32.mrf.mxu0  ;;  %v1180_v31 = vsel %vm352_vm3, %v1175_v21, %v1179_v22  ;;  %v1487_v36 = vsel %vm1452_vm4, %v1484_v2, %v1486_v24 }
  0xfd   : > { %v3137_v28 = vadd.f32 %v824_v9, %v618_v27  ;;  %v832_v29 = vpop.f32.mrf.mxu1  ;;  %v1172_v9 = vsel %vm352_vm3, %v1167_v61, %v1171_v63 }
  0xfe   : > { %v2477_v33 = vpop.f32.mrf.mxu0 }
  0xff   : > { %v2551_v37 = vpop.f32.mrf.mxu1  ;;  %v1185_v33 = vshll.u32 %v2784_v14, 16 }
 0x100   : > { %v623_v38 = vpop.f32.mrf.mxu0  ;;  %2647 = vmatmul.mubr.msk.bf16.gmra.mxu0 %vm493_vm2, %v1156_v30 }
 0x101   : > { %v3143_v39 = vadd.f32 %v829_v20, %v623_v38  ;;  %v837_v40 = vpop.f32.mrf.mxu1  ;;  %2721 = vmatmul.mubr.msk.bf16.gmra.mxu1 %vm493_vm2, %v1481_v35  ;;  %2650 = vmatprep.mubr.msk.bf16.mxu0 %vm2794_vm1, %v2793_v1 }
 0x102   : > { %v2480_v43 = vpop.f32.mrf.mxu0  ;;  %2724 = vmatprep.mubr.msk.bf16.mxu1 %vm2794_vm1, %v2793_v1 }
 0x103   : > { %v2554_v46 = vpop.f32.mrf.mxu1  ;;  %v1187_v43 = vrot.slane %v1185_v33, 1 }
 0x104   : > { %v626_v47 = vpop.f32.mrf.mxu0 }
 0x105   : > { %v3150_v48 = vadd.f32 %v832_v29, %v626_v47  ;;  %v840_v49 = vpop.f32.mrf.mxu1  ;;  %v1188_v51 = vsel %vm352_vm3, %v1183_v42, %v1187_v43 }
 0x106   : > { %v2481_v54 = vpop.f32.mrf.mxu0 }
 0x107   : > { %v2555_v57 = vpop.f32.mrf.mxu1 }
 0x108   : > { %v631_v58 = vpop.f32.mrf.mxu0  ;;  %2651 = vmatmul.mubr.msk.bf16.gmra.mxu0 %vm493_vm2, %v1164_v50 }
 0x109   : > { %v3156_v59 = vadd.f32 %v837_v40, %v631_v58  ;;  %v845_v60 = vpop.f32.mrf.mxu1  ;;  %2725 = vmatmul.mubr.msk.bf16.gmra.mxu1 %vm493_vm2, %v1483_v55  ;;  %2654 = vmatprep.mubr.msk.bf16.mxu0 %vm2794_vm1, %v2793_v1 }
 0x10a   : > { %v2484_v0 = vpop.f32.mrf.mxu0  ;;  %2728 = vmatprep.mubr.msk.bf16.mxu1 %vm2794_vm1, %v2793_v1 }
 0x10b   : > { %v2558_v3 = vpop.f32.mrf.mxu1 }
 0x10c   : > { %v634_v4 = vpop.f32.mrf.mxu0 }
 0x10d   : > { %v3163_v5 = vadd.f32 %v840_v49, %v634_v4  ;;  %v848_v6 = vpop.f32.mrf.mxu1 }
 0x10e   : > { %v2485_v12 = vpop.f32.mrf.mxu0 }
 0x10f   : > { %v2559_v15 = vpop.f32.mrf.mxu1 }
 0x110   : > { %v639_v17 = vpop.f32.mrf.mxu0  ;;  %2655 = vmatmul.mubr.msk.bf16.gmra.mxu0 %vm493_vm2, %v1172_v9 }
 0x111   : > { %v3169_v18 = vadd.f32 %v845_v60, %v639_v17  ;;  %v853_v20 = vpop.f32.mrf.mxu1  ;;  %2729 = vmatmul.mubr.msk.bf16.gmra.mxu1 %vm493_vm2, %v1485_v13  ;;  %2658 = vmatprep.mubr.msk.bf16.mxu0 %vm2794_vm1, %v2793_v1 }
 0x112   : > { %v2488_v23 = vpop.f32.mrf.mxu0  ;;  %2732 = vmatprep.mubr.msk.bf16.mxu1 %vm2794_vm1, %v2793_v1 }
 0x113   : > { %v2562_v25 = vpop.f32.mrf.mxu1 }
 0x114   : > { %v642_v27 = vpop.f32.mrf.mxu0 }
 0x115   : > { %v3176_v29 = vadd.f32 %v848_v6, %v642_v27  ;;  %v856_v30 = vpop.f32.mrf.mxu1 }
 0x116   : > { %v2489_v35 = vpop.f32.mrf.mxu0 }
 0x117   : > { %v2563_v37 = vpop.f32.mrf.mxu1 }
 0x118   : > { %v647_v38 = vpop.f32.mrf.mxu0  ;;  %2659 = vmatmul.mubr.msk.bf16.gmra.mxu0 %vm493_vm2, %v1180_v31 }
 0x119   : > { %v3181_v40 = vadd.f32 %v853_v20, %v647_v38  ;;  %v861_v41 = vpop.f32.mrf.mxu1  ;;  %2733 = vmatmul.mubr.msk.bf16.gmra.mxu1 %vm493_vm2, %v1487_v36  ;;  %2662 = vmatprep.mubr.msk.bf16.mxu0 %vm2794_vm1, %v2793_v1 }
 0x11a   : > { %v2492_v45 = vpop.f32.mrf.mxu0 }
 0x11b   : > { %v2566_v46 = vpop.f32.mrf.mxu1 }
 0x11c   : > { %v650_v47 = vpop.f32.mrf.mxu0 }
 0x11d   : > { %v3186_v49 = vadd.f32 %v856_v30, %v650_v47  ;;  %v864_v50 = vpop.f32.mrf.mxu1 }
 0x11e   : > { %v2493_v53 = vpop.f32.mrf.mxu0 }
 0x11f   : > { %v2567_v54 = vpop.f32.mrf.mxu1 }
 0x120   : > { %v655_v55 = vpop.f32.mrf.mxu0  ;;  %2663 = vmatmul.mubr.msk.bf16.gmra.mxu0 %vm493_vm2, %v1188_v51 }
 0x121   : > { %v3190_v56 = vadd.f32 %v861_v41, %v655_v55  ;;  %v869_v57 = vpop.f32.mrf.mxu1 }
 0x122   : > { %v2496_v58 = vpop.f32.mrf.mxu0 }
 0x123   : > { %v2570_v1 = vpop.f32.mrf.mxu1 }
 0x124   : > { %v658_v60 = vpop.f32.mrf.mxu0 }
 0x125   : > { %v3192_v61 = vadd.f32 %v864_v50, %v658_v60  ;;  %v872_v63 = vpop.f32.mrf.mxu1 }
 0x126   : > { %v2497_v0 = vpop.f32.mrf.mxu0 }
 0x127   : > { %v2571_v2 = vpop.f32.mrf.mxu1 }
 0x128   : > { %v663_v3 = vpop.f32.mrf.mxu0 }
 0x129   : > { %v3194_v4 = vadd.f32 %v869_v57, %v663_v3  ;;  %v877_v6 = vpop.f32.mrf.mxu1 }
 0x12a   : > { %v2500_v9 = vpop.f32.mrf.mxu0 }
 0x12b   : > { %v2574_v10 = vpop.f32.mrf.mxu1 }
 0x12c   : > { %v666_v11 = vpop.f32.mrf.mxu0 }
 0x12d   : > { %v3196_v12 = vadd.f32 %v872_v63, %v666_v11  ;;  %v880_v13 = vpop.f32.mrf.mxu1 }
 0x12e   : > { %v2501_v14 = vpop.f32.mrf.mxu0 }
 0x12f   : > { %v2575_v15 = vpop.f32.mrf.mxu1 }
 0x130   : > { %v671_v17 = vpop.f32.mrf.mxu0 }
 0x131   : > { %v3198_v20 = vadd.f32 %v877_v6, %v671_v17  ;;  %v885_v21 = vpop.f32.mrf.mxu1 }
 0x132   : > { %v2504_v22 = vpop.f32.mrf.mxu0 }
 0x133   : > { %v2578_v23 = vpop.f32.mrf.mxu1 }
 0x134   : > { %v674_v24 = vpop.f32.mrf.mxu0 }
 0x135   : > { %v3200_v25 = vadd.f32 %v880_v13, %v674_v24  ;;  %v888_v27 = vpop.f32.mrf.mxu1 }
 0x136   : > { %v2505_v30 = vpop.f32.mrf.mxu0 }
 0x137   : > { %v2579_v31 = vpop.f32.mrf.mxu1 }
 0x138   : > { %v679_v32 = vpop.f32.mrf.mxu0 }
 0x139   : > { %v3202_v33 = vadd.f32 %v885_v21, %v679_v32  ;;  %v893_v35 = vpop.f32.mrf.mxu1 }
 0x13a   : > { %v2508_v36 = vpop.f32.mrf.mxu0 }
 0x13b   : > { %v2582_v37 = vpop.f32.mrf.mxu1 }
 0x13c   : > { %v682_v38 = vpop.f32.mrf.mxu0 }
 0x13d   : > { %v3204_v41 = vadd.f32 %v888_v27, %v682_v38  ;;  %v896_v42 = vpop.f32.mrf.mxu1 }
 0x13e   : > { %v2509_v43 = vpop.f32.mrf.mxu0 }
 0x13f   : > { %v2583_v45 = vpop.f32.mrf.mxu1 }
 0x140   : > { %v687_v46 = vpop.f32.mrf.mxu0 }
 0x141   : > { %v3206_v47 = vadd.f32 %v893_v35, %v687_v46  ;;  %v901_v50 = vpop.f32.mrf.mxu1 }
 0x142   : > { %v2512_v51 = vpop.f32.mrf.mxu0 }
 0x143   : > { %v2586_v53 = vpop.f32.mrf.mxu1 }
 0x144   : > { %v690_v54 = vpop.f32.mrf.mxu0 }
 0x145   : > { %v3208_v55 = vadd.f32 %v896_v42, %v690_v54  ;;  %v904_v57 = vpop.f32.mrf.mxu1 }
 0x146   : > { %v2513_v58 = vpop.f32.mrf.mxu0 }
 0x147   : > { %v2587_v1 = vpop.f32.mrf.mxu1 }
 0x148   : > { %v695_v60 = vpop.f32.mrf.mxu0 }
 0x149   : > { %v3210_v63 = vadd.f32 %v901_v50, %v695_v60  ;;  %v909_v0 = vpop.f32.mrf.mxu1 }
 0x14a   : > { %v2516_v2 = vpop.f32.mrf.mxu0 }
 0x14b   : > { %v2590_v3 = vpop.f32.mrf.mxu1 }
 0x14c   : > { %v698_v6 = vpop.f32.mrf.mxu0 }
 0x14d   : > { %v3212_v9 = vadd.f32 %v904_v57, %v698_v6  ;;  %v912_v10 = vpop.f32.mrf.mxu1  ;;  %v3226_v57 = vld [vmem:[%s3452_s2] ss:$0 sm:$0xff] }
 0x14e   : > { %v2517_v11 = vpop.f32.mrf.mxu0 }
 0x14f   : > { %v2591_v13 = vpop.f32.mrf.mxu1 }
 0x150   : > { %v703_v14 = vpop.f32.mrf.mxu0 }
 0x151   : > { %v3214_v15 = vadd.f32 %v909_v0, %v703_v14  ;;  %v917_v17 = vpop.f32.mrf.mxu1 }
 0x152   : > { %v2520_v21 = vpop.f32.mrf.mxu0 }
 0x153   : > { %v2594_v22 = vpop.f32.mrf.mxu1 }
 0x154   : > { %v706_v23 = vpop.f32.mrf.mxu0  ;;  %v3239_v22 = vld [vmem:[%s3454_s4] ss:$0 sm:$0xff] }
 0x155   : > { %v3216_v24 = vadd.f32 %v912_v10, %v706_v23  ;;  %v920_v27 = vpop.f32.mrf.mxu1 }
 0x156   : > { %v2521_v30 = vpop.f32.mrf.mxu0 }
 0x157   : > { %v2595_v31 = vpop.f32.mrf.mxu1 }
 0x158   : > { %v711_v32 = vpop.f32.mrf.mxu0 }
 0x159   : > { %v3218_v35 = vadd.f32 %v917_v17, %v711_v32  ;;  %v1576_v36 = vpop.f32.mrf.mxu1 }
 0x15a   : > { %v2524_v37 = vpop.f32.mrf.mxu0 }
 0x15b   : > { %v2670_v38 = vpop.f32.mrf.mxu1 }
 0x15c   : > { %v714_v42 = vpop.f32.mrf.mxu0 }
 0x15d   : > { %v3220_v43 = vadd.f32 %v920_v27, %v714_v42  ;;  %v1579_v45 = vpop.f32.mrf.mxu1 }
 0x15e   : > { %v2525_v46 = vpop.f32.mrf.mxu0 }
 0x15f   : > { %v2671_v50 = vpop.f32.mrf.mxu1 }
 0x160   : > { %v1277_v51 = vpop.f32.mrf.mxu0 }
 0x161   : > { %v1412_v53 = vadd.f32 %v1277_v51, %v3078_v8  ;;  %v1584_v54 = vpop.f32.mrf.mxu1  ;;  %v3233_v8 = vld [vmem:[%s3453_s3] ss:$0 sm:$0xff] }
 0x162   : > { %v2600_v58 = vpop.f32.mrf.mxu0 }
 0x163   : > { %v1711_v1 = vadd.f32 %v1576_v36, %v1412_v53  ;;  %v2674_v60 = vpop.f32.mrf.mxu1 }
 0x164   : > { %v1280_v0 = vpop.f32.mrf.mxu0 }
 0x165   : > { %v1752_v2 = vadd.f32 %v3226_v57, %v1711_v1  ;;  %v1413_v3 = vadd.f32 %v1280_v0, %v3085_v16  ;;  %v1587_v6 = vpop.f32.mrf.mxu1 }
 0x166   : > { %v2601_v10 = vpop.f32.mrf.mxu0 }
 0x167   : > { %vm1786_vm5 = vcmp.gt.f32.partialorder %v1752_v2, 0.0  ;;  %v1820_v11 = vmul.f32 0.2, %v1752_v2  ;;  %v1712_v13 = vadd.f32 %v1579_v45, %v1413_v3  ;;  %v2675_v14 = vpop.f32.mrf.mxu1 }
 0x168   : > { %v1285_v17 = vpop.f32.mrf.mxu0 }
 0x169   : > { %v1854_v21 = vsel %vm1786_vm5, %v1752_v2, %v1820_v11  ;;  %v1753_v16 = vadd.f32 %v3226_v57, %v1712_v13  ;;  %v1414_v23 = vadd.f32 %v1285_v17, %v3091_v26  ;;  %v1592_v27 = vpop.f32.mrf.mxu1 }
 0x16a   : > { %v1895_v30 = vmul.f32 %v3233_v8, %v1854_v21  ;;  %v2604_v31 = vpop.f32.mrf.mxu0 }
 0x16b   : > { %vm1787_vm6 = vcmp.gt.f32.partialorder %v1753_v16, 0.0  ;;  %v1821_v32 = vmul.f32 0.2, %v1753_v16  ;;  %v1713_v36 = vadd.f32 %v1584_v54, %v1414_v23  ;;  %v2678_v37 = vpop.f32.mrf.mxu1 }
 0x16c   : > { %v1936_v38 = vadd.f32 %v3239_v22, %v1895_v30  ;;  %v1288_v42 = vpop.f32.mrf.mxu0 }
 0x16d   : > { %v1855_v45 = vsel %vm1787_vm6, %v1753_v16, %v1821_v32  ;;  %v1754_v26 = vadd.f32 %v3226_v57, %v1713_v36  ;;  %v1415_v46 = vadd.f32 %v1288_v42, %v3098_v34  ;;  %v1595_v50 = vpop.f32.mrf.mxu1 }
 0x16e   : > { %v2350_v51 = vpack.c.bf16 %v1936_v38, %v1936_v38  ;;  %v1896_v53 = vmul.f32 %v3233_v8, %v1855_v45  ;;  %v2605_v54 = vpop.f32.mrf.mxu0 }
 0x16f   : > { %vm1788_vm8 = vcmp.gt.f32.partialorder %v1754_v26, 0.0  ;;  %v1822_v58 = vmul.f32 0.2, %v1754_v26  ;;  %v1714_v1 = vadd.f32 %v1587_v6, %v1415_v46  ;;  %v2679_v60 = vpop.f32.mrf.mxu1 }
 0x170   : > { %2107 = vst.msk [vmem:[%s3248_s16] sm:$0xf] %vm2106_vm7, %v2350_v51  ;;  %v1937_v0 = vadd.f32 %v3239_v22, %v1896_v53  ;;  %v1293_v2 = vpop.f32.mrf.mxu0 }
 0x171   : > { %v1856_v3 = vsel %vm1788_vm8, %v1754_v26, %v1822_v58  ;;  %v1755_v10 = vadd.f32 %v3226_v57, %v1714_v1  ;;  %v1416_v34 = vadd.f32 %v1293_v2, %v3104_v44  ;;  %v1600_v11 = vpop.f32.mrf.mxu1 }
 0x172   : > { %v2351_v13 = vpack.c.bf16 %v1937_v0, %v1937_v0  ;;  %v1897_v14 = vmul.f32 %v3233_v8, %v1856_v3  ;;  %v2608_v17 = vpop.f32.mrf.mxu0 }
 0x173   : > { %vm1789_vm9 = vcmp.gt.f32.partialorder %v1755_v10, 0.0  ;;  %v1823_v21 = vmul.f32 0.2, %v1755_v10  ;;  %v1715_v6 = vadd.f32 %v1592_v27, %v1416_v34  ;;  %v2682_v16 = vpop.f32.mrf.mxu1 }
 0x174   : > { %2108 = vst.msk [vmem:[%s3248_s16 + $0x4] sm:$0xf] %vm2106_vm7, %v2351_v13  ;;  %v1938_v23 = vadd.f32 %v3239_v22, %v1897_v14  ;;  %v1296_v30 = vpop.f32.mrf.mxu0 }
 0x175   : > { %v1857_v31 = vsel %vm1789_vm9, %v1755_v10, %v1823_v21  ;;  %v1756_v32 = vadd.f32 %v3226_v57, %v1715_v6  ;;  %v1417_v44 = vadd.f32 %v1296_v30, %v3111_v52  ;;  %v1603_v36 = vpop.f32.mrf.mxu1 }
 0x176   : > { %v2352_v37 = vpack.c.bf16 %v1938_v23, %v1938_v23  ;;  %v1898_v38 = vmul.f32 %v3233_v8, %v1857_v31  ;;  %v2609_v42 = vpop.f32.mrf.mxu0 }
 0x177   : > { %vm1790_vm10 = vcmp.gt.f32.partialorder %v1756_v32, 0.0  ;;  %v1824_v45 = vmul.f32 0.2, %v1756_v32  ;;  %v1716_v27 = vadd.f32 %v1595_v50, %v1417_v44  ;;  %v2683_v26 = vpop.f32.mrf.mxu1 }
 0x178   : > { %2109 = vst.msk [vmem:[%s3248_s16 + $0x8] sm:$0xf] %vm2106_vm7, %v2352_v37  ;;  %v1939_v46 = vadd.f32 %v3239_v22, %v1898_v38  ;;  %v1301_v51 = vpop.f32.mrf.mxu0 }
 0x179   : > { %v1858_v53 = vsel %vm1790_vm10, %v1756_v32, %v1824_v45  ;;  %v1757_v54 = vadd.f32 %v3226_v57, %v1716_v27  ;;  %v1418_v52 = vadd.f32 %v1301_v51, %v3117_v62  ;;  %v1608_v58 = vpop.f32.mrf.mxu1 }
 0x17a   : > { %v2353_v1 = vpack.c.bf16 %v1939_v46, %v1939_v46  ;;  %v1899_v60 = vmul.f32 %v3233_v8, %v1858_v53  ;;  %v2612_v0 = vpop.f32.mrf.mxu0 }
 0x17b   : > { %vm1791_vm11 = vcmp.gt.f32.partialorder %v1757_v54, 0.0  ;;  %v1825_v2 = vmul.f32 0.2, %v1757_v54  ;;  %v1717_v50 = vadd.f32 %v1600_v11, %v1418_v52  ;;  %v2686_v3 = vpop.f32.mrf.mxu1 }
 0x17c   : > { %2110 = vst.msk [vmem:[%s3248_s16 + $0xc] sm:$0xf] %vm2106_vm7, %v2353_v1  ;;  %v1940_v10 = vadd.f32 %v3239_v22, %v1899_v60  ;;  %v1304_v34 = vpop.f32.mrf.mxu0 }
 0x17d   : > { %v1859_v13 = vsel %vm1791_vm11, %v1757_v54, %v1825_v2  ;;  %v1758_v14 = vadd.f32 %v3226_v57, %v1717_v50  ;;  %v1419_v62 = vadd.f32 %v1304_v34, %v3124_v7  ;;  %v1611_v17 = vpop.f32.mrf.mxu1 }
 0x17e   : > { %v2354_v21 = vpack.c.bf16 %v1940_v10, %v1940_v10  ;;  %v1900_v6 = vmul.f32 %v3233_v8, %v1859_v13  ;;  %v2613_v16 = vpop.f32.mrf.mxu0 }
 0x17f   : > { %vm1792_vm12 = vcmp.gt.f32.partialorder %v1758_v14, 0.0  ;;  %v1826_v23 = vmul.f32 0.2, %v1758_v14  ;;  %v1718_v11 = vadd.f32 %v1603_v36, %v1419_v62  ;;  %v2687_v30 = vpop.f32.mrf.mxu1 }
 0x180   : > { %2111 = vst.msk [vmem:[%s3248_s16 + $0x10] sm:$0xf] %vm2106_vm7, %v2354_v21  ;;  %v1941_v31 = vadd.f32 %v3239_v22, %v1900_v6  ;;  %v1309_v32 = vpop.f32.mrf.mxu0 }
 0x181   : > { %v1860_v44 = vsel %vm1792_vm12, %v1758_v14, %v1826_v23  ;;  %v1759_v37 = vadd.f32 %v3226_v57, %v1718_v11  ;;  %v1420_v7 = vadd.f32 %v1309_v32, %v3130_v19  ;;  %v1616_v38 = vpop.f32.mrf.mxu1 }
 0x182   : > { %v2355_v42 = vpack.c.bf16 %v1941_v31, %v1941_v31  ;;  %v1901_v45 = vmul.f32 %v3233_v8, %v1860_v44  ;;  %v2616_v27 = vpop.f32.mrf.mxu0 }
 0x183   : > { %vm1793_vm13 = vcmp.gt.f32.partialorder %v1759_v37, 0.0  ;;  %v1827_v26 = vmul.f32 0.2, %v1759_v37  ;;  %v1719_v36 = vadd.f32 %v1608_v58, %v1420_v7  ;;  %v2690_v46 = vpop.f32.mrf.mxu1 }
 0x184   : > { %2112 = vst.msk [vmem:[%s3248_s16 + $0x14] sm:$0xf] %vm2106_vm7, %v2355_v42  ;;  %v1942_v51 = vadd.f32 %v3239_v22, %v1901_v45  ;;  %v1312_v53 = vpop.f32.mrf.mxu0 }
 0x185   : > { %v1861_v54 = vsel %vm1793_vm13, %v1759_v37, %v1827_v26  ;;  %v1760_v52 = vadd.f32 %v3226_v57, %v1719_v36  ;;  %v1421_v19 = vadd.f32 %v1312_v53, %v3137_v28  ;;  %v1619_v1 = vpop.f32.mrf.mxu1 }
 0x186   : > { %v2356_v60 = vpack.c.bf16 %v1942_v51, %v1942_v51  ;;  %v1902_v0 = vmul.f32 %v3233_v8, %v1861_v54  ;;  %v2617_v2 = vpop.f32.mrf.mxu0 }
 0x187   : > { %vm1794_vm14 = vcmp.gt.f32.partialorder %v1760_v52, 0.0  ;;  %v1828_v50 = vmul.f32 0.2, %v1760_v52  ;;  %v1720_v58 = vadd.f32 %v1611_v17, %v1421_v19  ;;  %v2691_v3 = vpop.f32.mrf.mxu1 }
 0x188   : > { %2113 = vst.msk [vmem:[%s3248_s16 + $0x18] sm:$0xf] %vm2106_vm7, %v2356_v60  ;;  %v1943_v10 = vadd.f32 %v3239_v22, %v1902_v0  ;;  %v1317_v34 = vpop.f32.mrf.mxu0 }
 0x189   : > { %v1862_v13 = vsel %vm1794_vm14, %v1760_v52, %v1828_v50  ;;  %v1761_v14 = vadd.f32 %v3226_v57, %v1720_v58  ;;  %v1422_v28 = vadd.f32 %v1317_v34, %v3143_v39  ;;  %v1624_v62 = vpop.f32.mrf.mxu1 }
 0x18a   : > { %v2357_v21 = vpack.c.bf16 %v1943_v10, %v1943_v10  ;;  %v1903_v6 = vmul.f32 %v3233_v8, %v1862_v13  ;;  %v2620_v16 = vpop.f32.mrf.mxu0 }
 0x18b   : > { %vm1795_vm15 = vcmp.gt.f32.partialorder %v1761_v14, 0.0  ;;  %v1829_v23 = vmul.f32 0.2, %v1761_v14  ;;  %v1721_v17 = vadd.f32 %v1616_v38, %v1422_v28  ;;  %v2694_v11 = vpop.f32.mrf.mxu1 }
 0x18c   : > { %2114 = vst.msk [vmem:[%s3248_s16 + $0x1c] sm:$0xf] %vm2106_vm7, %v2357_v21  ;;  %v1944_v30 = vadd.f32 %v3239_v22, %v1903_v6  ;;  %v1320_v31 = vpop.f32.mrf.mxu0 }
 0x18d   : > { %v1863_v32 = vsel %vm1795_vm15, %v1761_v14, %v1829_v23  ;;  %v1762_v44 = vadd.f32 %v3226_v57, %v1721_v17  ;;  %v1423_v39 = vadd.f32 %v1320_v31, %v3150_v48  ;;  %v1627_v37 = vpop.f32.mrf.mxu1 }
 0x18e   : > { %v2358_v7 = vpack.c.bf16 %v1944_v30, %v1944_v30  ;;  %v1904_v42 = vmul.f32 %v3233_v8, %v1863_v32  ;;  %v2621_v45 = vpop.f32.mrf.mxu0 }
 0x18f   : > { %vm1796_vm0 = vcmp.gt.f32.partialorder %v1762_v44, 0.0  ;;  %v1830_v27 = vmul.f32 0.2, %v1762_v44  ;;  %v1722_v38 = vadd.f32 %v1619_v1, %v1423_v39  ;;  %v2695_v26 = vpop.f32.mrf.mxu1 }
 0x190   : > { %2115 = vst.msk [vmem:[%s3248_s16 + $0x20] sm:$0xf] %vm2106_vm7, %v2358_v7  ;;  %v1945_v36 = vadd.f32 %v3239_v22, %v1904_v42  ;;  %v1325_v46 = vpop.f32.mrf.mxu0 }
 0x191   : > { %v1864_v51 = vsel %vm1796_vm0, %v1762_v44, %v1830_v27  ;;  %v1763_v53 = vadd.f32 %v3226_v57, %v1722_v38  ;;  %v1424_v48 = vadd.f32 %v1325_v46, %v3156_v59  ;;  %v1632_v54 = vpop.f32.mrf.mxu1 }
 0x192   : > { %v2359_v52 = vpack.c.bf16 %v1945_v36, %v1945_v36  ;;  %v1905_v19 = vmul.f32 %v3233_v8, %v1864_v51  ;;  %v2624_v60 = vpop.f32.mrf.mxu0 }
 0x193   : > { %vm1797_vm1 = vcmp.gt.f32.partialorder %v1763_v53, 0.0  ;;  %v1831_v0 = vmul.f32 0.2, %v1763_v53  ;;  %v1723_v1 = vadd.f32 %v1624_v62, %v1424_v48  ;;  %v2698_v2 = vpop.f32.mrf.mxu1 }
 0x194   : > { %2116 = vst.msk [vmem:[%s3248_s16 + $0x24] sm:$0xf] %vm2106_vm7, %v2359_v52  ;;  %v1946_v50 = vadd.f32 %v3239_v22, %v1905_v19  ;;  %v1328_v58 = vpop.f32.mrf.mxu0 }
 0x195   : > { %v1865_v3 = vsel %vm1797_vm1, %v1763_v53, %v1831_v0  ;;  %v1764_v10 = vadd.f32 %v3226_v57, %v1723_v1  ;;  %v1425_v59 = vadd.f32 %v1328_v58, %v3163_v5  ;;  %v1635_v34 = vpop.f32.mrf.mxu1 }
 0x196   : > { %v2360_v13 = vpack.c.bf16 %v1946_v50, %v1946_v50  ;;  %v1906_v14 = vmul.f32 %v3233_v8, %v1865_v3  ;;  %v2625_v28 = vpop.f32.mrf.mxu0 }
 0x197   : > { %vm1798_vm2 = vcmp.gt.f32.partialorder %v1764_v10, 0.0  ;;  %v1832_v21 = vmul.f32 0.2, %v1764_v10  ;;  %v1724_v62 = vadd.f32 %v1627_v37, %v1425_v59  ;;  %v2699_v6 = vpop.f32.mrf.mxu1 }
 0x198   : > { %2117 = vst.msk [vmem:[%s3248_s16 + $0x28] sm:$0xf] %vm2106_vm7, %v2360_v13  ;;  %v1947_v16 = vadd.f32 %v3239_v22, %v1906_v14  ;;  %v1333_v23 = vpop.f32.mrf.mxu0 }
 0x199   : > { %v1866_v17 = vsel %vm1798_vm2, %v1764_v10, %v1832_v21  ;;  %v1765_v11 = vadd.f32 %v3226_v57, %v1724_v62  ;;  %v1426_v5 = vadd.f32 %v1333_v23, %v3169_v18  ;;  %v1640_v30 = vpop.f32.mrf.mxu1 }
 0x19a   : > { %v2361_v31 = vpack.c.bf16 %v1947_v16, %v1947_v16  ;;  %v1907_v32 = vmul.f32 %v3233_v8, %v1866_v17  ;;  %v2628_v44 = vpop.f32.mrf.mxu0 }
 0x19b   : > { %vm1799_vm3 = vcmp.gt.f32.partialorder %v1765_v11, 0.0  ;;  %v1833_v39 = vmul.f32 0.2, %v1765_v11  ;;  %v1725_v37 = vadd.f32 %v1632_v54, %v1426_v5  ;;  %v2702_v7 = vpop.f32.mrf.mxu1 }
 0x19c   : > { %2118 = vst.msk [vmem:[%s3248_s16 + $0x2c] sm:$0xf] %vm2106_vm7, %v2361_v31  ;;  %v1948_v42 = vadd.f32 %v3239_v22, %v1907_v32  ;;  %v1336_v45 = vpop.f32.mrf.mxu0 }
 0x19d   : > { %v1867_v27 = vsel %vm1799_vm3, %v1765_v11, %v1833_v39  ;;  %v1766_v38 = vadd.f32 %v3226_v57, %v1725_v37  ;;  %v1427_v18 = vadd.f32 %v1336_v45, %v3176_v29  ;;  %v1643_v26 = vpop.f32.mrf.mxu1 }
 0x19e   : > { %v2362_v36 = vpack.c.bf16 %v1948_v42, %v1948_v42  ;;  %v1908_v46 = vmul.f32 %v3233_v8, %v1867_v27  ;;  %v2629_v51 = vpop.f32.mrf.mxu0 }
 0x19f   : > { %vm1800_vm4 = vcmp.gt.f32.partialorder %v1766_v38, 0.0  ;;  %v1834_v53 = vmul.f32 0.2, %v1766_v38  ;;  %v1726_v48 = vadd.f32 %v1635_v34, %v1427_v18  ;;  %v2703_v54 = vpop.f32.mrf.mxu1 }
 0x1a0   : > { %2119 = vst.msk [vmem:[%s3248_s16 + $0x30] sm:$0xf] %vm2106_vm7, %v2362_v36  ;;  %v1949_v52 = vadd.f32 %v3239_v22, %v1908_v46  ;;  %v1341_v19 = vpop.f32.mrf.mxu0 }
 0x1a1   : > { %v1868_v60 = vsel %vm1800_vm4, %v1766_v38, %v1834_v53  ;;  %v1767_v0 = vadd.f32 %v3226_v57, %v1726_v48  ;;  %v1428_v29 = vadd.f32 %v1341_v19, %v3181_v40  ;;  %v1648_v1 = vpop.f32.mrf.mxu1 }
 0x1a2   : > { %v2363_v2 = vpack.c.bf16 %v1949_v52, %v1949_v52  ;;  %v1909_v50 = vmul.f32 %v3233_v8, %v1868_v60  ;;  %v2632_v58 = vpop.f32.mrf.mxu0 }
 0x1a3   : > { %vm1801_vm5 = vcmp.gt.f32.partialorder %v1767_v0, 0.0  ;;  %v1835_v3 = vmul.f32 0.2, %v1767_v0  ;;  %v1727_v10 = vadd.f32 %v1640_v30, %v1428_v29  ;;  %v2706_v59 = vpop.f32.mrf.mxu1 }
 0x1a4   : > { %2120 = vst.msk [vmem:[%s3248_s16 + $0x34] sm:$0xf] %vm2106_vm7, %v2363_v2  ;;  %v1950_v34 = vadd.f32 %v3239_v22, %v1909_v50  ;;  %v1344_v13 = vpop.f32.mrf.mxu0 }
 0x1a5   : > { %v1869_v14 = vsel %vm1801_vm5, %v1767_v0, %v1835_v3  ;;  %v1768_v28 = vadd.f32 %v3226_v57, %v1727_v10  ;;  %v1429_v40 = vadd.f32 %v1344_v13, %v3186_v49  ;;  %v1651_v21 = vpop.f32.mrf.mxu1 }
 0x1a6   : > { %v2364_v62 = vpack.c.bf16 %v1950_v34, %v1950_v34  ;;  %v1910_v6 = vmul.f32 %v3233_v8, %v1869_v14  ;;  %v2633_v16 = vpop.f32.mrf.mxu0 }
 0x1a7   : > { %vm1802_vm6 = vcmp.gt.f32.partialorder %v1768_v28, 0.0  ;;  %v1836_v23 = vmul.f32 0.2, %v1768_v28  ;;  %v1728_v17 = vadd.f32 %v1643_v26, %v1429_v40  ;;  %v2707_v11 = vpop.f32.mrf.mxu1 }
 0x1a8   : > { %2121 = vst.msk [vmem:[%s3248_s16 + $0x38] sm:$0xf] %vm2106_vm7, %v2364_v62  ;;  %v1951_v5 = vadd.f32 %v3239_v22, %v1910_v6  ;;  %v1349_v30 = vpop.f32.mrf.mxu0 }
 0x1a9   : > { %v1870_v31 = vsel %vm1802_vm6, %v1768_v28, %v1836_v23  ;;  %v1769_v32 = vadd.f32 %v3226_v57, %v1728_v17  ;;  %v1430_v49 = vadd.f32 %v1349_v30, %v3190_v56  ;;  %v1656_v44 = vpop.f32.mrf.mxu1 }
 0x1aa   : > { %v2365_v39 = vpack.c.bf16 %v1951_v5, %v1951_v5  ;;  %v1911_v37 = vmul.f32 %v3233_v8, %v1870_v31  ;;  %v2636_v7 = vpop.f32.mrf.mxu0 }
 0x1ab   : > { %vm1803_vm8 = vcmp.gt.f32.partialorder %v1769_v32, 0.0  ;;  %v1837_v42 = vmul.f32 0.2, %v1769_v32  ;;  %v1729_v45 = vadd.f32 %v1648_v1, %v1430_v49  ;;  %v2710_v27 = vpop.f32.mrf.mxu1 }
 0x1ac   : > { %2122 = vst.msk [vmem:[%s3248_s16 + $0x3c] sm:$0xf] %vm2106_vm7, %v2365_v39  ;;  %v1952_v38 = vadd.f32 %v3239_v22, %v1911_v37  ;;  %v1352_v18 = vpop.f32.mrf.mxu0 }
 0x1ad   : > { %v1871_v26 = vsel %vm1803_vm8, %v1769_v32, %v1837_v42  ;;  %v1770_v36 = vadd.f32 %v3226_v57, %v1729_v45  ;;  %v1431_v56 = vadd.f32 %v1352_v18, %v3192_v61  ;;  %v1659_v46 = vpop.f32.mrf.mxu1 }
 0x1ae   : > { %v2366_v51 = vpack.c.bf16 %v1952_v38, %v1952_v38  ;;  %v1912_v53 = vmul.f32 %v3233_v8, %v1871_v26  ;;  %v2637_v48 = vpop.f32.mrf.mxu0 }
 0x1af   : > { %vm1804_vm9 = vcmp.gt.f32.partialorder %v1770_v36, 0.0  ;;  %v1838_v54 = vmul.f32 0.2, %v1770_v36  ;;  %v1730_v52 = vadd.f32 %v1651_v21, %v1431_v56  ;;  %v2711_v19 = vpop.f32.mrf.mxu1 }
 0x1b0   : > { %2123 = vst.msk [vmem:[%s3248_s16 + $0x40] sm:$0xf] %vm2106_vm7, %v2366_v51  ;;  %v1953_v60 = vadd.f32 %v3239_v22, %v1912_v53  ;;  %v1357_v0 = vpop.f32.mrf.mxu0 }
 0x1b1   : > { %v1872_v29 = vsel %vm1804_vm9, %v1770_v36, %v1838_v54  ;;  %v1771_v1 = vadd.f32 %v3226_v57, %v1730_v52  ;;  %v1432_v61 = vadd.f32 %v1357_v0, %v3194_v4  ;;  %v1664_v2 = vpop.f32.mrf.mxu1 }
 0x1b2   : > { %v2367_v50 = vpack.c.bf16 %v1953_v60, %v1953_v60  ;;  %v1913_v58 = vmul.f32 %v3233_v8, %v1872_v29  ;;  %v2640_v3 = vpop.f32.mrf.mxu0 }
 0x1b3   : > { %vm1805_vm10 = vcmp.gt.f32.partialorder %v1771_v1, 0.0  ;;  %v1839_v10 = vmul.f32 0.2, %v1771_v1  ;;  %v1731_v59 = vadd.f32 %v1656_v44, %v1432_v61  ;;  %v2714_v34 = vpop.f32.mrf.mxu1 }
 0x1b4   : > { %2124 = vst.msk [vmem:[%s3248_s16 + $0x44] sm:$0xf] %vm2106_vm7, %v2367_v50  ;;  %v1954_v13 = vadd.f32 %v3239_v22, %v1913_v58  ;;  %v1360_v14 = vpop.f32.mrf.mxu0 }
 0x1b5   : > { %v1873_v28 = vsel %vm1805_vm10, %v1771_v1, %v1839_v10  ;;  %v1772_v40 = vadd.f32 %v3226_v57, %v1731_v59  ;;  %v1433_v4 = vadd.f32 %v1360_v14, %v3196_v12  ;;  %v1667_v21 = vpop.f32.mrf.mxu1 }
 0x1b6   : > { %v2368_v62 = vpack.c.bf16 %v1954_v13, %v1954_v13  ;;  %v1914_v6 = vmul.f32 %v3233_v8, %v1873_v28  ;;  %v2641_v16 = vpop.f32.mrf.mxu0 }
 0x1b7   : > { %vm1806_vm11 = vcmp.gt.f32.partialorder %v1772_v40, 0.0  ;;  %v1840_v23 = vmul.f32 0.2, %v1772_v40  ;;  %v1732_v17 = vadd.f32 %v1659_v46, %v1433_v4  ;;  %v2715_v11 = vpop.f32.mrf.mxu1 }
 0x1b8   : > { %2125 = vst.msk [vmem:[%s3248_s16 + $0x48] sm:$0xf] %vm2106_vm7, %v2368_v62  ;;  %v1955_v5 = vadd.f32 %v3239_v22, %v1914_v6  ;;  %v1365_v30 = vpop.f32.mrf.mxu0 }
 0x1b9   : > { %v1874_v31 = vsel %vm1806_vm11, %v1772_v40, %v1840_v23  ;;  %v1773_v32 = vadd.f32 %v3226_v57, %v1732_v17  ;;  %v1434_v12 = vadd.f32 %v1365_v30, %v3198_v20  ;;  %v1672_v49 = vpop.f32.mrf.mxu1 }
 0x1ba   : > { %v2369_v44 = vpack.c.bf16 %v1955_v5, %v1955_v5  ;;  %v1915_v39 = vmul.f32 %v3233_v8, %v1874_v31  ;;  %v2644_v37 = vpop.f32.mrf.mxu0 }
 0x1bb   : > { %vm1807_vm12 = vcmp.gt.f32.partialorder %v1773_v32, 0.0  ;;  %v1841_v7 = vmul.f32 0.2, %v1773_v32  ;;  %v1733_v42 = vadd.f32 %v1664_v2, %v1434_v12  ;;  %v2718_v45 = vpop.f32.mrf.mxu1 }
 0x1bc   : > { %2126 = vst.msk [vmem:[%s3248_s16 + $0x4c] sm:$0xf] %vm2106_vm7, %v2369_v44  ;;  %v1956_v27 = vadd.f32 %v3239_v22, %v1915_v39  ;;  %v1368_v38 = vpop.f32.mrf.mxu0 }
 0x1bd   : > { %v1875_v18 = vsel %vm1807_vm12, %v1773_v32, %v1841_v7  ;;  %v1774_v26 = vadd.f32 %v3226_v57, %v1733_v42  ;;  %v1435_v20 = vadd.f32 %v1368_v38, %v3200_v25  ;;  %v1675_v36 = vpop.f32.mrf.mxu1 }
 0x1be   : > { %v2370_v56 = vpack.c.bf16 %v1956_v27, %v1956_v27  ;;  %v1916_v46 = vmul.f32 %v3233_v8, %v1875_v18  ;;  %v2645_v51 = vpop.f32.mrf.mxu0 }
 0x1bf   : > { %vm1808_vm13 = vcmp.gt.f32.partialorder %v1774_v26, 0.0  ;;  %v1842_v53 = vmul.f32 0.2, %v1774_v26  ;;  %v1734_v48 = vadd.f32 %v1667_v21, %v1435_v20  ;;  %v2719_v54 = vpop.f32.mrf.mxu1 }
 0x1c0   : > { %2127 = vst.msk [vmem:[%s3248_s16 + $0x50] sm:$0xf] %vm2106_vm7, %v2370_v56  ;;  %v1957_v52 = vadd.f32 %v3239_v22, %v1916_v46  ;;  %v1373_v19 = vpop.f32.mrf.mxu0 }
 0x1c1   : > { %v1876_v60 = vsel %vm1808_vm13, %v1774_v26, %v1842_v53  ;;  %v1775_v0 = vadd.f32 %v3226_v57, %v1734_v48  ;;  %v1436_v25 = vadd.f32 %v1373_v19, %v3202_v33  ;;  %v1680_v29 = vpop.f32.mrf.mxu1 }
 0x1c2   : > { %v2371_v1 = vpack.c.bf16 %v1957_v52, %v1957_v52  ;;  %v1917_v61 = vmul.f32 %v3233_v8, %v1876_v60  ;;  %v2648_v2 = vpop.f32.mrf.mxu0 }
 0x1c3   : > { %vm1809_vm14 = vcmp.gt.f32.partialorder %v1775_v0, 0.0  ;;  %v1843_v50 = vmul.f32 0.2, %v1775_v0  ;;  %v1735_v58 = vadd.f32 %v1672_v49, %v1436_v25  ;;  %v2722_v3 = vpop.f32.mrf.mxu1 }
 0x1c4   : > { %2128 = vst.msk [vmem:[%s3248_s16 + $0x54] sm:$0xf] %vm2106_vm7, %v2371_v1  ;;  %v1958_v10 = vadd.f32 %v3239_v22, %v1917_v61  ;;  %v1376_v59 = vpop.f32.mrf.mxu0 }
 0x1c5   : > { %v1877_v34 = vsel %vm1809_vm14, %v1775_v0, %v1843_v50  ;;  %v1776_v13 = vadd.f32 %v3226_v57, %v1735_v58  ;;  %v1437_v33 = vadd.f32 %v1376_v59, %v3204_v41  ;;  %v1683_v14 = vpop.f32.mrf.mxu1 }
 0x1c6   : > { %v2372_v28 = vpack.c.bf16 %v1958_v10, %v1958_v10  ;;  %v1918_v40 = vmul.f32 %v3233_v8, %v1877_v34  ;;  %v2649_v4 = vpop.f32.mrf.mxu0 }
 0x1c7   : > { %vm1810_vm15 = vcmp.gt.f32.partialorder %v1776_v13, 0.0  ;;  %v1844_v21 = vmul.f32 0.2, %v1776_v13  ;;  %v1736_v62 = vadd.f32 %v1675_v36, %v1437_v33  ;;  %v2723_v6 = vpop.f32.mrf.mxu1 }
 0x1c8   : > { %2129 = vst.msk [vmem:[%s3248_s16 + $0x58] sm:$0xf] %vm2106_vm7, %v2372_v28  ;;  %v1959_v16 = vadd.f32 %v3239_v22, %v1918_v40  ;;  %v1381_v23 = vpop.f32.mrf.mxu0 }
 0x1c9   : > { %v1878_v17 = vsel %vm1810_vm15, %v1776_v13, %v1844_v21  ;;  %v1777_v11 = vadd.f32 %v3226_v57, %v1736_v62  ;;  %v1438_v41 = vadd.f32 %v1381_v23, %v3206_v47  ;;  %v1688_v5 = vpop.f32.mrf.mxu1 }
 0x1ca   : > { %v2373_v30 = vpack.c.bf16 %v1959_v16, %v1959_v16  ;;  %v1919_v31 = vmul.f32 %v3233_v8, %v1878_v17  ;;  %v2652_v32 = vpop.f32.mrf.mxu0 }
 0x1cb   : > { %vm1811_vm0 = vcmp.gt.f32.partialorder %v1777_v11, 0.0  ;;  %v1845_v12 = vmul.f32 0.2, %v1777_v11  ;;  %v1737_v49 = vadd.f32 %v1680_v29, %v1438_v41  ;;  %v2726_v44 = vpop.f32.mrf.mxu1 }
 0x1cc   : > { %2130 = vst.msk [vmem:[%s3248_s16 + $0x5c] sm:$0xf] %vm2106_vm7, %v2373_v30  ;;  %v1960_v39 = vadd.f32 %v3239_v22, %v1919_v31  ;;  %v1384_v37 = vpop.f32.mrf.mxu0 }
 0x1cd   : > { %v1879_v7 = vsel %vm1811_vm0, %v1777_v11, %v1845_v12  ;;  %v1778_v42 = vadd.f32 %v3226_v57, %v1737_v49  ;;  %v1439_v47 = vadd.f32 %v1384_v37, %v3208_v55  ;;  %v1691_v45 = vpop.f32.mrf.mxu1 }
 0x1ce   : > { %v2374_v27 = vpack.c.bf16 %v1960_v39, %v1960_v39  ;;  %v1920_v38 = vmul.f32 %v3233_v8, %v1879_v7  ;;  %v2653_v18 = vpop.f32.mrf.mxu0 }
 0x1cf   : > { %vm1812_vm1 = vcmp.gt.f32.partialorder %v1778_v42, 0.0  ;;  %v1846_v26 = vmul.f32 0.2, %v1778_v42  ;;  %v1738_v20 = vadd.f32 %v1683_v14, %v1439_v47  ;;  %v2727_v36 = vpop.f32.mrf.mxu1 }
 0x1d0   : > { %2131 = vst.msk [vmem:[%s3248_s16 + $0x60] sm:$0xf] %vm2106_vm7, %v2374_v27  ;;  %v1961_v56 = vadd.f32 %v3239_v22, %v1920_v38  ;;  %v1389_v46 = vpop.f32.mrf.mxu0 }
 0x1d1   : > { %v1880_v51 = vsel %vm1812_vm1, %v1778_v42, %v1846_v26  ;;  %v1779_v53 = vadd.f32 %v3226_v57, %v1738_v20  ;;  %v1440_v55 = vadd.f32 %v1389_v46, %v3210_v63  ;;  %v1696_v48 = vpop.f32.mrf.mxu1 }
 0x1d2   : > { %v2375_v54 = vpack.c.bf16 %v1961_v56, %v1961_v56  ;;  %v1921_v52 = vmul.f32 %v3233_v8, %v1880_v51  ;;  %v2656_v19 = vpop.f32.mrf.mxu0 }
 0x1d3   : > { %vm1813_vm2 = vcmp.gt.f32.partialorder %v1779_v53, 0.0  ;;  %v1847_v60 = vmul.f32 0.2, %v1779_v53  ;;  %v1739_v0 = vadd.f32 %v1688_v5, %v1440_v55  ;;  %v2730_v25 = vpop.f32.mrf.mxu1 }
 0x1d4   : > { %2132 = vst.msk [vmem:[%s3248_s16 + $0x64] sm:$0xf] %vm2106_vm7, %v2375_v54  ;;  %v1962_v29 = vadd.f32 %v3239_v22, %v1921_v52  ;;  %v1392_v1 = vpop.f32.mrf.mxu0 }
 0x1d5   : > { %v1881_v61 = vsel %vm1813_vm2, %v1779_v53, %v1847_v60  ;;  %v1780_v2 = vadd.f32 %v3226_v57, %v1739_v0  ;;  %v1441_v63 = vadd.f32 %v1392_v1, %v3212_v9  ;;  %v1699_v50 = vpop.f32.mrf.mxu1 }
 0x1d6   : > { %v2376_v58 = vpack.c.bf16 %v1962_v29, %v1962_v29  ;;  %v1922_v3 = vmul.f32 %v3233_v8, %v1881_v61  ;;  %v2657_v10 = vpop.f32.mrf.mxu0 }
 0x1d7   : > { %vm1814_vm3 = vcmp.gt.f32.partialorder %v1780_v2, 0.0  ;;  %v1848_v59 = vmul.f32 0.2, %v1780_v2  ;;  %v1740_v34 = vadd.f32 %v1691_v45, %v1441_v63  ;;  %v2731_v13 = vpop.f32.mrf.mxu1 }
 0x1d8   : > { %2133 = vst.msk [vmem:[%s3248_s16 + $0x68] sm:$0xf] %vm2106_vm7, %v2376_v58  ;;  %v1963_v33 = vadd.f32 %v3239_v22, %v1922_v3  ;;  %v1397_v14 = vpop.f32.mrf.mxu0 }
 0x1d9   : > { %v1882_v28 = vsel %vm1814_vm3, %v1780_v2, %v1848_v59  ;;  %v1781_v40 = vadd.f32 %v3226_v57, %v1740_v34  ;;  %v1442_v9 = vadd.f32 %v1397_v14, %v3214_v15  ;;  %v1704_v4 = vpop.f32.mrf.mxu1 }
 0x1da   : > { %v2377_v21 = vpack.c.bf16 %v1963_v33, %v1963_v33  ;;  %v1923_v62 = vmul.f32 %v3233_v8, %v1882_v28  ;;  %v2660_v6 = vpop.f32.mrf.mxu0 }
 0x1db   : > { %vm1815_vm4 = vcmp.gt.f32.partialorder %v1781_v40, 0.0  ;;  %v1849_v16 = vmul.f32 0.2, %v1781_v40  ;;  %v1741_v23 = vadd.f32 %v1696_v48, %v1442_v9  ;;  %v2734_v17 = vpop.f32.mrf.mxu1 }
 0x1dc   : > { %2134 = vst.msk [vmem:[%s3248_s16 + $0x6c] sm:$0xf] %vm2106_vm7, %v2377_v21  ;;  %v1964_v11 = vadd.f32 %v3239_v22, %v1923_v62  ;;  %v1400_v41 = vpop.f32.mrf.mxu0 }
 0x1dd   : > { %v1883_v5 = vsel %vm1815_vm4, %v1781_v40, %v1849_v16  ;;  %v1782_v30 = vadd.f32 %v3226_v57, %v1741_v23  ;;  %v1443_v15 = vadd.f32 %v1400_v41, %v3216_v24  ;;  %v1707_v31 = vpop.f32.mrf.mxu1 }
 0x1de   : > { %v2378_v32 = vpack.c.bf16 %v1964_v11, %v1964_v11  ;;  %v1924_v12 = vmul.f32 %v3233_v8, %v1883_v5  ;;  %v2661_v49 = vpop.f32.mrf.mxu0 }
 0x1df   : > { %vm1816_vm5 = vcmp.gt.f32.partialorder %v1782_v30, 0.0  ;;  %v1850_v44 = vmul.f32 0.2, %v1782_v30  ;;  %v1742_v39 = vadd.f32 %v1699_v50, %v1443_v15  ;;  %v2735_v37 = vpop.f32.mrf.mxu1 }
 0x1e0   : > { %2135 = vst.msk [vmem:[%s3248_s16 + $0x70] sm:$0xf] %vm2106_vm7, %v2378_v32  ;;  %v1965_v7 = vadd.f32 %v3239_v22, %v1924_v12  ;;  %v1405_v42 = vpop.f32.mrf.mxu0 }
 0x1e1   : > { %v1884_v47 = vsel %vm1816_vm5, %v1782_v30, %v1850_v44  ;;  %v1783_v45 = vadd.f32 %v3226_v57, %v1742_v39  ;;  %v1444_v24 = vadd.f32 %v1405_v42, %v3218_v35 }
 0x1e2   : > { %v2379_v27 = vpack.c.bf16 %v1965_v7, %v1965_v7  ;;  %v1925_v38 = vmul.f32 %v3233_v8, %v1884_v47  ;;  %v2664_v18 = vpop.f32.mrf.mxu0 }
 0x1e3   : > { %vm1817_vm6 = vcmp.gt.f32.partialorder %v1783_v45, 0.0  ;;  %v1851_v26 = vmul.f32 0.2, %v1783_v45  ;;  %v1743_v20 = vadd.f32 %v1704_v4, %v1444_v24 }
 0x1e4   : > { %2136 = vst.msk [vmem:[%s3248_s16 + $0x74] sm:$0xf] %vm2106_vm7, %v2379_v27  ;;  %v1966_v36 = vadd.f32 %v3239_v22, %v1925_v38  ;;  %v1408_v56 = vpop.f32.mrf.mxu0 }
 0x1e5   : > { %v1885_v46 = vsel %vm1817_vm6, %v1783_v45, %v1851_v26  ;;  %v1784_v51 = vadd.f32 %v3226_v57, %v1743_v20  ;;  %v1445_v53 = vadd.f32 %v1408_v56, %v3220_v43 }
 0x1e6   : > { %v2380_v35 = vpack.c.bf16 %v1966_v36, %v1966_v36  ;;  %v1926_v55 = vmul.f32 %v3233_v8, %v1885_v46  ;;  %v2665_v48 = vpop.f32.mrf.mxu0 }
 0x1e7   : > { %vm1818_vm8 = vcmp.gt.f32.partialorder %v1784_v51, 0.0  ;;  %v1852_v54 = vmul.f32 0.2, %v1784_v51  ;;  %v1744_v52 = vadd.f32 %v1707_v31, %v1445_v53 }
 0x1e8   : > { %2137 = vst.msk [vmem:[%s3248_s16 + $0x78] sm:$0xf] %vm2106_vm7, %v2380_v35  ;;  %v1967_v19 = vadd.f32 %v3239_v22, %v1926_v55 }
 0x1e9   : > { %v1886_v60 = vsel %vm1818_vm8, %v1784_v51, %v1852_v54  ;;  %v1785_v0 = vadd.f32 %v3226_v57, %v1744_v52 }
 0x1ea   : > { %v2381_v25 = vpack.c.bf16 %v1967_v19, %v1967_v19  ;;  %v1927_v29 = vmul.f32 %v3233_v8, %v1886_v60 }
 0x1eb   : > { %vm1819_vm9 = vcmp.gt.f32.partialorder %v1785_v0, 0.0  ;;  %v1853_v43 = vmul.f32 0.2, %v1785_v0 }
 0x1ec   : > { %2138 = vst.msk [vmem:[%s3248_s16 + $0x7c] sm:$0xf] %vm2106_vm7, %v2381_v25  ;;  %v1968_v1 = vadd.f32 %v3239_v22, %v1927_v29 }
 0x1ed   : > { %v1887_v61 = vsel %vm1819_vm9, %v1785_v0, %v1853_v43 }
 0x1ee   : > { %v2382_v2 = vpack.c.bf16 %v1968_v1, %v1968_v1  ;;  %v1928_v63 = vmul.f32 %v3233_v8, %v1887_v61 }
 0x1f0   : > { %2139 = vst.msk [vmem:[%s3248_s16 + $0x80] sm:$0xf] %vm2106_vm7, %v2382_v2  ;;  %v1969_v50 = vadd.f32 %v3239_v22, %v1928_v63 }
 0x1f2   : > { %v2383_v58 = vpack.c.bf16 %v1969_v50, %v1969_v50 }
 0x1f4   : > { %2140 = vst.msk [vmem:[%s3248_s16 + $0x84] sm:$0xf] %vm2106_vm7, %v2383_v58 }
 0x1f5 PF: > { %s15_s18 = sadd.s32 1, %s2791_s18  }
 0x1f6   : > { %p12_p4 = scmp.ge.s32.totalorder %s15_s18, 4  }
 0x1f8   :  { %14 = sbr.rel (!%p12_p4) target bundleno = 1 (0x1), region = 73 }

// kernel: discriminator_forward.6
= control target key start
LH: loop header
LB: loop body
LE: loop exit
PB: predicated region body
PF: predicated region fallthrough
CT: control target
= control target key end

     0   :  { %s1391_s18 = smov 0   ;;  %s1678_s0 = inlined_call_operand.vmem [shape: bf16[2,82,64], index: 0, kind: input, shape index: {}]   ;;  %s1679_s1 = inlined_call_operand.vmem [shape: bf16[4,64,32], index: 1, kind: input, shape index: {}]   ;;  %s1680_s2 = inlined_call_operand.vmem [shape: f32[1,32], index: 2, kind: input, shape index: {}]   ;;  %s1681_s3 = inlined_call_operand.vmem [shape: f32[1,32], index: 3, kind: input, shape index: {}]   ;;  %s1682_s4 = inlined_call_operand.vmem [shape: f32[1,32], index: 4, kind: input, shape index: {}]   ;;  %s1683_s5 = inlined_call_operand.vmem [shape: bf16[2,72,32], index: 5, kind: output, shape index: {}]  }
   0x1 LB: > { %s1061_s19 = sadd.s32 4294967295, %s1357_s18   ;;  %p1065_p0 = scmp.ge.s32.totalorder %s1357_s18, 1  ;;  %s1357_s18 = sphi %s1391_s18, %s15_s18  }
   0x2   : > { %p187_p1 = scmp.lt.s32.totalorder %s1357_s18, 3 }
   0x4   : > { %p188_p2 = pnand %p1065_p0, %p187_p1 }
   0x5   : > { %p215_p3 = scmp.lt.s32.totalorder (!%p188_p2), %s1061_s19, 1 }
   0x6   : > { %191 = sbr.rel (%p188_p2) target bundleno = 309 (0x135), region = 40 }
   0xb   : > { %v1323_v0 = vld [vmem:[%s1679_s1 + $0x38] sm:$0xff]   ;;  %v1359_v1 = vmov 0.0   ;;  %v1325_v3 = vld [vmem:[%s1679_s1 + $0x30] sm:$0xff]   ;;  %vm1360_vm0 = vmmov 0   ;;  %s1685_s19 = smov (!%p215_p3, %s1061_s19), 1  ;;  %v1327_v5 = vld [vmem:[%s1679_s1 + $0x28] sm:$0xff]  }
   0xc   : > { %1199 = vmatprep.subr.bf16.mxu0 %v1359_v1  ;;  %1227 = vmatprep.subr.bf16.mxu1 %v1359_v1  ;;  %v1324_v2 = vld [vmem:[%s1679_s1 + $0x18] sm:$0xff]   ;;  %v1326_v4 = vld [vmem:[%s1679_s1 + $0x10] sm:$0xff]   ;;  %s1311_s30 = smul.u32 44, %s1685_s19  ;;  %v1328_v6 = vld [vmem:[%s1679_s1 + $0x8] sm:$0xff]   ;;  %vm342_vm1 = vcmask 523264   ;;  %vm754_vm3 = vcmask 1046528  }
   0xd   : > { %1200 = vmatpush3.bf16.msra.mxu0 %v1323_v0  ;;  %1207 = vmatprep.mubr.msk.bf16.mxu0 %vm1360_vm0, %v1359_v1  ;;  %v1329_v7 = vld [vmem:[%s1679_s1 + $0x20] sm:$0xff]   ;;  %vm278_vm2 = vsmask.f32 7424  ;;  %v1334_v17 = vld [vmem:[%s1679_s1 + $0x78] sm:$0xff]   ;;  %v1336_v24 = vld [vmem:[%s1679_s1 + $0x50] sm:$0xff]   ;;  %vm996_vm6 = vcmask 257024  }
   0xe   : > { %1228 = vmatpush3.bf16.msra.mxu1 %v1324_v2  ;;  %1201 = vmatprep.subr.bf16.mxu0 %v1359_v1  ;;  %s1436_s12 = scalar_lea.vmem %s1678_s0, %s1311_s30  ;;  %v1330_v10 = vld [vmem:[%s1679_s1] sm:$0xff]   ;;  %v1333_v20 = vld [vmem:[%s1679_s1 + $0x58] sm:$0xff]   ;;  %v1337_v25 = vld [vmem:[%s1679_s1 + $0x70] sm:$0xff]  }
   0xf   : > { %1229 = vmatprep.subr.bf16.mxu1 %v1359_v1  ;;  %1235 = vmatprep.mubr.msk.bf16.mxu1 %vm1360_vm0, %v1359_v1  ;;  %v1331_v8 = vld [vmem:[%s1436_s12] sm:$0xff]   ;;  %v1332_v9 = vld [vmem:[%s1436_s12 + $0x8] sm:$0xff]   ;;  %v1446_v14 = vld [vmem:[%s1436_s12 + $0x10] sm:$0xff]  }
  0x10   : > { %v280_v11 = vshrl.u32 %v1331_v8, 16  ;;  %v282_v12 = vshll.u32 %v1331_v8, 16  ;;  %v287_v13 = vshll.u32 %v1332_v9, 16  ;;  %v295_v18 = vshll.u32 %v1446_v14, 16  ;;  %v1338_v26 = vld [vmem:[%s1436_s12 + $0x18] sm:$0xff]   ;;  %v1339_v29 = vld [vmem:[%s1679_s1 + $0x48] sm:$0xff]  }
  0x11   : > { %1202 = vmatpush3.bf16.msra.mxu0 %v1325_v3  ;;  %v291_v21 = vshrl.u32 %v1332_v9, 16  ;;  %v299_v28 = vshrl.u32 %v1446_v14, 16  ;;  %v303_v31 = vshll.u32 %v1338_v26, 16  ;;  %v1340_v32 = vld [vmem:[%s1679_s1 + $0x68] sm:$0xff]   ;;  %v234_v33 = vld [vmem:[%s1436_s12 + $0x20] sm:$0xf] }
  0x12   : > { %1230 = vmatpush3.bf16.msra.mxu1 %v1326_v4  ;;  %1203 = vmatprep.subr.bf16.mxu0 %v1359_v1  ;;  %v284_v15 = vrot.slane %v282_v12, 1  ;;  %v289_v16 = vrot.slane %v287_v13, 1  ;;  %v297_v23 = vrot.slane %v295_v18, 1  ;;  %v243_v34 = vld [vmem:[%s1436_s12 + $0x24] sm:$0x1]  ;;  %v1487_v35 = vld [vmem:[%s1436_s12 + $0x1c] sm:$0xff]   ;;  %v1090_v62 = vcombine.low %v234_v33, %v234_v33 }
  0x13   : > { %1231 = vmatprep.subr.bf16.mxu1 %v1359_v1  ;;  %v305_v37 = vrot.slane %v303_v31, 1  ;;  %v1080_v38 = vcombine.low %v234_v33, %v243_v34  ;;  %v1342_v39 = vld [vmem:[%s1679_s1 + $0x40] sm:$0xff]   ;;  %v606_v40 = vshll.u32 %v1487_v35, 16  ;;  %v610_v44 = vshrl.u32 %v1487_v35, 16  ;;  %v539_v55 = vld [vmem:[%s1436_s12 + $0x8] sm:$0xf] }
  0x14   : > { %v285_v19 = vor.u32 %v284_v15, %v280_v11  ;;  %v293_v27 = vor.u32 %v291_v21, %v289_v16  ;;  %v301_v36 = vor.u32 %v299_v28, %v297_v23  ;;  %v1344_v41 = vld [vmem:[%s1679_s1 + $0x60] sm:$0xff]   ;;  %v307_v47 = vshrl.u32 %v1338_v26, 16  ;;  %v1346_v59 = vld [vmem:[%s1436_s12 + $0xc] sm:$0xff]  }
  0x15   : > { %1204 = vmatpush3.bf16.msra.mxu0 %v1327_v5  ;;  %v1503_v42 = vld [vmem:[%s1436_s12 + $0x24] sm:$0x1f]   ;;  %v1506_v43 = vrot.slane %v606_v40, 1  ;;  %v311_v48 = vshll.u32 %v1080_v38, 16  ;;  %v315_v58 = vshrl.u32 %v1080_v38, 16  ;;  %v590_v4 = vshll.u32 %v1346_v59, 16 }
  0x16   : > { %1232 = vmatpush3.bf16.msra.mxu1 %v1328_v6  ;;  %1205 = vmatprep.subr.bf16.mxu0 %v1359_v1  ;;  %v290_v22 = vsel %vm278_vm2, %v285_v19, %v289_v16  ;;  %v298_v30 = vsel %vm278_vm2, %v293_v27, %v297_v23  ;;  %v614_v45 = vshll.u32 %v1503_v42, 16  ;;  %v306_v46 = vsel %vm278_vm2, %v301_v36, %v305_v37  ;;  %v538_v54 = vld [vmem:[%s1436_s12 + $0x4] sm:$0xf] }
  0x17   : > { %1233 = vmatprep.subr.bf16.mxu1 %v1359_v1  ;;  %v612_v49 = vor.u32 %v610_v44, %v1506_v43  ;;  %v309_v52 = vor.u32 %v307_v47, %v305_v37  ;;  %v313_v53 = vrot.slane %v311_v48, 1  ;;  %v1108_v57 = vcombine.low %v538_v54, %v539_v55  ;;  %v741_v61 = vld [vmem:[%s1436_s12 + $0x4] sm:$0xe] }
  0x18   : > { %v1512_v50 = vrot.slane %v614_v45, 1  ;;  %v1130_v0 = vcombine.low %v741_v61, %v539_v55  ;;  %v756_v6 = vrot.slane %v1346_v59, 1  ;;  %v594_v12 = vshrl.u32 %v1346_v59, 16 }
  0x19   : > { %1206 = vmatpush3.bf16.msra.mxu0 %v1329_v7  ;;  %v314_v56 = vsel %vm278_vm2, %v309_v52, %v313_v53  ;;  %v585_v60 = vshll.u32 %v1108_v57, 16  ;;  %v317_v63 = vor.u32 %v315_v58, %v313_v53  ;;  %v583_v2 = vshrl.u32 %v1108_v57, 16 }
  0x1a   : > { %1234 = vmatpush3.bf16.msra.mxu1 %v1330_v10  ;;  %1255 = vmatprep.subr.bf16.mxu0 %v1359_v1  ;;  %v617_v51 = vsel %vm278_vm2, %v612_v49, %v1512_v50  ;;  %v755_v5 = vrot.slane %v1130_v0, 1 }
  0x1b   : > { %1283 = vmatprep.subr.bf16.mxu1 %v1359_v1  ;;  %v587_v3 = vrot.slane %v585_v60, 1 }
  0x1c   : > { %1208 = vmatmul.mubr.msk.bf16.vlgmr.msra.gmra.mxu0 %vm342_vm1, %v290_v22  ;;  %v757_v10 = vsel %vm754_vm3, %v755_v5, %v756_v6 }
  0x1d   : > { %1236 = vmatmul.mubr.msk.bf16.vlgmr.msra.gmra.mxu1 %vm342_vm1, %v1331_v8  ;;  %1256 = vmatpush3.bf16.msra.mxu0 %v1333_v20  ;;  %v588_v7 = vor.u32 %v587_v3, %v583_v2  ;;  %v592_v8 = vrot.slane %v590_v4, 1  ;;  %v760_v20 = vrot.slane %v1487_v35, 1 }
  0x1e   : > { %1284 = vmatpush3.bf16.msra.mxu1 %v1334_v17  ;;  %1211 = vmatprep.mubr.msk.bf16.mxu0 %vm1360_vm0, %v1359_v1 }
  0x1f   : > { %1239 = vmatprep.mubr.msk.bf16.mxu1 %vm1360_vm0, %v1359_v1  ;;  %1257 = vmatprep.subr.bf16.mxu0 %v1359_v1  ;;  %v593_v11 = vsel %vm278_vm2, %v588_v7, %v592_v8  ;;  %v596_v15 = vor.u32 %v594_v12, %v592_v8 }
  0x20   : > { %1285 = vmatprep.subr.bf16.mxu1 %v1359_v1 }
  0x21   : > { %1258 = vmatpush3.bf16.msra.mxu0 %v1336_v24  ;;  %v762_v24 = vrot.slane %v1503_v42, 1 }
  0x22   : > { %1286 = vmatpush3.bf16.msra.mxu1 %v1337_v25  ;;  %1259 = vmatprep.subr.bf16.mxu0 %v1359_v1 }
  0x23   : > { %1287 = vmatprep.subr.bf16.mxu1 %v1359_v1  ;;  %v763_v25 = vsel %vm754_vm3, %v760_v20, %v762_v24 }
  0x24   : > { %1212 = vmatmul.mubr.msk.bf16.gmra.mxu0 %vm342_vm1, %v298_v30 }
  0x25   : > { %1240 = vmatmul.mubr.msk.bf16.gmra.mxu1 %vm342_vm1, %v1332_v9  ;;  %1215 = vmatprep.mubr.msk.bf16.mxu0 %vm1360_vm0, %v1359_v1  ;;  %v1348_v9 = vld [vmem:[%s1436_s12 + $0x14] sm:$0xff]   ;;  %s1312_s12 = smul.u32 36, %s1685_s19 }
  0x26   : > { %1243 = vmatprep.mubr.msk.bf16.mxu1 %vm1360_vm0, %v1359_v1  ;;  %1260 = vmatpush3.bf16.msra.mxu0 %v1339_v29  ;;  %v598_v13 = vshll.u32 %v1348_v9, 16  ;;  %v602_v19 = vshrl.u32 %v1348_v9, 16 }
  0x27   : > { %1288 = vmatpush3.bf16.msra.mxu1 %v1340_v32  ;;  %1261 = vmatprep.subr.bf16.mxu0 %v1359_v1  ;;  %s1622_s16 = scalar_lea.vmem %s1683_s5, %s1312_s12 }
  0x28   : > { %1289 = vmatprep.subr.bf16.mxu1 %v1359_v1  ;;  %v600_v16 = vrot.slane %v598_v13, 1 }
  0x2a   : > { %1262 = vmatpush3.bf16.msra.mxu0 %v1342_v39  ;;  %v601_v18 = vsel %vm278_vm2, %v596_v15, %v600_v16  ;;  %v604_v21 = vor.u32 %v602_v19, %v600_v16 }
  0x2b   : > { %1290 = vmatpush3.bf16.msra.mxu1 %v1344_v41 }
  0x2c   : > { %1216 = vmatmul.mubr.msk.bf16.gmra.mxu0 %vm342_vm1, %v306_v46  ;;  %v609_v23 = vsel %vm278_vm2, %v604_v21, %v1506_v43  ;;  %v1608_v21 = vld [vmem:[%s1681_s3] ss:$0 sm:$0xff] }
  0x2d   : > { %1244 = vmatmul.mubr.msk.bf16.gmra.mxu1 %vm342_vm1, %v1446_v14  ;;  %1219 = vmatprep.mubr.msk.bf16.mxu0 %vm1360_vm0, %v1359_v1  ;;  %v758_v14 = vrot.slane %v1348_v9, 1  ;;  %v1602_v9 = vld [vmem:[%s1680_s2] ss:$0 sm:$0xff] }
  0x2e   : > { %1247 = vmatprep.mubr.msk.bf16.mxu1 %vm1360_vm0, %v1359_v1 }
  0x2f   : > { %v759_v17 = vsel %vm754_vm3, %v756_v6, %v758_v14  ;;  %v761_v22 = vsel %vm754_vm3, %v758_v14, %v760_v20 }
  0x34   : > { %1220 = vmatmul.mubr.msk.bf16.gmra.mxu0 %vm342_vm1, %v314_v56 }
  0x35   : > { %1248 = vmatmul.mubr.msk.bf16.gmra.mxu1 %vm342_vm1, %v1338_v26  ;;  %1223 = vmatprep.mubr.msk.bf16.mxu0 %vm1360_vm0, %v1359_v1  ;;  %v618_v26 = vshrl.u32 %v1503_v42, 16 }
  0x36   : > { %1251 = vmatprep.mubr.msk.bf16.mxu1 %vm1360_vm0, %v1359_v1 }
  0x37   : > { %v620_v27 = vor.u32 %v618_v26, %v1512_v50  ;;  %v1614_v26 = vld [vmem:[%s1682_s4] ss:$0 sm:$0xff] }
  0x3c   : > { %1224 = vmatmul.mubr.msk.bf16.gmra.mxu0 %vm342_vm1, %v317_v63 }
  0x3d   : > { %1252 = vmatmul.mubr.msk.bf16.gmra.mxu1 %vm342_vm1, %v1090_v62  ;;  %1263 = vmatprep.mubr.msk.bf16.mxu0 %vm1360_vm0, %v1359_v1 }
  0x3e   : > { %1291 = vmatprep.mubr.msk.bf16.mxu1 %vm1360_vm0, %v1359_v1 }
  0x44   : > { %1264 = vmatmul.mubr.msk.bf16.vlgmr.msra.gmra.mxu0 %vm342_vm1, %v593_v11 }
  0x45   : > { %1292 = vmatmul.mubr.msk.bf16.vlgmr.msra.gmra.mxu1 %vm342_vm1, %v757_v10  ;;  %1267 = vmatprep.mubr.msk.bf16.mxu0 %vm1360_vm0, %v1359_v1 }
  0x46   : > { %1295 = vmatprep.mubr.msk.bf16.mxu1 %vm1360_vm0, %v1359_v1 }
  0x4c   : > { %1268 = vmatmul.mubr.msk.bf16.gmra.mxu0 %vm342_vm1, %v601_v18 }
  0x4d   : > { %1296 = vmatmul.mubr.msk.bf16.gmra.mxu1 %vm342_vm1, %v759_v17  ;;  %1271 = vmatprep.mubr.msk.bf16.mxu0 %vm1360_vm0, %v1359_v1 }
  0x4e   : > { %1299 = vmatprep.mubr.msk.bf16.mxu1 %vm1360_vm0, %v1359_v1 }
  0x54   : > { %1272 = vmatmul.mubr.msk.bf16.gmra.mxu0 %vm342_vm1, %v609_v23 }
  0x55   : > { %1300 = vmatmul.mubr.msk.bf16.gmra.mxu1 %vm342_vm1, %v761_v22  ;;  %1275 = vmatprep.mubr.msk.bf16.mxu0 %vm1360_vm0, %v1359_v1 }
  0x56   : > { %1303 = vmatprep.mubr.msk.bf16.mxu1 %vm1360_vm0, %v1359_v1 }
  0x5c   : > { %1276 = vmatmul.mubr.msk.bf16.gmra.mxu0 %vm342_vm1, %v617_v51 }
  0x5d   : > { %1304 = vmatmul.mubr.msk.bf16.gmra.mxu1 %vm342_vm1, %v763_v25  ;;  %1279 = vmatprep.mubr.msk.bf16.mxu0 %vm1360_vm0, %v1359_v1 }
  0x5e   : > { %1307 = vmatprep.mubr.msk.bf16.mxu1 %vm1360_vm0, %v1359_v1 }
  0x64   : > { %1280 = vmatmul.mubr.msk.bf16.gmra.mxu0 %vm342_vm1, %v620_v27 }
  0x65   : > { %1308 = vmatmul.mubr.msk.bf16.gmra.mxu1 %vm342_vm1, %v762_v24 }
  0xdc   : > { %v392_v29 = vpop.f32.mrf.mxu0 }
  0xdd   : > { %v500_v28 = vpop.f32.mrf.mxu1 }
  0xde   : > { %v1209_v31 = vpop.f32.mrf.mxu0  ;;  %v501_v4 = vadd.f32 %v500_v28, %v392_v29 }
  0xdf   : > { %v1237_v30 = vpop.f32.mrf.mxu1 }
  0xe0   : > { %v395_v33 = vpop.f32.mrf.mxu0 }
  0xe1   : > { %v503_v32 = vpop.f32.mrf.mxu1 }
  0xe2   : > { %v1210_v35 = vpop.f32.mrf.mxu0  ;;  %v504_v11 = vadd.f32 %v503_v32, %v395_v33 }
  0xe3   : > { %v1238_v34 = vpop.f32.mrf.mxu1 }
  0xe4   : > { %v400_v37 = vpop.f32.mrf.mxu0 }
  0xe5   : > { %v508_v36 = vpop.f32.mrf.mxu1 }
  0xe6   : > { %v1213_v39 = vpop.f32.mrf.mxu0  ;;  %v509_v19 = vadd.f32 %v508_v36, %v400_v37 }
  0xe7   : > { %v1241_v38 = vpop.f32.mrf.mxu1 }
  0xe8   : > { %v403_v1 = vpop.f32.mrf.mxu0 }
  0xe9   : > { %v511_v40 = vpop.f32.mrf.mxu1 }
  0xea   : > { %v1214_v42 = vpop.f32.mrf.mxu0  ;;  %v512_v32 = vadd.f32 %v511_v40, %v403_v1 }
  0xeb   : > { %v1242_v41 = vpop.f32.mrf.mxu1 }
  0xec   : > { %v1581_v44 = vpop.f32.mrf.mxu0 }
  0xed   : > { %v1579_v43 = vpop.f32.mrf.mxu1 }
  0xee   : > { %v1217_v46 = vpop.f32.mrf.mxu0 }
  0xef   : > { %v1245_v45 = vpop.f32.mrf.mxu1  ;;  %v517_v46 = vadd.f32 %v1579_v43, %v1581_v44 }
  0xf0   : > { %v1585_v48 = vpop.f32.mrf.mxu0 }
  0xf1   : > { %v1583_v47 = vpop.f32.mrf.mxu1 }
  0xf2   : > { %v1218_v50 = vpop.f32.mrf.mxu0  ;;  %v520_v43 = vadd.f32 %v1583_v47, %v1585_v48 }
  0xf3   : > { %v1246_v49 = vpop.f32.mrf.mxu1 }
  0xf4   : > { %v1589_v52 = vpop.f32.mrf.mxu0 }
  0xf5   : > { %v1587_v51 = vpop.f32.mrf.mxu1 }
  0xf6   : > { %v1221_v54 = vpop.f32.mrf.mxu0  ;;  %v525_v47 = vadd.f32 %v1587_v51, %v1589_v52 }
  0xf7   : > { %v1249_v53 = vpop.f32.mrf.mxu1 }
  0xf8   : > { %v1593_v56 = vpop.f32.mrf.mxu0 }
  0xf9   : > { %v1591_v55 = vpop.f32.mrf.mxu1 }
  0xfa   : > { %v1222_v58 = vpop.f32.mrf.mxu0  ;;  %v528_v51 = vadd.f32 %v1591_v55, %v1593_v56 }
  0xfb   : > { %v1250_v57 = vpop.f32.mrf.mxu1 }
  0xfc   : > { %v1597_v60 = vpop.f32.mrf.mxu0 }
  0xfd   : > { %v1595_v59 = vpop.f32.mrf.mxu1 }
  0xfe   : > { %v1225_v62 = vpop.f32.mrf.mxu0  ;;  %v533_v55 = vadd.f32 %v1595_v59, %v1597_v60 }
  0xff   : > { %v1253_v61 = vpop.f32.mrf.mxu1 }
 0x100   : > { %v427_v0 = vpop.f32.mrf.mxu0 }
 0x101   : > { %v535_v63 = vpop.f32.mrf.mxu1 }
 0x102   : > { %v1226_v3 = vpop.f32.mrf.mxu0 }
 0x103   : > { %v1254_v2 = vpop.f32.mrf.mxu1 }
 0x104   : > { %v694_v6 = vpop.f32.mrf.mxu0 }
 0x105   : > { %v837_v5 = vpop.f32.mrf.mxu1  ;;  %v732_v7 = vadd.f32 %v694_v6, %v501_v4 }
 0x106   : > { %v1265_v10 = vpop.f32.mrf.mxu0 }
 0x107   : > { %v1293_v8 = vpop.f32.mrf.mxu1  ;;  %v875_v12 = vadd.f32 %v837_v5, %v732_v7 }
 0x108   : > { %v697_v14 = vpop.f32.mrf.mxu0 }
 0x109   : > { %v840_v13 = vpop.f32.mrf.mxu1  ;;  %v891_v15 = vadd.f32 %v1602_v9, %v875_v12  ;;  %v733_v16 = vadd.f32 %v697_v14, %v504_v11 }
 0x10a   : > { %v1266_v18 = vpop.f32.mrf.mxu0 }
 0x10b   : > { %v1294_v17 = vpop.f32.mrf.mxu1  ;;  %vm900_vm4 = vcmp.gt.f32.partialorder %v891_v15, 0.0  ;;  %v909_v20 = vmul.f32 0.2, %v891_v15  ;;  %v876_v22 = vadd.f32 %v840_v13, %v733_v16 }
 0x10c   : > { %v702_v24 = vpop.f32.mrf.mxu0 }
 0x10d   : > { %v845_v23 = vpop.f32.mrf.mxu1  ;;  %v918_v25 = vsel %vm900_vm4, %v891_v15, %v909_v20  ;;  %v892_v27 = vadd.f32 %v1602_v9, %v876_v22  ;;  %v734_v28 = vadd.f32 %v702_v24, %v509_v19 }
 0x10e   : > { %v934_v30 = vmul.f32 %v1608_v21, %v918_v25  ;;  %v1269_v31 = vpop.f32.mrf.mxu0 }
 0x10f   : > { %v1297_v29 = vpop.f32.mrf.mxu1  ;;  %vm901_vm5 = vcmp.gt.f32.partialorder %v892_v27, 0.0  ;;  %v910_v33 = vmul.f32 0.2, %v892_v27  ;;  %v877_v34 = vadd.f32 %v845_v23, %v734_v28 }
 0x110   : > { %v950_v36 = vadd.f32 %v1614_v26, %v934_v30  ;;  %v705_v37 = vpop.f32.mrf.mxu0 }
 0x111   : > { %v848_v35 = vpop.f32.mrf.mxu1  ;;  %v919_v38 = vsel %vm901_vm5, %v892_v27, %v910_v33  ;;  %v893_v39 = vadd.f32 %v1602_v9, %v877_v34  ;;  %v735_v41 = vadd.f32 %v705_v37, %v512_v32 }
 0x112   : > { %v1154_v40 = vpack.c.bf16 %v950_v36, %v950_v36  ;;  %v935_v1 = vmul.f32 %v1608_v21, %v919_v38  ;;  %v1270_v45 = vpop.f32.mrf.mxu0 }
 0x113   : > { %v1298_v42 = vpop.f32.mrf.mxu1  ;;  %vm902_vm7 = vcmp.gt.f32.partialorder %v893_v39, 0.0  ;;  %v911_v49 = vmul.f32 0.2, %v893_v39  ;;  %v878_v50 = vadd.f32 %v848_v35, %v735_v41 }
 0x114   : > { %997 = vst.msk [vmem:[%s1622_s16] sm:$0xf] %vm996_vm6, %v1154_v40  ;;  %v951_v54 = vadd.f32 %v1614_v26, %v935_v1  ;;  %v710_v57 = vpop.f32.mrf.mxu0 }
 0x115   : > { %v853_v53 = vpop.f32.mrf.mxu1  ;;  %v920_v58 = vsel %vm902_vm7, %v893_v39, %v911_v49  ;;  %v894_v61 = vadd.f32 %v1602_v9, %v878_v50  ;;  %v736_v62 = vadd.f32 %v710_v57, %v517_v46 }
 0x116   : > { %v1155_v0 = vpack.c.bf16 %v951_v54, %v951_v54  ;;  %v936_v2 = vmul.f32 %v1608_v21, %v920_v58  ;;  %v1273_v3 = vpop.f32.mrf.mxu0 }
 0x117   : > { %v1301_v63 = vpop.f32.mrf.mxu1  ;;  %vm903_vm8 = vcmp.gt.f32.partialorder %v894_v61, 0.0  ;;  %v912_v44 = vmul.f32 0.2, %v894_v61  ;;  %v879_v4 = vadd.f32 %v853_v53, %v736_v62 }
 0x118   : > { %998 = vst.msk [vmem:[%s1622_s16 + $0x4] sm:$0xf] %vm996_vm6, %v1155_v0  ;;  %v952_v6 = vadd.f32 %v1614_v26, %v936_v2  ;;  %v713_v7 = vpop.f32.mrf.mxu0 }
 0x119   : > { %v856_v5 = vpop.f32.mrf.mxu1  ;;  %v921_v8 = vsel %vm903_vm8, %v894_v61, %v912_v44  ;;  %v895_v10 = vadd.f32 %v1602_v9, %v879_v4  ;;  %v737_v11 = vadd.f32 %v713_v7, %v520_v43 }
 0x11a   : > { %v1156_v13 = vpack.c.bf16 %v952_v6, %v952_v6  ;;  %v937_v14 = vmul.f32 %v1608_v21, %v921_v8  ;;  %v1274_v15 = vpop.f32.mrf.mxu0 }
 0x11b   : > { %v1302_v12 = vpop.f32.mrf.mxu1  ;;  %vm904_vm9 = vcmp.gt.f32.partialorder %v895_v10, 0.0  ;;  %v913_v48 = vmul.f32 0.2, %v895_v10  ;;  %v880_v16 = vadd.f32 %v856_v5, %v737_v11 }
 0x11c   : > { %999 = vst.msk [vmem:[%s1622_s16 + $0x8] sm:$0xf] %vm996_vm6, %v1156_v13  ;;  %v953_v18 = vadd.f32 %v1614_v26, %v937_v14  ;;  %v718_v19 = vpop.f32.mrf.mxu0 }
 0x11d   : > { %v861_v17 = vpop.f32.mrf.mxu1  ;;  %v922_v20 = vsel %vm904_vm9, %v895_v10, %v913_v48  ;;  %v896_v22 = vadd.f32 %v1602_v9, %v880_v16  ;;  %v738_v23 = vadd.f32 %v718_v19, %v525_v47 }
 0x11e   : > { %v1157_v25 = vpack.c.bf16 %v953_v18, %v953_v18  ;;  %v938_v27 = vmul.f32 %v1608_v21, %v922_v20  ;;  %v1277_v28 = vpop.f32.mrf.mxu0 }
 0x11f   : > { %v1305_v24 = vpop.f32.mrf.mxu1  ;;  %vm905_vm10 = vcmp.gt.f32.partialorder %v896_v22, 0.0  ;;  %v914_v52 = vmul.f32 0.2, %v896_v22  ;;  %v881_v29 = vadd.f32 %v861_v17, %v738_v23 }
 0x120   : > { %1000 = vst.msk [vmem:[%s1622_s16 + $0xc] sm:$0xf] %vm996_vm6, %v1157_v25  ;;  %v954_v31 = vadd.f32 %v1614_v26, %v938_v27  ;;  %v721_v32 = vpop.f32.mrf.mxu0 }
 0x121   : > { %v864_v30 = vpop.f32.mrf.mxu1  ;;  %v923_v33 = vsel %vm905_vm10, %v896_v22, %v914_v52  ;;  %v897_v34 = vadd.f32 %v1602_v9, %v881_v29  ;;  %v739_v35 = vadd.f32 %v721_v32, %v528_v51 }
 0x122   : > { %v1158_v37 = vpack.c.bf16 %v954_v31, %v954_v31  ;;  %v939_v38 = vmul.f32 %v1608_v21, %v923_v33  ;;  %v1278_v39 = vpop.f32.mrf.mxu0 }
 0x123   : > { %v1306_v36 = vpop.f32.mrf.mxu1  ;;  %vm906_vm11 = vcmp.gt.f32.partialorder %v897_v34, 0.0  ;;  %v915_v56 = vmul.f32 0.2, %v897_v34  ;;  %v882_v41 = vadd.f32 %v864_v30, %v739_v35 }
 0x124   : > { %1001 = vst.msk [vmem:[%s1622_s16 + $0x10] sm:$0xf] %vm996_vm6, %v1158_v37  ;;  %v955_v40 = vadd.f32 %v1614_v26, %v939_v38  ;;  %v726_v1 = vpop.f32.mrf.mxu0 }
 0x125   : > { %v869_v42 = vpop.f32.mrf.mxu1  ;;  %v924_v45 = vsel %vm906_vm11, %v897_v34, %v915_v56  ;;  %v898_v46 = vadd.f32 %v1602_v9, %v882_v41  ;;  %v740_v49 = vadd.f32 %v726_v1, %v533_v55 }
 0x126   : > { %v1159_v53 = vpack.c.bf16 %v955_v40, %v955_v40  ;;  %v940_v54 = vmul.f32 %v1608_v21, %v924_v45  ;;  %v1281_v57 = vpop.f32.mrf.mxu0 }
 0x127   : > { %v1309_v50 = vpop.f32.mrf.mxu1  ;;  %vm907_vm12 = vcmp.gt.f32.partialorder %v898_v46, 0.0  ;;  %v916_v59 = vmul.f32 0.2, %v898_v46  ;;  %v883_v60 = vadd.f32 %v869_v42, %v740_v49 }
 0x128   : > { %1002 = vst.msk [vmem:[%s1622_s16 + $0x14] sm:$0xf] %vm996_vm6, %v1159_v53  ;;  %v956_v61 = vadd.f32 %v1614_v26, %v940_v54  ;;  %v729_v62 = vpop.f32.mrf.mxu0 }
 0x129   : > { %v872_v58 = vpop.f32.mrf.mxu1  ;;  %v925_v63 = vsel %vm907_vm12, %v898_v46, %v916_v59  ;;  %v899_v0 = vadd.f32 %v1602_v9, %v883_v60 }
 0x12a   : > { %v1160_v3 = vpack.c.bf16 %v956_v61, %v956_v61  ;;  %v941_v43 = vmul.f32 %v1608_v21, %v925_v63  ;;  %v1282_v44 = vpop.f32.mrf.mxu0 }
 0x12b   : > { %v1310_v2 = vpop.f32.mrf.mxu1  ;;  %vm908_vm13 = vcmp.gt.f32.partialorder %v899_v0, 0.0  ;;  %v917_v4 = vmul.f32 0.2, %v899_v0 }
 0x12c   : > { %1003 = vst.msk [vmem:[%s1622_s16 + $0x18] sm:$0xf] %vm996_vm6, %v1160_v3  ;;  %v957_v5 = vadd.f32 %v1614_v26, %v941_v43 }
 0x12d   : > { %v926_v6 = vsel %vm908_vm13, %v899_v0, %v917_v4 }
 0x12e   : > { %v1161_v7 = vpack.c.bf16 %v957_v5, %v957_v5  ;;  %v942_v8 = vmul.f32 %v1608_v21, %v926_v6 }
 0x130   : > { %1004 = vst.msk [vmem:[%s1622_s16 + $0x1c] sm:$0xf] %vm996_vm6, %v1161_v7  ;;  %v958_v10 = vadd.f32 %v1614_v26, %v942_v8 }
 0x132   : > { %v1162_v9 = vpack.c.bf16 %v958_v10, %v958_v10 }
 0x134   : > { %1005 = vst.msk [vmem:[%s1622_s16 + $0x20] sm:$0xf] %vm996_vm6, %v1162_v9 }
 0x135 PF: > { %s15_s18 = sadd.s32 1, %s1357_s18  }
 0x136   : > { %p12_p4 = scmp.ge.s32.totalorder %s15_s18, 4  }
 0x138   :  { %14 = sbr.rel (!%p12_p4) target bundleno = 1 (0x1), region = 73 }

// kernel: discriminator_forward.7
= control target key start
LH: loop header
LB: loop body
LE: loop exit
PB: predicated region body
PF: predicated region fallthrough
CT: control target
= control target key end

     0   :  { %s1185_s18 = smov 0   ;;  %s1321_s0 = inlined_call_operand.vmem [shape: bf16[2,26,128], index: 0, kind: input, shape index: {}]   ;;  %s1322_s1 = inlined_call_operand.vmem [shape: bf16[4,128,64], index: 1, kind: input, shape index: {}]   ;;  %s1323_s2 = inlined_call_operand.vmem [shape: f32[1,64], index: 2, kind: input, shape index: {}]   ;;  %s1324_s3 = inlined_call_operand.vmem [shape: f32[1,64], index: 3, kind: input, shape index: {}]   ;;  %s1325_s4 = inlined_call_operand.vmem [shape: f32[1,64], index: 4, kind: input, shape index: {}]   ;;  %s1326_s5 = inlined_call_operand.vmem [shape: bf16[2,20,64], index: 5, kind: output, shape index: {}]  }
   0x1 LB: > { %s874_s19 = sadd.s32 4294967295, %s1153_s18   ;;  %p878_p0 = scmp.ge.s32.totalorder %s1153_s18, 1  ;;  %s1153_s18 = sphi %s1185_s18, %s15_s18  }
   0x2   : > { %p187_p1 = scmp.lt.s32.totalorder %s1153_s18, 3 }
   0x4   : > { %p188_p2 = pnand %p878_p0, %p187_p1 }
   0x5   : > { %p215_p3 = scmp.lt.s32.totalorder (!%p188_p2), %s874_s19, 1 }
   0x6   : > { %191 = sbr.rel (%p188_p2) target bundleno = 291 (0x123), region = 40 }
   0xb   : > { %v1109_v0 = vld [vmem:[%s1322_s1 + $0x78] sm:$0xff]   ;;  %v1111_v2 = vld [vmem:[%s1322_s1 + $0x70] sm:$0xff]   ;;  %v1113_v4 = vld [vmem:[%s1322_s1 + $0x68] sm:$0xff]   ;;  %s1328_s19 = smov (!%p215_p3, %s874_s19), 1  ;;  %vm271_vm0 = vsmask.f32 7424 }
   0xc   : > { %v1110_v1 = vld [vmem:[%s1322_s1 + $0x38] sm:$0xff]   ;;  %1020 = vmatprep.subr.bf16.mxu0 %v1109_v0  ;;  %v1112_v3 = vld [vmem:[%s1322_s1 + $0x30] sm:$0xff]   ;;  %v1114_v5 = vld [vmem:[%s1322_s1 + $0x28] sm:$0xff]   ;;  %s976_s11 = sshll.u32 %s1328_s19, 4  ;;  %vm657_vm1 = vcmask 1044480   ;;  %s1100_s24 = smul.u32 12, %s1328_s19 }
   0xd   : > { %1040 = vmatprep.subr.bf16.mxu1 %v1110_v1  ;;  %1021 = vmatpush3.bf16.msra.mxu0 %v1109_v0  ;;  %v1115_v6 = vld [vmem:[%s1322_s1 + $0x60] sm:$0xff]   ;;  %v1117_v8 = vld [vmem:[%s1322_s1 + $0x58] sm:$0xff]   ;;  %s1229_s20 = scalar_lea.vmem %s1321_s0, %s976_s11  ;;  %v1119_v10 = vld [vmem:[%s1322_s1 + $0x50] sm:$0xff]   ;;  %vm517_vm2 = vsmask.f32 5376  ;;  %vm817_vm5 = vcmask 517120  }
   0xe   : > { %1041 = vmatpush3.bf16.msra.mxu1 %v1110_v1  ;;  %1022 = vmatprep.subr.bf16.mxu0 %v1111_v2  ;;  %v1116_v7 = vld [vmem:[%s1322_s1 + $0x20] sm:$0xff]   ;;  %v1118_v9 = vld [vmem:[%s1322_s1 + $0x18] sm:$0xff]   ;;  %v1120_v11 = vld [vmem:[%s1322_s1 + $0x10] sm:$0xff]   ;;  %s224_s28 = scalar_lea.vmem %s1326_s5, %s1100_s24  ;;  %vm814_vm7 = vcmask 519168  }
   0xf   : > { %1042 = vmatprep.subr.bf16.mxu1 %v1112_v3  ;;  %v1125_v12 = vld [vmem:[%s1229_s20] sm:$0xff]   ;;  %v1126_v13 = vld [vmem:[%s1229_s20 + $0x8] ss:$0 sps:$4 sm:$0x77]   ;;  %v1128_v26 = vld [vmem:[%s1322_s1 + $0xb8] sm:$0xff]  }
  0x10   : > { %v1121_v14 = vld [vmem:[%s1322_s1 + $0x48] sm:$0xff]   ;;  %v273_v16 = vshrl.u32 %v1125_v12, 16  ;;  %v275_v17 = vshll.u32 %v1125_v12, 16  ;;  %v280_v18 = vshll.u32 %v1126_v13, 16  ;;  %1056 = vmatprep.mubr.bf16.mxu1 %v1125_v12  ;;  %v1123_v22 = vld [vmem:[%s1322_s1 + $0x40] sm:$0xff]   ;;  %v284_v25 = vshrl.u32 %v1126_v13, 16 }
  0x11   : > { %1023 = vmatpush3.bf16.msra.mxu0 %v1111_v2  ;;  %v1122_v15 = vld [vmem:[%s1322_s1 + $0x8] sm:$0xff]   ;;  %v1124_v23 = vld [vmem:[%s1322_s1] sm:$0xff]   ;;  %v1129_v28 = vld [vmem:[%s1322_s1 + $0xf8] sm:$0xff]  }
  0x12   : > { %1043 = vmatpush3.bf16.msra.mxu1 %v1112_v3  ;;  %1024 = vmatprep.subr.bf16.mxu0 %v1113_v4  ;;  %v277_v19 = vrot.slane %v275_v17, 1  ;;  %v282_v20 = vrot.slane %v280_v18, 1  ;;  %v1127_v27 = vld [vmem:[%s1229_s20 + $0x8] ss:$0 sps:$4 sm:$0x33]   ;;  %v1130_v30 = vld [vmem:[%s1322_s1 + $0xb0] sm:$0xff]  }
  0x13   : > { %1044 = vmatprep.subr.bf16.mxu1 %v1114_v5  ;;  %v1131_v31 = vld [vmem:[%s1322_s1 + $0xf0] sm:$0xff]   ;;  %v1132_v32 = vld [vmem:[%s1322_s1 + $0xa8] sm:$0xff]   ;;  %v486_v33 = vld [vmem:[%s1229_s20] sm:$0xc] }
  0x14   : > { %v278_v21 = vor.u32 %v277_v19, %v273_v16  ;;  %v286_v29 = vor.u32 %v284_v25, %v282_v20  ;;  %v487_v34 = vld [vmem:[%s1229_s20 + $0x4] sm:$0xf]  ;;  %v1145_v36 = vld [vmem:[%s1229_s20 + $0x8] sm:$0x1f]   ;;  %v636_v38 = vld [vmem:[%s1229_s20] sm:$0x8] }
  0x15   : > { %1025 = vmatpush3.bf16.msra.mxu0 %v1113_v4  ;;  %v933_v35 = vcombine.low %v486_v33, %v487_v34  ;;  %v1133_v37 = vld [vmem:[%s1322_s1 + $0xe8] sm:$0xff]   ;;  %v527_v41 = vshrl.u32 %v1145_v36, 16  ;;  %v530_v42 = vshll.u32 %v1145_v36, 16  ;;  %v959_v43 = vcombine.low %v636_v38, %v487_v34  ;;  %v1134_v45 = vld [vmem:[%s1322_s1 + $0xa0] sm:$0xff]   ;;  %v1136_v55 = vld [vmem:[%s1322_s1 + $0x98] sm:$0xff]  }
  0x16   : > { %1045 = vmatpush3.bf16.msra.mxu1 %v1114_v5  ;;  %1026 = vmatprep.subr.bf16.mxu0 %v1115_v6  ;;  %v283_v24 = vsel %vm271_vm0, %v278_v21, %v282_v20  ;;  %v659_v44 = vrot.slane %v1145_v36, 3  ;;  %v1135_v50 = vld [vmem:[%s1322_s1 + $0xe0] sm:$0xff]   ;;  %v1137_v57 = vld [vmem:[%s1322_s1 + $0xd8] sm:$0xff]   ;;  %v1138_v58 = vld [vmem:[%s1322_s1 + $0x90] sm:$0xff]  }
  0x17   : > { %1046 = vmatprep.subr.bf16.mxu1 %v1116_v7  ;;  %1036 = vmatprep.mubr.bf16.mxu0 %v283_v24  ;;  %v519_v39 = vshrl.u32 %v933_v35, 16  ;;  %v522_v40 = vshll.u32 %v933_v35, 16  ;;  %v529_v48 = vrot.slane %v527_v41, 2  ;;  %v532_v49 = vrot.slane %v530_v42, 3  ;;  %v1139_v59 = vld [vmem:[%s1322_s1 + $0xd0] sm:$0xff]   ;;  %v1140_v60 = vld [vmem:[%s1322_s1 + $0x88] sm:$0xff]  }
  0x18   : > { %v658_v51 = vrot.slane %v959_v43, 3  ;;  %v1141_v61 = vld [vmem:[%s1322_s1 + $0xc8] sm:$0xff]   ;;  %v1142_v62 = vld [vmem:[%s1322_s1 + $0x80] sm:$0xff]  }
  0x19   : > { %1027 = vmatpush3.bf16.msra.mxu0 %v1115_v6  ;;  %v521_v46 = vrot.slane %v519_v39, 2  ;;  %v524_v47 = vrot.slane %v522_v40, 3  ;;  %v533_v53 = vor.u32 %v532_v49, %v529_v48  ;;  %v1143_v63 = vld [vmem:[%s1322_s1 + $0xc0] sm:$0xff]  }
  0x1a   : > { %1047 = vmatpush3.bf16.msra.mxu1 %v1116_v7  ;;  %1028 = vmatprep.subr.bf16.mxu0 %v1117_v8  ;;  %v660_v54 = vsel %vm657_vm1, %v658_v51, %v659_v44  ;;  %v968_v13 = vld [vmem:[%s1323_s2] ss:$0 sm:$0xff] }
  0x1b   : > { %1048 = vmatprep.subr.bf16.mxu1 %v1118_v9  ;;  %v525_v52 = vor.u32 %v524_v47, %v521_v46  ;;  %v969_v25 = vld [vmem:[%s1324_s3] ss:$0 sm:$0xff] }
  0x1d   : > { %1029 = vmatpush3.bf16.msra.mxu0 %v1117_v8  ;;  %v534_v56 = vsel %vm517_vm2, %v525_v52, %v533_v53 }
  0x1e   : > { %1049 = vmatpush3.bf16.msra.mxu1 %v1118_v9  ;;  %1030 = vmatprep.subr.bf16.mxu0 %v1119_v10 }
  0x1f   : > { %1050 = vmatprep.subr.bf16.mxu1 %v1120_v11 }
  0x21   : > { %1031 = vmatpush3.bf16.msra.mxu0 %v1119_v10 }
  0x22   : > { %1051 = vmatpush3.bf16.msra.mxu1 %v1120_v11  ;;  %1032 = vmatprep.subr.bf16.mxu0 %v1121_v14 }
  0x23   : > { %1052 = vmatprep.subr.bf16.mxu1 %v1122_v15 }
  0x25   : > { %1033 = vmatpush3.bf16.msra.mxu0 %v1121_v14 }
  0x26   : > { %1053 = vmatpush3.bf16.msra.mxu1 %v1122_v15  ;;  %1034 = vmatprep.subr.bf16.mxu0 %v1123_v22 }
  0x27   : > { %1054 = vmatprep.subr.bf16.mxu1 %v1124_v23 }
  0x29   : > { %1035 = vmatpush3.bf16.msra.mxu0 %v1123_v22 }
  0x2a   : > { %1055 = vmatpush3.bf16.msra.mxu1 %v1124_v23  ;;  %1060 = vmatprep.subr.bf16.mxu0 %v1128_v26 }
  0x2b   : > { %1080 = vmatprep.subr.bf16.mxu1 %v1129_v28 }
  0x2c   : > { %1037 = vmatmul.mubr.bf16.vlgmr.msra.gmra.mxu0 %v286_v29 }
  0x2d   : > { %1057 = vmatmul.mubr.bf16.vlgmr.msra.gmra.mxu1 %v1127_v27  ;;  %1061 = vmatpush3.bf16.msra.mxu0 %v1128_v26 }
  0x2e   : > { %1081 = vmatpush3.bf16.msra.mxu1 %v1129_v28  ;;  %1062 = vmatprep.subr.bf16.mxu0 %v1130_v30 }
  0x2f   : > { %1082 = vmatprep.subr.bf16.mxu1 %v1131_v31  ;;  %1076 = vmatprep.mubr.bf16.mxu0 %v534_v56 }
  0x30   : > { %1096 = vmatprep.mubr.bf16.mxu1 %v660_v54 }
  0x31   : > { %1063 = vmatpush3.bf16.msra.mxu0 %v1130_v30  ;;  %v970_v30 = vld [vmem:[%s1325_s4] ss:$0 sm:$0xff] }
  0x32   : > { %1083 = vmatpush3.bf16.msra.mxu1 %v1131_v31  ;;  %1064 = vmatprep.subr.bf16.mxu0 %v1132_v32 }
  0x33   : > { %1084 = vmatprep.subr.bf16.mxu1 %v1133_v37 }
  0x35   : > { %1065 = vmatpush3.bf16.msra.mxu0 %v1132_v32 }
  0x36   : > { %1085 = vmatpush3.bf16.msra.mxu1 %v1133_v37  ;;  %1066 = vmatprep.subr.bf16.mxu0 %v1134_v45 }
  0x37   : > { %1086 = vmatprep.subr.bf16.mxu1 %v1135_v50 }
  0x39   : > { %1067 = vmatpush3.bf16.msra.mxu0 %v1134_v45 }
  0x3a   : > { %1087 = vmatpush3.bf16.msra.mxu1 %v1135_v50  ;;  %1068 = vmatprep.subr.bf16.mxu0 %v1136_v55 }
  0x3b   : > { %1088 = vmatprep.subr.bf16.mxu1 %v1137_v57 }
  0x3d   : > { %1069 = vmatpush3.bf16.msra.mxu0 %v1136_v55 }
  0x3e   : > { %1089 = vmatpush3.bf16.msra.mxu1 %v1137_v57  ;;  %1070 = vmatprep.subr.bf16.mxu0 %v1138_v58 }
  0x3f   : > { %1090 = vmatprep.subr.bf16.mxu1 %v1139_v59 }
  0x41   : > { %1071 = vmatpush3.bf16.msra.mxu0 %v1138_v58 }
  0x42   : > { %1091 = vmatpush3.bf16.msra.mxu1 %v1139_v59  ;;  %1072 = vmatprep.subr.bf16.mxu0 %v1140_v60 }
  0x43   : > { %1092 = vmatprep.subr.bf16.mxu1 %v1141_v61 }
  0x45   : > { %1073 = vmatpush3.bf16.msra.mxu0 %v1140_v60 }
  0x46   : > { %1093 = vmatpush3.bf16.msra.mxu1 %v1141_v61  ;;  %1074 = vmatprep.subr.bf16.mxu0 %v1142_v62 }
  0x47   : > { %1094 = vmatprep.subr.bf16.mxu1 %v1143_v63 }
  0x49   : > { %1075 = vmatpush3.bf16.msra.mxu0 %v1142_v62 }
  0x4a   : > { %1095 = vmatpush3.bf16.msra.mxu1 %v1143_v63 }
  0x4c   : > { %1077 = vmatmul.mubr.bf16.vlgmr.msra.gmra.mxu0 %v533_v53 }
  0x4d   : > { %1097 = vmatmul.mubr.bf16.vlgmr.msra.gmra.mxu1 %v659_v44 }
  0xec   : > { %v1038_v0 = vpop.f32.mrf.mxu0 }
  0xed   : > { %v1058_v1 = vpop.f32.mrf.mxu1 }
  0xee   : > { %v371_v2 = vpop.f32.mrf.mxu0  ;;  %v481_v7 = vadd.f32 %v1058_v1, %v1038_v0 }
  0xef   : > { %v472_v3 = vpop.f32.mrf.mxu1 }
  0xf0   : > { %v1039_v4 = vpop.f32.mrf.mxu0  ;;  %v473_v10 = vadd.f32 %v472_v3, %v371_v2 }
  0xf1   : > { %v1059_v5 = vpop.f32.mrf.mxu1 }
  0xf2   : > { %v374_v6 = vpop.f32.mrf.mxu0 }
  0xf3   : > { %v475_v8 = vpop.f32.mrf.mxu1 }
  0xf4   : > { %v476_v19 = vadd.f32 %v475_v8, %v374_v6 }
 0x10c   : > { %v1078_v9 = vpop.f32.mrf.mxu0 }
 0x10d   : > { %v635_v11 = vadd.f32 %v1078_v9, %v481_v7  ;;  %v1098_v12 = vpop.f32.mrf.mxu1 }
 0x10e   : > { %v619_v14 = vpop.f32.mrf.mxu0 }
 0x10f   : > { %v761_v15 = vadd.f32 %v1098_v12, %v635_v11  ;;  %v633_v16 = vadd.f32 %v619_v14, %v473_v10  ;;  %v745_v17 = vpop.f32.mrf.mxu1 }
 0x110   : > { %v1079_v18 = vpop.f32.mrf.mxu0 }
 0x111   : > { %v771_v20 = vadd.f32 %v968_v13, %v761_v15  ;;  %v759_v21 = vadd.f32 %v745_v17, %v633_v16  ;;  %v1099_v22 = vpop.f32.mrf.mxu1 }
 0x112   : > { %v622_v23 = vpop.f32.mrf.mxu0 }
 0x113   : > { %vm774_vm3 = vcmp.gt.f32.partialorder %v771_v20, 0.0  ;;  %v777_v24 = vmul.f32 0.2, %v771_v20  ;;  %v769_v26 = vadd.f32 %v968_v13, %v759_v21  ;;  %v634_v27 = vadd.f32 %v622_v23, %v476_v19  ;;  %v748_v28 = vpop.f32.mrf.mxu1 }
 0x115   : > { %v780_v29 = vsel %vm774_vm3, %v771_v20, %v777_v24  ;;  %vm772_vm4 = vcmp.gt.f32.partialorder %v769_v26, 0.0  ;;  %v775_v31 = vmul.f32 0.2, %v769_v26  ;;  %v760_v32 = vadd.f32 %v748_v28, %v634_v27 }
 0x116   : > { %v790_v33 = vmul.f32 %v969_v25, %v780_v29 }
 0x117   : > { %v778_v34 = vsel %vm772_vm4, %v769_v26, %v775_v31  ;;  %v770_v35 = vadd.f32 %v968_v13, %v760_v32 }
 0x118   : > { %v800_v36 = vadd.f32 %v970_v30, %v790_v33  ;;  %v788_v37 = vmul.f32 %v969_v25, %v778_v34 }
 0x119   : > { %vm773_vm6 = vcmp.gt.f32.partialorder %v770_v35, 0.0  ;;  %v776_v38 = vmul.f32 0.2, %v770_v35 }
 0x11a   : > { %v979_v39 = vpack.c.bf16 %v800_v36, %v800_v36  ;;  %v798_v40 = vadd.f32 %v970_v30, %v788_v37 }
 0x11b   : > { %v779_v41 = vsel %vm773_vm6, %v770_v35, %v776_v38 }
 0x11c   : > { %818 = vst.msk [vmem:[%s224_s28 + $0x8] sm:$0x3] %vm817_vm5, %v979_v39  ;;  %v977_v42 = vpack.c.bf16 %v798_v40, %v798_v40  ;;  %v789_v43 = vmul.f32 %v969_v25, %v779_v41 }
 0x11e   : > { %815 = vst.msk [vmem:[%s224_s28] sm:$0xf] %vm814_vm7, %v977_v42  ;;  %v799_v44 = vadd.f32 %v970_v30, %v789_v43 }
 0x120   : > { %v978_v45 = vpack.c.bf16 %v799_v44, %v799_v44 }
 0x122   : > { %816 = vst.msk [vmem:[%s224_s28 + $0x4] sm:$0xf] %vm814_vm7, %v978_v45 }
 0x123 PF: > { %s15_s18 = sadd.s32 1, %s1153_s18  }
 0x124   : > { %p12_p4 = scmp.ge.s32.totalorder %s15_s18, 4  }
 0x126   :  { %14 = sbr.rel (!%p12_p4) target bundleno = 1 (0x1), region = 73 }

// kernel: discriminator_forward.8
= control target key start
LH: loop header
LB: loop body
LE: loop exit
PB: predicated region body
PF: predicated region fallthrough
CT: control target
= control target key end

     0   :  { %s1439_s18 = smov 0   ;;  %s1672_s0 = inlined_call_operand.vmem [shape: bf16[2,10,256], index: 0, kind: input, shape index: {}]   ;;  %s1673_s1 = inlined_call_operand.vmem [shape: bf16[4,256,128], index: 1, kind: input, shape index: {}]   ;;  %s1674_s2 = inlined_call_operand.vmem [shape: f32[1,128], index: 2, kind: input, shape index: {}]   ;;  %s1675_s3 = inlined_call_operand.vmem [shape: f32[1,128], index: 3, kind: input, shape index: {}]   ;;  %s1676_s4 = inlined_call_operand.vmem [shape: f32[1,128], index: 4, kind: input, shape index: {}]   ;;  %s1677_s5 = inlined_call_operand.vmem [shape: bf16[2,6,128], index: 5, kind: output, shape index: {}]  }
   0x1 LB: > { %s1051_s19 = sadd.s32 4294967295, %s1407_s18   ;;  %p1055_p0 = scmp.ge.s32.totalorder %s1407_s18, 1  ;;  %s1407_s18 = sphi %s1439_s18, %s15_s18  }
   0x2   : > { %p187_p1 = scmp.lt.s32.totalorder %s1407_s18, 3 }
   0x4   : > { %p188_p2 = pnand %p1055_p0, %p187_p1 }
   0x5   : > { %p214_p3 = scmp.lt.s32.totalorder (!%p188_p2), %s1051_s19, 1 }
   0x6   : > { %191 = sbr.rel (%p188_p2) target bundleno = 290 (0x122), region = 40 }
   0xb   : > { %v1329_v0 = vld [vmem:[%s1673_s1 + $0xf8] sm:$0xff]   ;;  %v1333_v4 = vld [vmem:[%s1673_s1 + $0xf0] sm:$0xff]   ;;  %v1337_v8 = vld [vmem:[%s1673_s1 + $0xe8] sm:$0xff]   ;;  %s1679_s19 = smov (!%p214_p3, %s1051_s19), 1 }
   0xc   : > { %v1330_v1 = vld [vmem:[%s1673_s1 + $0x78] sm:$0xff]   ;;  %1233 = vmatprep.subr.bf16.mxu0 %v1329_v0  ;;  %v1334_v5 = vld [vmem:[%s1673_s1 + $0x70] sm:$0xff]   ;;  %v1338_v9 = vld [vmem:[%s1673_s1 + $0x68] sm:$0xff]   ;;  %s1232_s28 = sshll.u32 %s1679_s19, 4  ;;  %s1058_s22 = sshll.u32 %s1679_s19, 2 }
   0xd   : > { %v1331_v2 = vld [vmem:[%s1673_s1 + $0xb8] sm:$0xff]   ;;  %1255 = vmatprep.subr.bf16.mxu1 %v1330_v1  ;;  %v1335_v6 = vld [vmem:[%s1673_s1 + $0xb0] sm:$0xff]   ;;  %v1339_v10 = vld [vmem:[%s1673_s1 + $0xa8] sm:$0xff]   ;;  %s1547_s12 = scalar_lea.vmem %s1672_s0, %s1232_s28  ;;  %s222_s25 = scalar_lea.vmem %s1677_s5, %s1058_s22 }
   0xe   : > { %v1332_v3 = vld [vmem:[%s1673_s1 + $0x38] sm:$0xff]   ;;  %1234 = vmatpush3.bf16.msra.mxu0 %v1331_v2  ;;  %v1336_v7 = vld [vmem:[%s1673_s1 + $0x30] sm:$0xff]   ;;  %v1340_v11 = vld [vmem:[%s1673_s1 + $0x28] sm:$0xff]  }
   0xf   : > { %1256 = vmatpush3.bf16.msra.mxu1 %v1332_v3  ;;  %1235 = vmatprep.subr.bf16.mxu0 %v1333_v4  ;;  %v1341_v12 = vld [vmem:[%s1673_s1 + $0xe0] sm:$0xff]   ;;  %v1345_v16 = vld [vmem:[%s1673_s1 + $0xd8] sm:$0xff]   ;;  %v1349_v20 = vld [vmem:[%s1673_s1 + $0xd0] sm:$0xff]  }
  0x10   : > { %1257 = vmatprep.subr.bf16.mxu1 %v1334_v5  ;;  %v1342_v13 = vld [vmem:[%s1673_s1 + $0x60] sm:$0xff]   ;;  %v1346_v17 = vld [vmem:[%s1673_s1 + $0x58] sm:$0xff]   ;;  %v1350_v21 = vld [vmem:[%s1673_s1 + $0x50] sm:$0xff]  }
  0x11   : > { %v1343_v14 = vld [vmem:[%s1673_s1 + $0xa0] sm:$0xff]   ;;  %v1347_v18 = vld [vmem:[%s1673_s1 + $0x98] sm:$0xff]   ;;  %v1351_v22 = vld [vmem:[%s1673_s1 + $0x90] sm:$0xff]  }
  0x12   : > { %1236 = vmatpush3.bf16.msra.mxu0 %v1335_v6  ;;  %v1344_v15 = vld [vmem:[%s1673_s1 + $0x20] sm:$0xff]   ;;  %v1348_v19 = vld [vmem:[%s1673_s1 + $0x18] sm:$0xff]   ;;  %v1352_v23 = vld [vmem:[%s1673_s1 + $0x10] sm:$0xff]  }
  0x13   : > { %1258 = vmatpush3.bf16.msra.mxu1 %v1336_v7  ;;  %1237 = vmatprep.subr.bf16.mxu0 %v1337_v8  ;;  %v1353_v24 = vld [vmem:[%s1673_s1 + $0xc8] sm:$0xff]   ;;  %v1357_v28 = vld [vmem:[%s1673_s1 + $0xc0] sm:$0xff]   ;;  %v1365_v38 = vld [vmem:[%s1673_s1 + $0x178] sm:$0xff]  }
  0x14   : > { %1259 = vmatprep.subr.bf16.mxu1 %v1338_v9  ;;  %v1354_v25 = vld [vmem:[%s1673_s1 + $0x48] sm:$0xff]   ;;  %v1358_v29 = vld [vmem:[%s1673_s1 + $0x40] sm:$0xff]   ;;  %v1366_v39 = vld [vmem:[%s1673_s1 + $0x1f8] sm:$0xff]  }
  0x15   : > { %v1355_v26 = vld [vmem:[%s1673_s1 + $0x88] sm:$0xff]   ;;  %v1359_v30 = vld [vmem:[%s1673_s1 + $0x80] sm:$0xff]   ;;  %v1367_v46 = vld [vmem:[%s1673_s1 + $0x138] sm:$0xff]  }
  0x16   : > { %1238 = vmatpush3.bf16.msra.mxu0 %v1339_v10  ;;  %v1356_v27 = vld [vmem:[%s1673_s1 + $0x8] sm:$0xff]   ;;  %v1360_v31 = vld [vmem:[%s1673_s1] sm:$0xff]   ;;  %v1368_v47 = vld [vmem:[%s1673_s1 + $0x1b8] sm:$0xff]  }
  0x17   : > { %1260 = vmatpush3.bf16.msra.mxu1 %v1340_v11  ;;  %1239 = vmatprep.subr.bf16.mxu0 %v1341_v12  ;;  %v257_v32 = vld [vmem:[%s1547_s12] sm:$0xff]  ;;  %v1370_v50 = vld [vmem:[%s1673_s1 + $0x1f0] sm:$0xff]   ;;  %v1374_v54 = vld [vmem:[%s1673_s1 + $0x1e8] sm:$0xff]  }
  0x18   : > { %1261 = vmatprep.subr.bf16.mxu1 %v1342_v13  ;;  %v224_v33 = vld [vmem:[%s1547_s12] sm:$0x77]  ;;  %v1091_v34 = vcombine.low %v257_v32, %v257_v32  ;;  %v1092_v35 = vcombine.high %v257_v32, %v257_v32  ;;  %v1369_v51 = vld [vmem:[%s1673_s1 + $0x170] sm:$0xff]   ;;  %v1373_v55 = vld [vmem:[%s1673_s1 + $0x168] sm:$0xff]  }
  0x19   : > { %v1109_v36 = vcombine.low %v224_v33, %v224_v33  ;;  %v1110_v37 = vcombine.high %v224_v33, %v224_v33  ;;  %v1372_v52 = vld [vmem:[%s1673_s1 + $0x1b0] sm:$0xff]   ;;  %v1376_v56 = vld [vmem:[%s1673_s1 + $0x1a8] sm:$0xff]   ;;  %v1378_v58 = vld [vmem:[%s1673_s1 + $0x1e0] sm:$0xff]  }
  0x1a   : > { %1240 = vmatpush3.bf16.msra.mxu0 %v1343_v14  ;;  %v304_v40 = vshrl.u32 %v1092_v35, 16  ;;  %v306_v41 = vshll.u32 %v1092_v35, 16  ;;  %v297_v42 = vshrl.u32 %v1091_v34, 16  ;;  %v299_v43 = vshll.u32 %v1091_v34, 16  ;;  %v1371_v53 = vld [vmem:[%s1673_s1 + $0x130] sm:$0xff]   ;;  %v1375_v57 = vld [vmem:[%s1673_s1 + $0x128] sm:$0xff]  }
  0x1b   : > { %1262 = vmatpush3.bf16.msra.mxu1 %v1344_v15  ;;  %1241 = vmatprep.subr.bf16.mxu0 %v1345_v16  ;;  %v1377_v59 = vld [vmem:[%s1673_s1 + $0x160] sm:$0xff]   ;;  %v1382_v62 = vld [vmem:[%s1673_s1 + $0x1d8] sm:$0xff]   ;;  %v1386_v2 = vld [vmem:[%s1673_s1 + $0x1d0] sm:$0xff]  }
  0x1c   : > { %1263 = vmatprep.subr.bf16.mxu1 %v1346_v17  ;;  %583 = vmatprep.mubr.bf16.mxu1 %v1110_v37  ;;  %v308_v44 = vrot.slane %v306_v41, 1  ;;  %v301_v45 = vrot.slane %v299_v43, 1  ;;  %v1380_v60 = vld [vmem:[%s1673_s1 + $0x1a0] sm:$0xff]   ;;  %v1381_v63 = vld [vmem:[%s1673_s1 + $0x158] sm:$0xff]   ;;  %v1385_v3 = vld [vmem:[%s1673_s1 + $0x150] sm:$0xff]  }
  0x1d   : > { %v1379_v61 = vld [vmem:[%s1673_s1 + $0x120] sm:$0xff]   ;;  %v1384_v0 = vld [vmem:[%s1673_s1 + $0x198] sm:$0xff]   ;;  %v1388_v4 = vld [vmem:[%s1673_s1 + $0x190] sm:$0xff]  }
  0x1e   : > { %1242 = vmatpush3.bf16.msra.mxu0 %v1347_v18  ;;  %v309_v48 = vor.u32 %v308_v44, %v304_v40  ;;  %v302_v49 = vor.u32 %v301_v45, %v297_v42  ;;  %v1383_v1 = vld [vmem:[%s1673_s1 + $0x118] sm:$0xff]   ;;  %v1387_v5 = vld [vmem:[%s1673_s1 + $0x110] sm:$0xff]   ;;  %v1390_v6 = vld [vmem:[%s1673_s1 + $0x1c8] sm:$0xff]  }
  0x1f   : > { %1264 = vmatpush3.bf16.msra.mxu1 %v1348_v19  ;;  %1243 = vmatprep.subr.bf16.mxu0 %v1349_v20  ;;  %v1389_v7 = vld [vmem:[%s1673_s1 + $0x148] sm:$0xff]   ;;  %v1394_v10 = vld [vmem:[%s1673_s1 + $0x1c0] sm:$0xff]  }
  0x20   : > { %1265 = vmatprep.subr.bf16.mxu1 %v1350_v21  ;;  %440 = vmatprep.mubr.bf16.mxu0 %v309_v48  ;;  %v1392_v8 = vld [vmem:[%s1673_s1 + $0x188] sm:$0xff]   ;;  %v1393_v11 = vld [vmem:[%s1673_s1 + $0x140] sm:$0xff]  }
  0x21   : > { %v1391_v9 = vld [vmem:[%s1673_s1 + $0x108] sm:$0xff]   ;;  %v1396_v12 = vld [vmem:[%s1673_s1 + $0x180] sm:$0xff]  }
  0x22   : > { %1244 = vmatpush3.bf16.msra.mxu0 %v1351_v22  ;;  %v591_v13 = vld [vmem:[%s1547_s12] sm:$0xee]  ;;  %v592_v14 = vld [vmem:[%s1547_s12 + $0x8] sm:$0x11] }
  0x23   : > { %1266 = vmatpush3.bf16.msra.mxu1 %v1352_v23  ;;  %1245 = vmatprep.subr.bf16.mxu0 %v1353_v24  ;;  %v1159_v15 = vcombine.low %v591_v13, %v592_v14  ;;  %v1160_v16 = vcombine.high %v591_v13, %v592_v14  ;;  %v789_v17 = vld [vmem:[%s1547_s12] sm:$0xcc] }
  0x24   : > { %1267 = vmatprep.subr.bf16.mxu1 %v1354_v25  ;;  %v1395_v18 = vld [vmem:[%s1673_s1 + $0x100] sm:$0xff]   ;;  %v1209_v19 = vcombine.low %v789_v17, %v592_v14  ;;  %v1210_v20 = vcombine.high %v789_v17, %v592_v14 }
  0x25   : > { %v643_v21 = vshrl.u32 %v1160_v16, 16  ;;  %v646_v22 = vshll.u32 %v1160_v16, 16  ;;  %v635_v23 = vshrl.u32 %v1159_v15, 16  ;;  %v638_v24 = vshll.u32 %v1159_v15, 16 }
  0x26   : > { %1246 = vmatpush3.bf16.msra.mxu0 %v1355_v26  ;;  %v828_v25 = vrot.slane %v1209_v19, 2  ;;  %v829_v26 = vrot.slane %v1210_v20, 2 }
  0x27   : > { %1268 = vmatpush3.bf16.msra.mxu1 %v1356_v27  ;;  %1247 = vmatprep.subr.bf16.mxu0 %v1357_v28  ;;  %v645_v27 = vrot.slane %v643_v21, 1  ;;  %v648_v28 = vrot.slane %v646_v22, 2 }
  0x28   : > { %1269 = vmatprep.subr.bf16.mxu1 %v1358_v29  ;;  %v637_v29 = vrot.slane %v635_v23, 1 }
  0x2a   : > { %1248 = vmatpush3.bf16.msra.mxu0 %v1359_v30  ;;  %v640_v30 = vrot.slane %v638_v24, 2 }
  0x2b   : > { %1270 = vmatpush3.bf16.msra.mxu1 %v1360_v31  ;;  %1277 = vmatprep.subr.bf16.mxu0 %v1365_v38  ;;  %v649_v31 = vor.u32 %v648_v28, %v645_v27 }
  0x2c   : > { %1299 = vmatprep.subr.bf16.mxu1 %v1366_v39  ;;  %v641_v32 = vor.u32 %v640_v30, %v637_v29 }
  0x2d   : > { %441 = vmatmul.mubr.bf16.vlgmr.msra.gmra.mxu0 %v302_v49 }
  0x2e   : > { %584 = vmatmul.mubr.bf16.vlgmr.msra.gmra.mxu1 %v1109_v36  ;;  %1278 = vmatpush3.bf16.msra.mxu0 %v1367_v46 }
  0x2f   : > { %1300 = vmatpush3.bf16.msra.mxu1 %v1368_v47  ;;  %1279 = vmatprep.subr.bf16.mxu0 %v1369_v51 }
  0x30   : > { %1301 = vmatprep.subr.bf16.mxu1 %v1370_v50  ;;  %960 = vmatprep.mubr.bf16.mxu1 %v829_v26 }
  0x31   : > { %780 = vmatprep.mubr.bf16.mxu0 %v649_v31 }
  0x32   : > { %1280 = vmatpush3.bf16.msra.mxu0 %v1371_v53 }
  0x33   : > { %1302 = vmatpush3.bf16.msra.mxu1 %v1372_v52  ;;  %1281 = vmatprep.subr.bf16.mxu0 %v1373_v55 }
  0x34   : > { %1303 = vmatprep.subr.bf16.mxu1 %v1374_v54  ;;  %v1227_v54 = vld [vmem:[%s1674_s2] ss:$0 sm:$0xff] }
  0x36   : > { %1282 = vmatpush3.bf16.msra.mxu0 %v1375_v57 }
  0x37   : > { %1304 = vmatpush3.bf16.msra.mxu1 %v1376_v56  ;;  %1283 = vmatprep.subr.bf16.mxu0 %v1377_v59  ;;  %v1228_v59 = vld [vmem:[%s1675_s3] ss:$0 sm:$0xff] }
  0x38   : > { %1305 = vmatprep.subr.bf16.mxu1 %v1378_v58 }
  0x3a   : > { %1284 = vmatpush3.bf16.msra.mxu0 %v1379_v61  ;;  %v1229_v61 = vld [vmem:[%s1676_s4] ss:$0 sm:$0xff] }
  0x3b   : > { %1306 = vmatpush3.bf16.msra.mxu1 %v1380_v60  ;;  %1285 = vmatprep.subr.bf16.mxu0 %v1381_v63 }
  0x3c   : > { %1307 = vmatprep.subr.bf16.mxu1 %v1382_v62 }
  0x3e   : > { %1286 = vmatpush3.bf16.msra.mxu0 %v1383_v1 }
  0x3f   : > { %1308 = vmatpush3.bf16.msra.mxu1 %v1384_v0  ;;  %1287 = vmatprep.subr.bf16.mxu0 %v1385_v3 }
  0x40   : > { %1309 = vmatprep.subr.bf16.mxu1 %v1386_v2 }
  0x42   : > { %1288 = vmatpush3.bf16.msra.mxu0 %v1387_v5 }
  0x43   : > { %1310 = vmatpush3.bf16.msra.mxu1 %v1388_v4  ;;  %1289 = vmatprep.subr.bf16.mxu0 %v1389_v7 }
  0x44   : > { %1311 = vmatprep.subr.bf16.mxu1 %v1390_v6 }
  0x46   : > { %1290 = vmatpush3.bf16.msra.mxu0 %v1391_v9 }
  0x47   : > { %1312 = vmatpush3.bf16.msra.mxu1 %v1392_v8  ;;  %1291 = vmatprep.subr.bf16.mxu0 %v1393_v11 }
  0x48   : > { %1313 = vmatprep.subr.bf16.mxu1 %v1394_v10 }
  0x4a   : > { %1292 = vmatpush3.bf16.msra.mxu0 %v1395_v18 }
  0x4b   : > { %1314 = vmatpush3.bf16.msra.mxu1 %v1396_v12 }
  0x4d   : > { %781 = vmatmul.mubr.bf16.vlgmr.msra.gmra.mxu0 %v641_v32 }
  0x4e   : > { %961 = vmatmul.mubr.bf16.vlgmr.msra.gmra.mxu1 %v828_v25 }
  0xed   : > { %v1249_v36 = vpop.f32.mrf.mxu0 }
  0xee   : > { %v1271_v33 = vpop.f32.mrf.mxu1 }
  0xef   : > { %v1250_v38 = vpop.f32.mrf.mxu0 }
  0xf0   : > { %v1272_v34 = vpop.f32.mrf.mxu1  ;;  %v1251_v42 = vadd.f32 %v1250_v38, %v1249_v36 }
  0xf1   : > { %v1252_v39 = vpop.f32.mrf.mxu0  ;;  %v1273_v43 = vadd.f32 %v1272_v34, %v1271_v33 }
  0xf2   : > { %v1274_v35 = vpop.f32.mrf.mxu1 }
  0xf3   : > { %v1253_v40 = vpop.f32.mrf.mxu0  ;;  %v586_v48 = vadd.f32 %v1273_v43, %v1251_v42 }
  0xf4   : > { %v1275_v37 = vpop.f32.mrf.mxu1 }
 0x10d   : > { %v1293_v45 = vpop.f32.mrf.mxu0 }
 0x10e   : > { %v1315_v41 = vpop.f32.mrf.mxu1 }
 0x10f   : > { %v1294_v47 = vpop.f32.mrf.mxu0 }
 0x110   : > { %v1316_v44 = vpop.f32.mrf.mxu1  ;;  %v1295_v49 = vadd.f32 %v1294_v47, %v1293_v45 }
 0x111   : > { %v1296_v51 = vpop.f32.mrf.mxu0  ;;  %v1317_v53 = vadd.f32 %v1316_v44, %v1315_v41 }
 0x112   : > { %v1318_v46 = vpop.f32.mrf.mxu1  ;;  %v788_v52 = vadd.f32 %v1295_v49, %v586_v48 }
 0x113   : > { %v1297_v55 = vpop.f32.mrf.mxu0 }
 0x114   : > { %v1319_v50 = vpop.f32.mrf.mxu1  ;;  %v968_v56 = vadd.f32 %v1317_v53, %v788_v52 }
 0x116   : > { %v976_v57 = vadd.f32 %v1227_v54, %v968_v56 }
 0x118   : > { %vm977_vm0 = vcmp.gt.f32.partialorder %v976_v57, 0.0  ;;  %v978_v58 = vmul.f32 0.2, %v976_v57 }
 0x11a   : > { %v979_v60 = vsel %vm977_vm0, %v976_v57, %v978_v58 }
 0x11b   : > { %v987_v62 = vmul.f32 %v1228_v59, %v979_v60 }
 0x11d   : > { %v995_v63 = vadd.f32 %v1229_v61, %v987_v62 }
 0x11f   : > { %v996_v0 = vpack.c.bf16 %v995_v63, %v995_v63 }
 0x121   : > { %997 = vst [vmem:[%s222_s25] sm:$0x7] %v996_v0 }
 0x122 PF: > { %s15_s18 = sadd.s32 1, %s1407_s18  }
 0x123   : > { %p12_p4 = scmp.ge.s32.totalorder %s15_s18, 4  }
 0x125   :  { %14 = sbr.rel (!%p12_p4) target bundleno = 1 (0x1), region = 73 }

// kernel: discriminator_forward.9
= control target key start
LH: loop header
LB: loop body
LE: loop exit
PB: predicated region body
PF: predicated region fallthrough
CT: control target
= control target key end

     0   :  { %v516_v22 = vmov 1966171168   ;;  %v101_v24 = vlaneseq  ;;  %vm395_vm0 = vcmask 1024   ;;  %s642_s1 = inlined_call_operand.vmem [shape: bf16[512,1], index: 1, kind: input, shape index: {}]   ;;  %s643_s0 = inlined_call_operand.vmem [shape: bf16[2,512], index: 0, kind: input, shape index: {}]   ;;  %s644_s2 = inlined_call_operand.<no memory space> [shape: f32[1,1], index: 2, kind: input, shape index: {}]   ;;  %s645_s3 = inlined_call_operand.vmem [shape: f32[2,1], index: 3, kind: output, shape index: {}]  }
   0x1   :  { %v480_v0 = vld [vmem:[%s642_s1 + $0x78] sm:$0xff]   ;;  %v484_v4 = vld [vmem:[%s642_s1 + $0x70] sm:$0xff]   ;;  %v488_v8 = vld [vmem:[%s642_s1 + $0x68] sm:$0xff]   ;;  %v99_v23 = vunpack.c.l.s4 %v516_v22  ;;  %v8_v44 = vstv %s644_s2 }
   0x2   :  { %v481_v1 = vld [vmem:[%s642_s1 + $0xf8] sm:$0xff]   ;;  %435 = vmatprep.subr.bf16.mxu0 %v480_v0  ;;  %v485_v5 = vld [vmem:[%s642_s1 + $0xf0] sm:$0xff]   ;;  %v489_v9 = vld [vmem:[%s642_s1 + $0xe8] sm:$0xff]   ;;  %v102_v30 = vshrl.u32 %v101_v24, 7  ;;  %9 = vst [vmem:[#allocation2] sm:$0x1] %v8_v44 }
   0x3   :  { %v482_v2 = vld [vmem:[%s642_s1 + $0x38] sm:$0xff]   ;;  %457 = vmatprep.subr.bf16.mxu1 %v481_v1  ;;  %v486_v6 = vld [vmem:[%s642_s1 + $0x30] sm:$0xff]   ;;  %v490_v10 = vld [vmem:[%s642_s1 + $0x28] sm:$0xff]   ;;  %v100_v29 = vunpack.c.0.s8 %v99_v23 }
   0x4   :  { %v483_v3 = vld [vmem:[%s642_s1 + $0xb8] sm:$0xff]   ;;  %436 = vmatpush3.bf16.msra.mxu0 %v482_v2  ;;  %v487_v7 = vld [vmem:[%s642_s1 + $0xb0] sm:$0xff]   ;;  %v491_v11 = vld [vmem:[%s642_s1 + $0xa8] sm:$0xff]  }
   0x5   :  { %458 = vmatpush3.bf16.msra.mxu1 %v483_v3  ;;  %437 = vmatprep.subr.bf16.mxu0 %v484_v4  ;;  %v492_v12 = vld [vmem:[%s642_s1 + $0x60] sm:$0xff]   ;;  %v496_v16 = vld [vmem:[%s642_s1 + $0x58] sm:$0xff]   ;;  %v500_v20 = vld [vmem:[%s642_s1 + $0x50] sm:$0xff]   ;;  %v103_v35 = vsub.s32 %v100_v29, %v102_v30 }
   0x6   :  { %459 = vmatprep.subr.bf16.mxu1 %v485_v5  ;;  %v493_v13 = vld [vmem:[%s642_s1 + $0xe0] sm:$0xff]   ;;  %v497_v17 = vld [vmem:[%s642_s1 + $0xd8] sm:$0xff]   ;;  %v501_v21 = vld [vmem:[%s642_s1 + $0xd0] sm:$0xff]  }
   0x7   :  { %v494_v14 = vld [vmem:[%s642_s1 + $0x20] sm:$0xff]   ;;  %v498_v18 = vld [vmem:[%s642_s1 + $0x18] sm:$0xff]   ;;  %v502_v25 = vld [vmem:[%s642_s1 + $0x10] sm:$0xff]  }
   0x8   :  { %438 = vmatpush3.bf16.msra.mxu0 %v486_v6  ;;  %v495_v15 = vld [vmem:[%s642_s1 + $0xa0] sm:$0xff]   ;;  %v499_v19 = vld [vmem:[%s642_s1 + $0x98] sm:$0xff]   ;;  %v503_v26 = vld [vmem:[%s642_s1 + $0x90] sm:$0xff]  }
   0x9   :  { %460 = vmatpush3.bf16.msra.mxu1 %v487_v7  ;;  %439 = vmatprep.subr.bf16.mxu0 %v488_v8  ;;  %v504_v27 = vld [vmem:[%s642_s1 + $0x48] sm:$0xff]   ;;  %v508_v33 = vld [vmem:[%s642_s1 + $0x40] sm:$0xff]  }
   0xa   :  { %461 = vmatprep.subr.bf16.mxu1 %v489_v9  ;;  %v505_v28 = vld [vmem:[%s642_s1 + $0xc8] sm:$0xff]   ;;  %v509_v34 = vld [vmem:[%s642_s1 + $0xc0] sm:$0xff]  }
   0xb   :  { %v506_v31 = vld [vmem:[%s642_s1 + $0x8] sm:$0xff]   ;;  %v510_v36 = vld [vmem:[%s642_s1] sm:$0xff]  }
   0xc   :  { %440 = vmatpush3.bf16.msra.mxu0 %v490_v10  ;;  %v507_v32 = vld [vmem:[%s642_s1 + $0x88] sm:$0xff]   ;;  %v511_v37 = vld [vmem:[%s642_s1 + $0x80] sm:$0xff]  }
   0xd   :  { %462 = vmatpush3.bf16.msra.mxu1 %v491_v11  ;;  %441 = vmatprep.subr.bf16.mxu0 %v492_v12  ;;  %v402_v38 = vld.sshfl [vmem:[%s643_s0] sm:$0x33 pattern:$0x75316420] }
   0xe   :  { %463 = vmatprep.subr.bf16.mxu1 %v493_v13  ;;  %v97_v39 = vcombine.high %v402_v38, %v402_v38  ;;  %v104_v40 = vrot.slane %v402_v38, %v103_v35  ;;  %v401_v47 = vld [vmem:[#allocation2] ss:$0 sm:$0xff] }
  0x10   :  { %442 = vmatpush3.bf16.msra.mxu0 %v494_v14  ;;  %v111_v41 = vrot.slane %v97_v39, %v103_v35  ;;  %v112_v42 = vcombine.high %v104_v40, %v104_v40 }
  0x11   :  { %464 = vmatpush3.bf16.msra.mxu1 %v495_v15  ;;  %443 = vmatprep.subr.bf16.mxu0 %v496_v16 }
  0x12   :  { %465 = vmatprep.subr.bf16.mxu1 %v497_v17  ;;  %342 = vmatprep.mubr.bf16.mxu0 %v111_v41  ;;  %v113_v43 = vcombine.high %v111_v41, %v111_v41 }
  0x14   :  { %444 = vmatpush3.bf16.msra.mxu0 %v498_v18  ;;  %382 = vmatprep.mubr.bf16.mxu1 %v113_v43 }
  0x15   :  { %466 = vmatpush3.bf16.msra.mxu1 %v499_v19  ;;  %445 = vmatprep.subr.bf16.mxu0 %v500_v20 }
  0x16   :  { %467 = vmatprep.subr.bf16.mxu1 %v501_v21 }
  0x18   :  { %446 = vmatpush3.bf16.msra.mxu0 %v502_v25 }
  0x19   :  { %468 = vmatpush3.bf16.msra.mxu1 %v503_v26  ;;  %447 = vmatprep.subr.bf16.mxu0 %v504_v27 }
  0x1a   :  { %469 = vmatprep.subr.bf16.mxu1 %v505_v28 }
  0x1c   :  { %448 = vmatpush3.bf16.msra.mxu0 %v506_v31 }
  0x1d   :  { %470 = vmatpush3.bf16.msra.mxu1 %v507_v32  ;;  %449 = vmatprep.subr.bf16.mxu0 %v508_v33 }
  0x1e   :  { %471 = vmatprep.subr.bf16.mxu1 %v509_v34 }
  0x20   :  { %450 = vmatpush3.bf16.msra.mxu0 %v510_v36 }
  0x21   :  { %472 = vmatpush3.bf16.msra.mxu1 %v511_v37 }
  0x23   :  { %343 = vmatmul.mubr.bf16.vlgmr.msra.gmra.mxu0 %v104_v40 }
  0x24   :  { %383 = vmatmul.mubr.bf16.vlgmr.msra.gmra.mxu1 %v112_v42 }
  0xe3   :  { %v451_v45 = vpop.f32.mrf.mxu0 }
  0xe4   :  { %v473_v46 = vpop.f32.mrf.mxu1 }
  0xe5   :  { %v452_v48 = vpop.f32.mrf.mxu0 }
  0xe6   :  { %v453_v49 = vadd.f32 %v452_v48, %v451_v45  ;;  %v474_v50 = vpop.f32.mrf.mxu1 }
  0xe7   :  { %v454_v51 = vpop.f32.mrf.mxu0  ;;  %v475_v53 = vadd.f32 %v474_v50, %v473_v46 }
  0xe8   :  { %v345_v52 = vadd.f32 %v453_v49, %v401_v47  ;;  %v476_v54 = vpop.f32.mrf.mxu1 }
  0xe9   :  { %v455_v55 = vpop.f32.mrf.mxu0 }
  0xea   :  { %v385_v56 = vadd.f32 %v475_v53, %v345_v52  ;;  %v477_v57 = vpop.f32.mrf.mxu1 }
  0xec   :  { %v390_v58 = vsub.f32 0.0, %v385_v56 }
  0xee   :  { %v391_v59 = vmul.f32 1.442695, %v390_v58 }
  0xf0   :  { %512 = vpow2.f32 %v391_v59 }
  0xfd   :  { %v513_v60 = vpop.eup %512 }
  0xfe   :  { %v393_v61 = vadd.f32 1.0, %v513_v60 }
 0x100   :  { %514 = vrcp.f32 %v393_v61 }
 0x10d   :  { %v515_v62 = vpop.eup %514 }
 0x10e   :  { %396 = vst.msk [vmem:[%s645_s3] sm:$0x3] %vm395_vm0, %v515_v62 }

</bundles_post_ra>
